<compile_context>
chip_gen: v7x
topology: tpu7x:2x2x1
jax: 0.10.0
libtpu: 0.0.40
codegen_flags: <defaults>
</compile_context>

<pallas_src>
import jax
import jax.numpy as jnp
from jax.experimental import pallas as pl
from jax.experimental.pallas import tpu as pltpu

C1P = 8      # conv1 out-channels (6) padded to 8 lanes (compact layout)
FCP = 128    # fc hidden dims (120 / 84) padded to the 128-lane width


# ----------------------------------------------------------------------------
# Kernel 1: conv1 (single im2col matmul over 4 stacked pool quadrants)
#           + bias + ReLU + 2x2 average pool.
# p_ref rows: quadrant-major, 392 rows per quadrant ordered (n, ph1, pw1).
# ----------------------------------------------------------------------------
def _conv1_relu_pool_kernel(p_ref, w_ref, b_ref, o_ref):
    y = jnp.dot(p_ref[...], w_ref[...],
                preferred_element_type=jnp.float32) + b_ref[...]
    y = jnp.maximum(y, 0.0)                       # ReLU per position (pre-pool)
    m = o_ref.shape[0]                            # 392 (multiple of 8: aligned)
    o_ref[...] = 0.25 * (y[0 * m:1 * m] + y[1 * m:2 * m]
                         + y[2 * m:3 * m] + y[3 * m:4 * m])


def conv1_relu_pool(patches, w, b):
    m4, _ = patches.shape
    return pl.pallas_call(
        _conv1_relu_pool_kernel,
        out_shape=jax.ShapeDtypeStruct((m4 // 4, w.shape[1]), jnp.float32),
        in_specs=[pl.BlockSpec(memory_space=pltpu.MemorySpace.VMEM)] * 3,
        out_specs=pl.BlockSpec(memory_space=pltpu.MemorySpace.VMEM),
    )(patches, w, b)


# ----------------------------------------------------------------------------
# Kernel 2: conv2 (single im2col matmul over 4 stacked pool quadrants)
#           + bias + ReLU + 2x2 avg-pool + fc1 + ReLU + fc2 + ReLU + fc3.
# p_ref rows: quadrant-major, 25*N rows per quadrant ordered (ph2, pw2, n),
# so rows [N*s : N*(s+1)] of the pooled activation are spatial position s.
# fc1 uses a COMPACT (25*16, 128) weight: 25 accumulating (N,16)x(16,128) dots.
# ----------------------------------------------------------------------------
def _conv2_mlp_kernel(p_ref, w2_ref, b2_ref, w1f_ref, b1f_ref,
                      w2f_ref, b2f_ref, w3f_ref, b3f_ref, o_ref):
    y = jnp.dot(p_ref[...], w2_ref[...],
                preferred_element_type=jnp.float32) + b2_ref[...]
    y = jnp.maximum(y, 0.0)                       # (4*25*N, 16), ReLU pre-pool
    m = y.shape[0] // 4                           # 25*N
    act2 = 0.25 * (y[0 * m:1 * m] + y[1 * m:2 * m]
                   + y[2 * m:3 * m] + y[3 * m:4 * m])   # (25*N, 16)

    n = act2.shape[0] // 25                       # batch
    h = b1f_ref[...]                              # (1,128), broadcasts over N
    for s in range(25):                           # static unroll
        xs = act2[n * s:n * (s + 1), :]           # (N,16) batch rows of pos s
        ws = w1f_ref[16 * s:16 * (s + 1), :]      # (16,128) compact fc1 slab
        h = h + jnp.dot(xs, ws, preferred_element_type=jnp.float32)
    h = jnp.maximum(h, 0.0)                       # fc1 + ReLU  -> (N,128)
    h = jnp.maximum(jnp.dot(h, w2f_ref[...],
                            preferred_element_type=jnp.float32)
                    + b2f_ref[...], 0.0)          # fc2 + ReLU  -> (N,128)
    o_ref[...] = jnp.dot(h, w3f_ref[...],
                         preferred_element_type=jnp.float32) + b3f_ref[...]


def conv2_mlp(patches, w2, b2, w1f, b1f, w2f, b2f, w3f, b3f):
    n = patches.shape[0] // (4 * 25)
    return pl.pallas_call(
        _conv2_mlp_kernel,
        out_shape=jax.ShapeDtypeStruct((n, 10), jnp.float32),
        in_specs=[pl.BlockSpec(memory_space=pltpu.MemorySpace.VMEM)] * 9,
        out_specs=pl.BlockSpec(memory_space=pltpu.MemorySpace.VMEM),
    )(patches, w2, b2, w1f, b1f, w2f, b2f, w3f, b3f)


# ----------------------------------------------------------------------------
# Wrapper glue: pool-quadrant im2col (tiny, pure jnp indexing, fuses in XLA).
# ----------------------------------------------------------------------------
def net_forward(x_nchw, p):
    n = x_nchw.shape[0]

    # conv1 im2col (pad=2), quadrant-stacked rows: (4*N*14*14, 25)
    xp = jnp.pad(x_nchw[:, 0], ((0, 0), (2, 2), (2, 2)))            # (N,32,32)
    shifts = jnp.stack([xp[:, i:i + 28, j:j + 28]
                        for i in range(5) for j in range(5)], axis=-1)
    quads = [shifts[:, a::2, b::2, :].reshape(n * 14 * 14, 25)
             for a in (0, 1) for b in (0, 1)]
    patches1 = jnp.concatenate(quads, axis=0)                       # (1568,25)

    act1 = conv1_relu_pool(patches1, p["conv1_w"], p["conv1_b"])    # (N*196,8)

    # conv2 im2col (pad=0), quadrant-stacked, rows ordered (ph2, pw2, n),
    # K ordered (i, j, c) to match the prepared conv2 weight.
    a1 = act1.reshape(n, 14, 14, C1P)
    shifts2 = jnp.stack([a1[:, i:i + 10, j:j + 10, :]
                         for i in range(5) for j in range(5)], axis=-2)
    quads2 = [jnp.transpose(shifts2[:, a::2, b::2], (1, 2, 0, 3, 4))
              .reshape(25 * n, 25 * C1P)
              for a in (0, 1) for b in (0, 1)]
    patches2 = jnp.concatenate(quads2, axis=0)                      # (200,200)

    return conv2_mlp(patches2, p["conv2_w"], p["conv2_b"],
                     p["fc1_w"], p["fc1_b"], p["fc2_w"], p["fc2_b"],
                     p["fc3_w"], p["fc3_b"])                        # (N,10)


# ----------------------------------------------------------------------------
# One-time parameter preparation (outside jit): flatten conv weights to the
# im2col-matmul layouts, build the COMPACT fc1 weight, pad fc dims to 128.
# ----------------------------------------------------------------------------
def prepare_params(raw):
    f32 = jnp.float32

    # conv1: (6,1,5,5) -> rows=(i,j), cols=co padded 6->8
    w1 = jnp.transpose(raw["conv1_w"].astype(f32), (2, 3, 1, 0)).reshape(25, 6)
    w1 = jnp.pad(w1, ((0, 0), (0, C1P - 6)))
    b1 = jnp.pad(raw["conv1_b"].astype(f32), (0, C1P - 6)).reshape(1, C1P)

    # conv2: (16,6,5,5) -> rows=(i,j,ci padded 6->8), cols=co=16 (compact)
    w2 = jnp.transpose(raw["conv2_w"].astype(f32), (2, 3, 1, 0))    # (5,5,6,16)
    w2 = jnp.pad(w2, ((0, 0), (0, 0), (0, C1P - 6), (0, 0))).reshape(25 * C1P, 16)
    b2 = raw["conv2_b"].astype(f32).reshape(1, 16)

    # fc1 compact: torch flatten order is (c, ph, pw); re-order rows to
    # (s=(ph,pw), c) so slab s*16:(s+1)*16 multiplies spatial position s.
    w1f = raw["fc1_w"].astype(f32).reshape(16, 25, 120)
    w1f = jnp.transpose(w1f, (1, 0, 2)).reshape(400, 120)
    w1f = jnp.pad(w1f, ((0, 0), (0, FCP - 120)))                    # (400,128)
    b1f = jnp.pad(raw["fc1_b"].astype(f32), (0, FCP - 120)).reshape(1, FCP)

    w2f = jnp.pad(raw["fc2_w"].astype(f32), ((0, FCP - 120), (0, FCP - 84)))
    b2f = jnp.pad(raw["fc2_b"].astype(f32), (0, FCP - 84)).reshape(1, FCP)
    w3f = jnp.pad(raw["fc3_w"].astype(f32), ((0, FCP - 84), (0, 0)))  # (128,10)
    b3f = raw["fc3_b"].astype(f32).reshape(1, 10)

    return {"conv1_w": w1, "conv1_b": b1, "conv2_w": w2, "conv2_b": b2,
            "fc1_w": w1f, "fc1_b": b1f, "fc2_w": w2f, "fc2_b": b2f,
            "fc3_w": w3f, "fc3_b": b3f}


# ----------------------------------------------------------------------------
# Parameter init (matches nn.Conv2d / nn.Linear default uniform init ranges)
# and a pure-JAX reference for correctness checking.
# ----------------------------------------------------------------------------
def init_params(key):
    ks = jax.random.split(key, 10)

    def u(k, shape, fan_in):
        bound = 1.0 / jnp.sqrt(fan_in)
        return jax.random.uniform(k, shape, jnp.float32, -bound, bound)

    return {
        "conv1_w": u(ks[0], (6, 1, 5, 5), 1 * 5 * 5),
        "conv1_b": u(ks[1], (6,), 1 * 5 * 5),
        "conv2_w": u(ks[2], (16, 6, 5, 5), 6 * 5 * 5),
        "conv2_b": u(ks[3], (16,), 6 * 5 * 5),
        # fc weights stored already transposed as (in, out) for x @ W
        "fc1_w": u(ks[4], (16 * 5 * 5, 120), 16 * 5 * 5),
        "fc1_b": u(ks[5], (120,), 16 * 5 * 5),
        "fc2_w": u(ks[6], (120, 84), 120),
        "fc2_b": u(ks[7], (84,), 120),
        "fc3_w": u(ks[8], (84, 10), 84),
        "fc3_b": u(ks[9], (10,), 84),
    }


def reference_forward(x_nchw, raw):
    def conv(x, w, b, pad):
        y = jax.lax.conv_general_dilated(
            x, w, window_strides=(1, 1), padding=((pad, pad), (pad, pad)),
            dimension_numbers=("NCHW", "OIHW", "NCHW"))
        return jnp.maximum(y + b[None, :, None, None], 0.0)

    def pool2(x):
        n, c, h, w = x.shape
        return x.reshape(n, c, h // 2, 2, w // 2, 2).mean(axis=(3, 5))

    y = pool2(conv(x_nchw, raw["conv1_w"], raw["conv1_b"], 2))
    y = pool2(conv(y, raw["conv2_w"], raw["conv2_b"], 0))
    y = y.reshape(y.shape[0], -1)                       # torch flatten (C,H,W)
    y = jnp.maximum(y @ raw["fc1_w"] + raw["fc1_b"], 0.0)
    y = jnp.maximum(y @ raw["fc2_w"] + raw["fc2_b"], 0.0)
    return y @ raw["fc3_w"] + raw["fc3_b"]


if __name__ == "__main__":
    key = jax.random.PRNGKey(0)
    k_params, k_x = jax.random.split(key)
    raw = init_params(k_params)
    params = prepare_params(raw)        # one-time weight permute/pad

    # fc1 expects 16*5*5 features => 28x28 input (LeNet / MNIST geometry)
    x = jax.random.normal(k_x, (2, 1, 28, 28), dtype=jnp.float32)

    out = jax.jit(net_forward)(x, params)
    out = jax.block_until_ready(out)
    assert out.shape == (2, 10), out.shape

    ref = reference_forward(x, raw)
    assert jnp.allclose(out, ref, atol=2e-2, rtol=2e-2), float(
        jnp.max(jnp.abs(out - ref)))
    print("KERNEL_OK")
</pallas_src>

<mosaic_0001>
module attributes {stable_mosaic.version = 11 : i64} {
  func.func @_conv1_relu_pool_kernel(%arg0: memref<1568x25xf32, #tpu.memory_space<vmem>>, %arg1: memref<25x8xf32, #tpu.memory_space<vmem>>, %arg2: memref<1x8xf32, #tpu.memory_space<vmem>>, %arg3: memref<392x8xf32, #tpu.memory_space<vmem>>) attributes {dimension_semantics = [], scalar_prefetch = 0 : i64, scratch_operands = 0 : i64, tpu.core_type = #tpu.core_type<tc>} {
    %c0 = arith.constant 0 : index
    %c0_0 = arith.constant 0 : index
    %0 = vector.load %arg0[%c0, %c0_0] : memref<1568x25xf32, #tpu.memory_space<vmem>>, vector<1568x25xf32>
    %c0_1 = arith.constant 0 : index
    %c0_2 = arith.constant 0 : index
    %1 = vector.load %arg1[%c0_1, %c0_2] : memref<25x8xf32, #tpu.memory_space<vmem>>, vector<25x8xf32>
    %cst = arith.constant dense<0.000000e+00> : vector<1568x8xf32>
    %2 = tpu.matmul %0, %1, %cst {dimension_numbers = #tpu.dot_dimension_numbers<[1], [0], [0], [1], [0, 0, 1, 1], [], []>} : vector<1568x25xf32>, vector<25x8xf32>, vector<1568x8xf32> -> vector<1568x8xf32>
    %c0_3 = arith.constant 0 : index
    %c0_4 = arith.constant 0 : index
    %3 = vector.load %arg2[%c0_3, %c0_4] : memref<1x8xf32, #tpu.memory_space<vmem>>, vector<1x8xf32>
    %4 = vector.broadcast %3 : vector<1x8xf32> to vector<1568x8xf32>
    %5 = arith.addf %2, %4 : vector<1568x8xf32>
    %cst_5 = arith.constant 0.000000e+00 : f32
    %6 = vector.broadcast %cst_5 : f32 to vector<1568x8xf32>
    %7 = arith.maximumf %5, %6 : vector<1568x8xf32>
    %8 = vector.extract_strided_slice %7 {offsets = [0, 0], sizes = [392, 8], strides = [1, 1]} : vector<1568x8xf32> to vector<392x8xf32>
    %9 = vector.extract_strided_slice %7 {offsets = [392, 0], sizes = [392, 8], strides = [1, 1]} : vector<1568x8xf32> to vector<392x8xf32>
    %10 = arith.addf %8, %9 : vector<392x8xf32>
    %11 = vector.extract_strided_slice %7 {offsets = [784, 0], sizes = [392, 8], strides = [1, 1]} : vector<1568x8xf32> to vector<392x8xf32>
    %12 = arith.addf %10, %11 : vector<392x8xf32>
    %13 = vector.extract_strided_slice %7 {offsets = [1176, 0], sizes = [392, 8], strides = [1, 1]} : vector<1568x8xf32> to vector<392x8xf32>
    %14 = arith.addf %12, %13 : vector<392x8xf32>
    %cst_6 = arith.constant 2.500000e-01 : f32
    %15 = vector.broadcast %cst_6 : f32 to vector<392x8xf32>
    %16 = arith.mulf %15, %14 : vector<392x8xf32>
    %c0_7 = arith.constant 0 : index
    %c0_8 = arith.constant 0 : index
    %17 = vector.load %arg3[%c0_7, %c0_8] : memref<392x8xf32, #tpu.memory_space<vmem>>, vector<392x8xf32>
    tpu.vector_store %arg3[%c0_7, %c0_8], %16 {strides = array<i32>} : memref<392x8xf32, #tpu.memory_space<vmem>>, vector<392x8xf32>,
    return
  }
}

module attributes {stable_mosaic.version = 11 : i64} {
  func.func @_conv2_mlp_kernel(%arg0: memref<200x200xf32, #tpu.memory_space<vmem>>, %arg1: memref<200x16xf32, #tpu.memory_space<vmem>>, %arg2: memref<1x16xf32, #tpu.memory_space<vmem>>, %arg3: memref<400x128xf32, #tpu.memory_space<vmem>>, %arg4: memref<1x128xf32, #tpu.memory_space<vmem>>, %arg5: memref<128x128xf32, #tpu.memory_space<vmem>>, %arg6: memref<1x128xf32, #tpu.memory_space<vmem>>, %arg7: memref<128x10xf32, #tpu.memory_space<vmem>>, %arg8: memref<1x10xf32, #tpu.memory_space<vmem>>, %arg9: memref<2x10xf32, #tpu.memory_space<vmem>>) attributes {dimension_semantics = [], scalar_prefetch = 0 : i64, scratch_operands = 0 : i64, tpu.core_type = #tpu.core_type<tc>} {
    %c0 = arith.constant 0 : index
    %c0_0 = arith.constant 0 : index
    %0 = vector.load %arg0[%c0, %c0_0] : memref<200x200xf32, #tpu.memory_space<vmem>>, vector<200x200xf32>
    %c0_1 = arith.constant 0 : index
    %c0_2 = arith.constant 0 : index
    %1 = vector.load %arg1[%c0_1, %c0_2] : memref<200x16xf32, #tpu.memory_space<vmem>>, vector<200x16xf32>
    %cst = arith.constant dense<0.000000e+00> : vector<200x16xf32>
    %2 = tpu.matmul %0, %1, %cst {dimension_numbers = #tpu.dot_dimension_numbers<[1], [0], [0], [1], [0, 0, 1, 1], [], []>} : vector<200x200xf32>, vector<200x16xf32>, vector<200x16xf32> -> vector<200x16xf32>
    %c0_3 = arith.constant 0 : index
    %c0_4 = arith.constant 0 : index
    %3 = vector.load %arg2[%c0_3, %c0_4] : memref<1x16xf32, #tpu.memory_space<vmem>>, vector<1x16xf32>
    %4 = vector.broadcast %3 : vector<1x16xf32> to vector<200x16xf32>
    %5 = arith.addf %2, %4 : vector<200x16xf32>
    %cst_5 = arith.constant 0.000000e+00 : f32
    %6 = vector.broadcast %cst_5 : f32 to vector<200x16xf32>
    %7 = arith.maximumf %5, %6 : vector<200x16xf32>
    %8 = vector.extract_strided_slice %7 {offsets = [0, 0], sizes = [50, 16], strides = [1, 1]} : vector<200x16xf32> to vector<50x16xf32>
    %9 = vector.extract_strided_slice %7 {offsets = [50, 0], sizes = [50, 16], strides = [1, 1]} : vector<200x16xf32> to vector<50x16xf32>
    %10 = arith.addf %8, %9 : vector<50x16xf32>
    %11 = vector.extract_strided_slice %7 {offsets = [100, 0], sizes = [50, 16], strides = [1, 1]} : vector<200x16xf32> to vector<50x16xf32>
    %12 = arith.addf %10, %11 : vector<50x16xf32>
    %13 = vector.extract_strided_slice %7 {offsets = [150, 0], sizes = [50, 16], strides = [1, 1]} : vector<200x16xf32> to vector<50x16xf32>
    %14 = arith.addf %12, %13 : vector<50x16xf32>
    %cst_6 = arith.constant 2.500000e-01 : f32
    %15 = vector.broadcast %cst_6 : f32 to vector<50x16xf32>
    %16 = arith.mulf %15, %14 : vector<50x16xf32>
    %c0_7 = arith.constant 0 : index
    %c0_8 = arith.constant 0 : index
    %17 = vector.load %arg4[%c0_7, %c0_8] : memref<1x128xf32, #tpu.memory_space<vmem>>, vector<1x128xf32>
    %18 = vector.extract_strided_slice %16 {offsets = [0, 0], sizes = [2, 16], strides = [1, 1]} : vector<50x16xf32> to vector<2x16xf32>
    %c0_9 = arith.constant 0 : index
    %c0_10 = arith.constant 0 : index
    %19 = vector.load %arg3[%c0_9, %c0_10] : memref<400x128xf32, #tpu.memory_space<vmem>>, vector<16x128xf32>
    %cst_11 = arith.constant dense<0.000000e+00> : vector<2x128xf32>
    %20 = tpu.matmul %18, %19, %cst_11 {dimension_numbers = #tpu.dot_dimension_numbers<[1], [0], [0], [1], [0, 0, 1, 1], [], []>} : vector<2x16xf32>, vector<16x128xf32>, vector<2x128xf32> -> vector<2x128xf32>
    %21 = vector.broadcast %17 : vector<1x128xf32> to vector<2x128xf32>
    %22 = arith.addf %21, %20 : vector<2x128xf32>
    %23 = vector.extract_strided_slice %16 {offsets = [2, 0], sizes = [2, 16], strides = [1, 1]} : vector<50x16xf32> to vector<2x16xf32>
    %c16 = arith.constant 16 : index
    %c0_12 = arith.constant 0 : index
    %24 = vector.load %arg3[%c16, %c0_12] : memref<400x128xf32, #tpu.memory_space<vmem>>, vector<16x128xf32>
    %cst_13 = arith.constant dense<0.000000e+00> : vector<2x128xf32>
    %25 = tpu.matmul %23, %24, %cst_13 {dimension_numbers = #tpu.dot_dimension_numbers<[1], [0], [0], [1], [0, 0, 1, 1], [], []>} : vector<2x16xf32>, vector<16x128xf32>, vector<2x128xf32> -> vector<2x128xf32>
    %26 = arith.addf %22, %25 : vector<2x128xf32>
    %27 = vector.extract_strided_slice %16 {offsets = [4, 0], sizes = [2, 16], strides = [1, 1]} : vector<50x16xf32> to vector<2x16xf32>
    %c32 = arith.constant 32 : index
    %c0_14 = arith.constant 0 : index
    %28 = vector.load %arg3[%c32, %c0_14] : memref<400x128xf32, #tpu.memory_space<vmem>>, vector<16x128xf32>
    %cst_15 = arith.constant dense<0.000000e+00> : vector<2x128xf32>
    %29 = tpu.matmul %27, %28, %cst_15 {dimension_numbers = #tpu.dot_dimension_numbers<[1], [0], [0], [1], [0, 0, 1, 1], [], []>} : vector<2x16xf32>, vector<16x128xf32>, vector<2x128xf32> -> vector<2x128xf32>
    %30 = arith.addf %26, %29 : vector<2x128xf32>
    %31 = vector.extract_strided_slice %16 {offsets = [6, 0], sizes = [2, 16], strides = [1, 1]} : vector<50x16xf32> to vector<2x16xf32>
    %c48 = arith.constant 48 : index
    %c0_16 = arith.constant 0 : index
    %32 = vector.load %arg3[%c48, %c0_16] : memref<400x128xf32, #tpu.memory_space<vmem>>, vector<16x128xf32>
    %cst_17 = arith.constant dense<0.000000e+00> : vector<2x128xf32>
    %33 = tpu.matmul %31, %32, %cst_17 {dimension_numbers = #tpu.dot_dimension_numbers<[1], [0], [0], [1], [0, 0, 1, 1], [], []>} : vector<2x16xf32>, vector<16x128xf32>, vector<2x128xf32> -> vector<2x128xf32>
    %34 = arith.addf %30, %33 : vector<2x128xf32>
    %35 = vector.extract_strided_slice %16 {offsets = [8, 0], sizes = [2, 16], strides = [1, 1]} : vector<50x16xf32> to vector<2x16xf32>
    %c64 = arith.constant 64 : index
    %c0_18 = arith.constant 0 : index
    %36 = vector.load %arg3[%c64, %c0_18] : memref<400x128xf32, #tpu.memory_space<vmem>>, vector<16x128xf32>
    %cst_19 = arith.constant dense<0.000000e+00> : vector<2x128xf32>
    %37 = tpu.matmul %35, %36, %cst_19 {dimension_numbers = #tpu.dot_dimension_numbers<[1], [0], [0], [1], [0, 0, 1, 1], [], []>} : vector<2x16xf32>, vector<16x128xf32>, vector<2x128xf32> -> vector<2x128xf32>
    %38 = arith.addf %34, %37 : vector<2x128xf32>
    %39 = vector.extract_strided_slice %16 {offsets = [10, 0], sizes = [2, 16], strides = [1, 1]} : vector<50x16xf32> to vector<2x16xf32>
    %c80 = arith.constant 80 : index
    %c0_20 = arith.constant 0 : index
    %40 = vector.load %arg3[%c80, %c0_20] : memref<400x128xf32, #tpu.memory_space<vmem>>, vector<16x128xf32>
    %cst_21 = arith.constant dense<0.000000e+00> : vector<2x128xf32>
    %41 = tpu.matmul %39, %40, %cst_21 {dimension_numbers = #tpu.dot_dimension_numbers<[1], [0], [0], [1], [0, 0, 1, 1], [], []>} : vector<2x16xf32>, vector<16x128xf32>, vector<2x128xf32> -> vector<2x128xf32>
    %42 = arith.addf %38, %41 : vector<2x128xf32>
    %43 = vector.extract_strided_slice %16 {offsets = [12, 0], sizes = [2, 16], strides = [1, 1]} : vector<50x16xf32> to vector<2x16xf32>
    %c96 = arith.constant 96 : index
    %c0_22 = arith.constant 0 : index
    %44 = vector.load %arg3[%c96, %c0_22] : memref<400x128xf32, #tpu.memory_space<vmem>>, vector<16x128xf32>
    %cst_23 = arith.constant dense<0.000000e+00> : vector<2x128xf32>
    %45 = tpu.matmul %43, %44, %cst_23 {dimension_numbers = #tpu.dot_dimension_numbers<[1], [0], [0], [1], [0, 0, 1, 1], [], []>} : vector<2x16xf32>, vector<16x128xf32>, vector<2x128xf32> -> vector<2x128xf32>
    %46 = arith.addf %42, %45 : vector<2x128xf32>
    %47 = vector.extract_strided_slice %16 {offsets = [14, 0], sizes = [2, 16], strides = [1, 1]} : vector<50x16xf32> to vector<2x16xf32>
    %c112 = arith.constant 112 : index
    %c0_24 = arith.constant 0 : index
    %48 = vector.load %arg3[%c112, %c0_24] : memref<400x128xf32, #tpu.memory_space<vmem>>, vector<16x128xf32>
    %cst_25 = arith.constant dense<0.000000e+00> : vector<2x128xf32>
    %49 = tpu.matmul %47, %48, %cst_25 {dimension_numbers = #tpu.dot_dimension_numbers<[1], [0], [0], [1], [0, 0, 1, 1], [], []>} : vector<2x16xf32>, vector<16x128xf32>, vector<2x128xf32> -> vector<2x128xf32>
    %50 = arith.addf %46, %49 : vector<2x128xf32>
    %51 = vector.extract_strided_slice %16 {offsets = [16, 0], sizes = [2, 16], strides = [1, 1]} : vector<50x16xf32> to vector<2x16xf32>
    %c128 = arith.constant 128 : index
    %c0_26 = arith.constant 0 : index
    %52 = vector.load %arg3[%c128, %c0_26] : memref<400x128xf32, #tpu.memory_space<vmem>>, vector<16x128xf32>
    %cst_27 = arith.constant dense<0.000000e+00> : vector<2x128xf32>
    %53 = tpu.matmul %51, %52, %cst_27 {dimension_numbers = #tpu.dot_dimension_numbers<[1], [0], [0], [1], [0, 0, 1, 1], [], []>} : vector<2x16xf32>, vector<16x128xf32>, vector<2x128xf32> -> vector<2x128xf32>
    %54 = arith.addf %50, %53 : vector<2x128xf32>
    %55 = vector.extract_strided_slice %16 {offsets = [18, 0], sizes = [2, 16], strides = [1, 1]} : vector<50x16xf32> to vector<2x16xf32>
    %c144 = arith.constant 144 : index
    %c0_28 = arith.constant 0 : index
    %56 = vector.load %arg3[%c144, %c0_28] : memref<400x128xf32, #tpu.memory_space<vmem>>, vector<16x128xf32>
    %cst_29 = arith.constant dense<0.000000e+00> : vector<2x128xf32>
    %57 = tpu.matmul %55, %56, %cst_29 {dimension_numbers = #tpu.dot_dimension_numbers<[1], [0], [0], [1], [0, 0, 1, 1], [], []>} : vector<2x16xf32>, vector<16x128xf32>, vector<2x128xf32> -> vector<2x128xf32>
    %58 = arith.addf %54, %57 : vector<2x128xf32>
    %59 = vector.extract_strided_slice %16 {offsets = [20, 0], sizes = [2, 16], strides = [1, 1]} : vector<50x16xf32> to vector<2x16xf32>
    %c160 = arith.constant 160 : index
    %c0_30 = arith.constant 0 : index
    %60 = vector.load %arg3[%c160, %c0_30] : memref<400x128xf32, #tpu.memory_space<vmem>>, vector<16x128xf32>
    %cst_31 = arith.constant dense<0.000000e+00> : vector<2x128xf32>
    %61 = tpu.matmul %59, %60, %cst_31 {dimension_numbers = #tpu.dot_dimension_numbers<[1], [0], [0], [1], [0, 0, 1, 1], [], []>} : vector<2x16xf32>, vector<16x128xf32>, vector<2x128xf32> -> vector<2x128xf32>
    %62 = arith.addf %58, %61 : vector<2x128xf32>
    %63 = vector.extract_strided_slice %16 {offsets = [22, 0], sizes = [2, 16], strides = [1, 1]} : vector<50x16xf32> to vector<2x16xf32>
    %c176 = arith.constant 176 : index
    %c0_32 = arith.constant 0 : index
    %64 = vector.load %arg3[%c176, %c0_32] : memref<400x128xf32, #tpu.memory_space<vmem>>, vector<16x128xf32>
    %cst_33 = arith.constant dense<0.000000e+00> : vector<2x128xf32>
    %65 = tpu.matmul %63, %64, %cst_33 {dimension_numbers = #tpu.dot_dimension_numbers<[1], [0], [0], [1], [0, 0, 1, 1], [], []>} : vector<2x16xf32>, vector<16x128xf32>, vector<2x128xf32> -> vector<2x128xf32>
    %66 = arith.addf %62, %65 : vector<2x128xf32>
    %67 = vector.extract_strided_slice %16 {offsets = [24, 0], sizes = [2, 16], strides = [1, 1]} : vector<50x16xf32> to vector<2x16xf32>
    %c192 = arith.constant 192 : index
    %c0_34 = arith.constant 0 : index
    %68 = vector.load %arg3[%c192, %c0_34] : memref<400x128xf32, #tpu.memory_space<vmem>>, vector<16x128xf32>
    %cst_35 = arith.constant dense<0.000000e+00> : vector<2x128xf32>
    %69 = tpu.matmul %67, %68, %cst_35 {dimension_numbers = #tpu.dot_dimension_numbers<[1], [0], [0], [1], [0, 0, 1, 1], [], []>} : vector<2x16xf32>, vector<16x128xf32>, vector<2x128xf32> -> vector<2x128xf32>
    %70 = arith.addf %66, %69 : vector<2x128xf32>
    %71 = vector.extract_strided_slice %16 {offsets = [26, 0], sizes = [2, 16], strides = [1, 1]} : vector<50x16xf32> to vector<2x16xf32>
    %c208 = arith.constant 208 : index
    %c0_36 = arith.constant 0 : index
    %72 = vector.load %arg3[%c208, %c0_36] : memref<400x128xf32, #tpu.memory_space<vmem>>, vector<16x128xf32>
    %cst_37 = arith.constant dense<0.000000e+00> : vector<2x128xf32>
    %73 = tpu.matmul %71, %72, %cst_37 {dimension_numbers = #tpu.dot_dimension_numbers<[1], [0], [0], [1], [0, 0, 1, 1], [], []>} : vector<2x16xf32>, vector<16x128xf32>, vector<2x128xf32> -> vector<2x128xf32>
    %74 = arith.addf %70, %73 : vector<2x128xf32>
    %75 = vector.extract_strided_slice %16 {offsets = [28, 0], sizes = [2, 16], strides = [1, 1]} : vector<50x16xf32> to vector<2x16xf32>
    %c224 = arith.constant 224 : index
    %c0_38 = arith.constant 0 : index
    %76 = vector.load %arg3[%c224, %c0_38] : memref<400x128xf32, #tpu.memory_space<vmem>>, vector<16x128xf32>
    %cst_39 = arith.constant dense<0.000000e+00> : vector<2x128xf32>
    %77 = tpu.matmul %75, %76, %cst_39 {dimension_numbers = #tpu.dot_dimension_numbers<[1], [0], [0], [1], [0, 0, 1, 1], [], []>} : vector<2x16xf32>, vector<16x128xf32>, vector<2x128xf32> -> vector<2x128xf32>
    %78 = arith.addf %74, %77 : vector<2x128xf32>
    %79 = vector.extract_strided_slice %16 {offsets = [30, 0], sizes = [2, 16], strides = [1, 1]} : vector<50x16xf32> to vector<2x16xf32>
    %c240 = arith.constant 240 : index
    %c0_40 = arith.constant 0 : index
    %80 = vector.load %arg3[%c240, %c0_40] : memref<400x128xf32, #tpu.memory_space<vmem>>, vector<16x128xf32>
    %cst_41 = arith.constant dense<0.000000e+00> : vector<2x128xf32>
    %81 = tpu.matmul %79, %80, %cst_41 {dimension_numbers = #tpu.dot_dimension_numbers<[1], [0], [0], [1], [0, 0, 1, 1], [], []>} : vector<2x16xf32>, vector<16x128xf32>, vector<2x128xf32> -> vector<2x128xf32>
    %82 = arith.addf %78, %81 : vector<2x128xf32>
    %83 = vector.extract_strided_slice %16 {offsets = [32, 0], sizes = [2, 16], strides = [1, 1]} : vector<50x16xf32> to vector<2x16xf32>
    %c256 = arith.constant 256 : index
    %c0_42 = arith.constant 0 : index
    %84 = vector.load %arg3[%c256, %c0_42] : memref<400x128xf32, #tpu.memory_space<vmem>>, vector<16x128xf32>
    %cst_43 = arith.constant dense<0.000000e+00> : vector<2x128xf32>
    %85 = tpu.matmul %83, %84, %cst_43 {dimension_numbers = #tpu.dot_dimension_numbers<[1], [0], [0], [1], [0, 0, 1, 1], [], []>} : vector<2x16xf32>, vector<16x128xf32>, vector<2x128xf32> -> vector<2x128xf32>
    %86 = arith.addf %82, %85 : vector<2x128xf32>
    %87 = vector.extract_strided_slice %16 {offsets = [34, 0], sizes = [2, 16], strides = [1, 1]} : vector<50x16xf32> to vector<2x16xf32>
    %c272 = arith.constant 272 : index
    %c0_44 = arith.constant 0 : index
    %88 = vector.load %arg3[%c272, %c0_44] : memref<400x128xf32, #tpu.memory_space<vmem>>, vector<16x128xf32>
    %cst_45 = arith.constant dense<0.000000e+00> : vector<2x128xf32>
    %89 = tpu.matmul %87, %88, %cst_45 {dimension_numbers = #tpu.dot_dimension_numbers<[1], [0], [0], [1], [0, 0, 1, 1], [], []>} : vector<2x16xf32>, vector<16x128xf32>, vector<2x128xf32> -> vector<2x128xf32>
    %90 = arith.addf %86, %89 : vector<2x128xf32>
    %91 = vector.extract_strided_slice %16 {offsets = [36, 0], sizes = [2, 16], strides = [1, 1]} : vector<50x16xf32> to vector<2x16xf32>
    %c288 = arith.constant 288 : index
    %c0_46 = arith.constant 0 : index
    %92 = vector.load %arg3[%c288, %c0_46] : memref<400x128xf32, #tpu.memory_space<vmem>>, vector<16x128xf32>
    %cst_47 = arith.constant dense<0.000000e+00> : vector<2x128xf32>
    %93 = tpu.matmul %91, %92, %cst_47 {dimension_numbers = #tpu.dot_dimension_numbers<[1], [0], [0], [1], [0, 0, 1, 1], [], []>} : vector<2x16xf32>, vector<16x128xf32>, vector<2x128xf32> -> vector<2x128xf32>
    %94 = arith.addf %90, %93 : vector<2x128xf32>
    %95 = vector.extract_strided_slice %16 {offsets = [38, 0], sizes = [2, 16], strides = [1, 1]} : vector<50x16xf32> to vector<2x16xf32>
    %c304 = arith.constant 304 : index
    %c0_48 = arith.constant 0 : index
    %96 = vector.load %arg3[%c304, %c0_48] : memref<400x128xf32, #tpu.memory_space<vmem>>, vector<16x128xf32>
    %cst_49 = arith.constant dense<0.000000e+00> : vector<2x128xf32>
    %97 = tpu.matmul %95, %96, %cst_49 {dimension_numbers = #tpu.dot_dimension_numbers<[1], [0], [0], [1], [0, 0, 1, 1], [], []>} : vector<2x16xf32>, vector<16x128xf32>, vector<2x128xf32> -> vector<2x128xf32>
    %98 = arith.addf %94, %97 : vector<2x128xf32>
    %99 = vector.extract_strided_slice %16 {offsets = [40, 0], sizes = [2, 16], strides = [1, 1]} : vector<50x16xf32> to vector<2x16xf32>
    %c320 = arith.constant 320 : index
    %c0_50 = arith.constant 0 : index
    %100 = vector.load %arg3[%c320, %c0_50] : memref<400x128xf32, #tpu.memory_space<vmem>>, vector<16x128xf32>
    %cst_51 = arith.constant dense<0.000000e+00> : vector<2x128xf32>
    %101 = tpu.matmul %99, %100, %cst_51 {dimension_numbers = #tpu.dot_dimension_numbers<[1], [0], [0], [1], [0, 0, 1, 1], [], []>} : vector<2x16xf32>, vector<16x128xf32>, vector<2x128xf32> -> vector<2x128xf32>
    %102 = arith.addf %98, %101 : vector<2x128xf32>
    %103 = vector.extract_strided_slice %16 {offsets = [42, 0], sizes = [2, 16], strides = [1, 1]} : vector<50x16xf32> to vector<2x16xf32>
    %c336 = arith.constant 336 : index
    %c0_52 = arith.constant 0 : index
    %104 = vector.load %arg3[%c336, %c0_52] : memref<400x128xf32, #tpu.memory_space<vmem>>, vector<16x128xf32>
    %cst_53 = arith.constant dense<0.000000e+00> : vector<2x128xf32>
    %105 = tpu.matmul %103, %104, %cst_53 {dimension_numbers = #tpu.dot_dimension_numbers<[1], [0], [0], [1], [0, 0, 1, 1], [], []>} : vector<2x16xf32>, vector<16x128xf32>, vector<2x128xf32> -> vector<2x128xf32>
    %106 = arith.addf %102, %105 : vector<2x128xf32>
    %107 = vector.extract_strided_slice %16 {offsets = [44, 0], sizes = [2, 16], strides = [1, 1]} : vector<50x16xf32> to vector<2x16xf32>
    %c352 = arith.constant 352 : index
    %c0_54 = arith.constant 0 : index
    %108 = vector.load %arg3[%c352, %c0_54] : memref<400x128xf32, #tpu.memory_space<vmem>>, vector<16x128xf32>
    %cst_55 = arith.constant dense<0.000000e+00> : vector<2x128xf32>
    %109 = tpu.matmul %107, %108, %cst_55 {dimension_numbers = #tpu.dot_dimension_numbers<[1], [0], [0], [1], [0, 0, 1, 1], [], []>} : vector<2x16xf32>, vector<16x128xf32>, vector<2x128xf32> -> vector<2x128xf32>
    %110 = arith.addf %106, %109 : vector<2x128xf32>
    %111 = vector.extract_strided_slice %16 {offsets = [46, 0], sizes = [2, 16], strides = [1, 1]} : vector<50x16xf32> to vector<2x16xf32>
    %c368 = arith.constant 368 : index
    %c0_56 = arith.constant 0 : index
    %112 = vector.load %arg3[%c368, %c0_56] : memref<400x128xf32, #tpu.memory_space<vmem>>, vector<16x128xf32>
    %cst_57 = arith.constant dense<0.000000e+00> : vector<2x128xf32>
    %113 = tpu.matmul %111, %112, %cst_57 {dimension_numbers = #tpu.dot_dimension_numbers<[1], [0], [0], [1], [0, 0, 1, 1], [], []>} : vector<2x16xf32>, vector<16x128xf32>, vector<2x128xf32> -> vector<2x128xf32>
    %114 = arith.addf %110, %113 : vector<2x128xf32>
    %115 = vector.extract_strided_slice %16 {offsets = [48, 0], sizes = [2, 16], strides = [1, 1]} : vector<50x16xf32> to vector<2x16xf32>
    %c384 = arith.constant 384 : index
    %c0_58 = arith.constant 0 : index
    %116 = vector.load %arg3[%c384, %c0_58] : memref<400x128xf32, #tpu.memory_space<vmem>>, vector<16x128xf32>
    %cst_59 = arith.constant dense<0.000000e+00> : vector<2x128xf32>
    %117 = tpu.matmul %115, %116, %cst_59 {dimension_numbers = #tpu.dot_dimension_numbers<[1], [0], [0], [1], [0, 0, 1, 1], [], []>} : vector<2x16xf32>, vector<16x128xf32>, vector<2x128xf32> -> vector<2x128xf32>
    %118 = arith.addf %114, %117 : vector<2x128xf32>
    %cst_60 = arith.constant 0.000000e+00 : f32
    %119 = vector.broadcast %cst_60 : f32 to vector<2x128xf32>
    %120 = arith.maximumf %118, %119 : vector<2x128xf32>
    %c0_61 = arith.constant 0 : index
    %c0_62 = arith.constant 0 : index
    %121 = vector.load %arg5[%c0_61, %c0_62] : memref<128x128xf32, #tpu.memory_space<vmem>>, vector<128x128xf32>
    %cst_63 = arith.constant dense<0.000000e+00> : vector<2x128xf32>
    %122 = tpu.matmul %120, %121, %cst_63 {dimension_numbers = #tpu.dot_dimension_numbers<[1], [0], [0], [1], [0, 0, 1, 1], [], []>} : vector<2x128xf32>, vector<128x128xf32>, vector<2x128xf32> -> vector<2x128xf32>
    %c0_64 = arith.constant 0 : index
    %c0_65 = arith.constant 0 : index
    %123 = vector.load %arg6[%c0_64, %c0_65] : memref<1x128xf32, #tpu.memory_space<vmem>>, vector<1x128xf32>
    %124 = vector.broadcast %123 : vector<1x128xf32> to vector<2x128xf32>
    %125 = arith.addf %122, %124 : vector<2x128xf32>
    %cst_66 = arith.constant 0.000000e+00 : f32
    %126 = vector.broadcast %cst_66 : f32 to vector<2x128xf32>
    %127 = arith.maximumf %125, %126 : vector<2x128xf32>
    %c0_67 = arith.constant 0 : index
    %c0_68 = arith.constant 0 : index
    %128 = vector.load %arg7[%c0_67, %c0_68] : memref<128x10xf32, #tpu.memory_space<vmem>>, vector<128x10xf32>
    %cst_69 = arith.constant dense<0.000000e+00> : vector<2x10xf32>
    %129 = tpu.matmul %127, %128, %cst_69 {dimension_numbers = #tpu.dot_dimension_numbers<[1], [0], [0], [1], [0, 0, 1, 1], [], []>} : vector<2x128xf32>, vector<128x10xf32>, vector<2x10xf32> -> vector<2x10xf32>
    %c0_70 = arith.constant 0 : index
    %c0_71 = arith.constant 0 : index
    %130 = vector.load %arg8[%c0_70, %c0_71] : memref<1x10xf32, #tpu.memory_space<vmem>>, vector<1x10xf32>
    %131 = vector.broadcast %130 : vector<1x10xf32> to vector<2x10xf32>
    %132 = arith.addf %129, %131 : vector<2x10xf32>
    %c0_72 = arith.constant 0 : index
    %c0_73 = arith.constant 0 : index
    %133 = vector.load %arg9[%c0_72, %c0_73] : memref<2x10xf32, #tpu.memory_space<vmem>>, vector<2x10xf32>
    tpu.vector_store %arg9[%c0_72, %c0_73], %132 {strides = array<i32>} : memref<2x10xf32, #tpu.memory_space<vmem>>, vector<2x10xf32>,
    return
  }
}

</mosaic_0001>

<bundles_post_ra>
// kernel: net_forward.2
= control target key start
LH: loop header
LB: loop body
LE: loop exit
PB: predicated region body
PF: predicated region fallthrough
CT: control target
= control target key end

     0   :  { %vm810_vm0 = vcmask 1040384   ;;  %vm221_vm1 = vcmask 203776   ;;  %vm3021_vm2 = vmmov 1   ;;  %vm2251_vm4 = vcmask 64512   ;;  %s4932_s1 = inlined_call_operand.vmem [shape: f32[25,8], index: 1, kind: input, shape index: {}]   ;;  %s4933_s0 = inlined_call_operand.vmem [shape: f32[1568,25], index: 0, kind: input, shape index: {}]   ;;  %s4934_s2 = inlined_call_operand.vmem [shape: f32[1,8], index: 2, kind: input, shape index: {}]   ;;  %s4935_s3 = inlined_call_operand.vmem [shape: f32[392,8], index: 3, kind: output, shape index: {}]  }
   0x1   :  { %v210_v0 = vld [vmem:[%s4932_s1] sm:$0xff]  ;;  %v211_v1 = vld [vmem:[%s4932_s1 + $0x8] sm:$0xff]  ;;  %v212_v2 = vld [vmem:[%s4932_s1 + $0x10] sm:$0xff] }
   0x2   :  { %v3005_v3 = vpack.c.bf16 %v211_v1, %v210_v0  ;;  %v213_v4 = vld [vmem:[%s4932_s1 + $0x18] sm:$0x1]  ;;  %v14_v5 = vld [vmem:[%s4933_s0] sm:$0xff]  ;;  %vm3010_vm3 = vmpackc.low %vm810_vm0, %vm3021_vm2 }
   0x3   :  { %v3009_v6 = vpack.c.bf16 %v213_v4, %v212_v2  ;;  %2711 = vmatprep.mubr.msk.f32.mxu0 %vm221_vm1, %v14_v5  ;;  %v112_v7 = vld [vmem:[%s4933_s0 + $0x310] sm:$0xff]  ;;  %v15_v8 = vld [vmem:[%s4933_s0 + $0x8] sm:$0xff]  ;;  %v113_v9 = vld [vmem:[%s4933_s0 + $0x318] sm:$0xff] }
   0x4   :  { %3006 = vmatprep.subr.bf16.mxu0 %v3005_v3  ;;  %3015 = vmatprep.subr.bf16.mxu1 %v3005_v3  ;;  %v16_v10 = vld [vmem:[%s4933_s0 + $0x10] sm:$0xff]  ;;  %v114_v11 = vld [vmem:[%s4933_s0 + $0x320] sm:$0xff]  ;;  %v17_v12 = vld [vmem:[%s4933_s0 + $0x18] sm:$0xff] }
   0x5   :  { %3008 = vmatpush3.bf16.msra.mxu0 %v3005_v3  ;;  %3017 = vmatpush3.bf16.msra.mxu1 %v3005_v3  ;;  %v115_v13 = vld [vmem:[%s4933_s0 + $0x328] sm:$0xff]  ;;  %v18_v14 = vld [vmem:[%s4933_s0 + $0x20] sm:$0xff]  ;;  %v116_v15 = vld [vmem:[%s4933_s0 + $0x330] sm:$0xff] }
   0x6   :  { %3011 = vmatprep.subr.msk.bf16.mxu0 %vm3010_vm3, %v3009_v6  ;;  %3016 = vmatprep.subr.msk.bf16.mxu1 %vm3010_vm3, %v3009_v6  ;;  %v19_v16 = vld [vmem:[%s4933_s0 + $0x28] sm:$0xff]  ;;  %v117_v17 = vld [vmem:[%s4933_s0 + $0x338] sm:$0xff]  ;;  %v20_v18 = vld [vmem:[%s4933_s0 + $0x30] sm:$0xff] }
   0x7   :  { %2858 = vmatprep.mubr.msk.f32.mxu1 %vm221_vm1, %v112_v7  ;;  %v118_v19 = vld [vmem:[%s4933_s0 + $0x340] sm:$0xff]  ;;  %v21_v20 = vld [vmem:[%s4933_s0 + $0x38] sm:$0xff]  ;;  %v119_v21 = vld [vmem:[%s4933_s0 + $0x348] sm:$0xff] }
   0x8   :  { %v22_v22 = vld [vmem:[%s4933_s0 + $0x40] sm:$0xff]  ;;  %v120_v23 = vld [vmem:[%s4933_s0 + $0x350] sm:$0xff]  ;;  %v23_v24 = vld [vmem:[%s4933_s0 + $0x48] sm:$0xff] }
   0x9   :  { %3014 = vmatpush3.bf16.msk.msra.mxu0 %vm3010_vm3, %v3009_v6  ;;  %3018 = vmatpush3.bf16.msk.msra.mxu1 %vm3010_vm3, %v3009_v6  ;;  %v121_v25 = vld [vmem:[%s4933_s0 + $0x358] sm:$0xff]  ;;  %v24_v26 = vld [vmem:[%s4933_s0 + $0x50] sm:$0xff]  ;;  %v122_v27 = vld [vmem:[%s4933_s0 + $0x360] sm:$0xff] }
   0xa   :  { %v25_v28 = vld [vmem:[%s4933_s0 + $0x58] sm:$0xff]  ;;  %v123_v29 = vld [vmem:[%s4933_s0 + $0x368] sm:$0xff]  ;;  %v26_v30 = vld [vmem:[%s4933_s0 + $0x60] sm:$0xff] }
   0xb   :  { %v124_v31 = vld [vmem:[%s4933_s0 + $0x370] sm:$0xff]  ;;  %v27_v32 = vld [vmem:[%s4933_s0 + $0x68] sm:$0xff]  ;;  %v125_v33 = vld [vmem:[%s4933_s0 + $0x378] sm:$0xff] }
   0xc   :  { %2712 = vmatmul.mubr.msk.f32.vlgmr.msra.gmra.mrb[0].mxu0 %vm221_vm1, %v15_v8  ;;  %2859 = vmatmul.mubr.msk.f32.vlgmr.msra.gmra.mrb[0].mxu1 %vm221_vm1, %v113_v9  ;;  %v28_v34 = vld [vmem:[%s4933_s0 + $0x70] sm:$0xff]  ;;  %v126_v35 = vld [vmem:[%s4933_s0 + $0x380] sm:$0xff]  ;;  %v29_v36 = vld [vmem:[%s4933_s0 + $0x78] sm:$0xff] }
   0xd   :  { %2714 = vmatprep.mubr.msk.f32.mxu0 %vm221_vm1, %v16_v10  ;;  %2861 = vmatprep.mubr.msk.f32.mxu1 %vm221_vm1, %v114_v11  ;;  %v127_v37 = vld [vmem:[%s4933_s0 + $0x388] sm:$0xff]  ;;  %v30_v38 = vld [vmem:[%s4933_s0 + $0x80] sm:$0xff]  ;;  %v128_v39 = vld [vmem:[%s4933_s0 + $0x390] sm:$0xff] }
   0xe   :  { %v31_v40 = vld [vmem:[%s4933_s0 + $0x88] sm:$0xff]  ;;  %v129_v41 = vld [vmem:[%s4933_s0 + $0x398] sm:$0xff]  ;;  %v32_v42 = vld [vmem:[%s4933_s0 + $0x90] sm:$0xff] }
   0xf   :  { %v130_v43 = vld [vmem:[%s4933_s0 + $0x3a0] sm:$0xff]  ;;  %v33_v44 = vld [vmem:[%s4933_s0 + $0x98] sm:$0xff]  ;;  %v131_v45 = vld [vmem:[%s4933_s0 + $0x3a8] sm:$0xff] }
  0x10   :  { %2715 = vmatmul.mubr.msk.f32.gmra.mrb[2].mxu0 %vm221_vm1, %v17_v12  ;;  %2862 = vmatmul.mubr.msk.f32.gmra.mrb[2].mxu1 %vm221_vm1, %v115_v13  ;;  %v34_v46 = vld [vmem:[%s4933_s0 + $0xa0] sm:$0xff]  ;;  %v132_v47 = vld [vmem:[%s4933_s0 + $0x3b0] sm:$0xff]  ;;  %v35_v48 = vld [vmem:[%s4933_s0 + $0xa8] sm:$0xff] }
  0x11   :  { %2717 = vmatprep.mubr.msk.f32.mxu0 %vm221_vm1, %v18_v14  ;;  %2864 = vmatprep.mubr.msk.f32.mxu1 %vm221_vm1, %v116_v15  ;;  %v133_v49 = vld [vmem:[%s4933_s0 + $0x3b8] sm:$0xff]  ;;  %v36_v50 = vld [vmem:[%s4933_s0 + $0xb0] sm:$0xff]  ;;  %v134_v51 = vld [vmem:[%s4933_s0 + $0x3c0] sm:$0xff] }
  0x12   :  { %v37_v52 = vld [vmem:[%s4933_s0 + $0xb8] sm:$0xff]  ;;  %v135_v53 = vld [vmem:[%s4933_s0 + $0x3c8] sm:$0xff]  ;;  %v38_v54 = vld [vmem:[%s4933_s0 + $0xc0] sm:$0xff] }
  0x13   :  { %v136_v55 = vld [vmem:[%s4933_s0 + $0x3d0] sm:$0xff]  ;;  %v39_v56 = vld [vmem:[%s4933_s0 + $0xc8] sm:$0xff]  ;;  %v137_v57 = vld [vmem:[%s4933_s0 + $0x3d8] sm:$0xff] }
  0x14   :  { %2718 = vmatmul.mubr.msk.f32.gmra.mrb[4].mxu0 %vm221_vm1, %v19_v16  ;;  %2865 = vmatmul.mubr.msk.f32.gmra.mrb[4].mxu1 %vm221_vm1, %v117_v17  ;;  %v40_v58 = vld [vmem:[%s4933_s0 + $0xd0] sm:$0xff]  ;;  %v138_v59 = vld [vmem:[%s4933_s0 + $0x3e0] sm:$0xff]  ;;  %v41_v60 = vld [vmem:[%s4933_s0 + $0xd8] sm:$0xff] }
  0x15   :  { %2720 = vmatprep.mubr.msk.f32.mxu0 %vm221_vm1, %v20_v18  ;;  %2867 = vmatprep.mubr.msk.f32.mxu1 %vm221_vm1, %v118_v19  ;;  %v139_v61 = vld [vmem:[%s4933_s0 + $0x3e8] sm:$0xff]  ;;  %v42_v62 = vld [vmem:[%s4933_s0 + $0xe0] sm:$0xff]  ;;  %v140_v63 = vld [vmem:[%s4933_s0 + $0x3f0] sm:$0xff] }
  0x16   :  { %v43_v0 = vld [vmem:[%s4933_s0 + $0xe8] sm:$0xff]  ;;  %v141_v1 = vld [vmem:[%s4933_s0 + $0x3f8] sm:$0xff]  ;;  %v44_v2 = vld [vmem:[%s4933_s0 + $0xf0] sm:$0xff] }
  0x17   :  { %v142_v3 = vld [vmem:[%s4933_s0 + $0x400] sm:$0xff]  ;;  %v45_v4 = vld [vmem:[%s4933_s0 + $0xf8] sm:$0xff]  ;;  %v143_v5 = vld [vmem:[%s4933_s0 + $0x408] sm:$0xff] }
  0x18   :  { %2721 = vmatmul.mubr.msk.f32.gmra.mrb[6].mxu0 %vm221_vm1, %v21_v20  ;;  %2868 = vmatmul.mubr.msk.f32.gmra.mrb[6].mxu1 %vm221_vm1, %v119_v21  ;;  %v46_v6 = vld [vmem:[%s4933_s0 + $0x100] sm:$0xff]  ;;  %v144_v7 = vld [vmem:[%s4933_s0 + $0x410] sm:$0xff]  ;;  %v47_v8 = vld [vmem:[%s4933_s0 + $0x108] sm:$0xff] }
  0x19   :  { %2723 = vmatprep.mubr.msk.f32.mxu0 %vm221_vm1, %v22_v22  ;;  %2870 = vmatprep.mubr.msk.f32.mxu1 %vm221_vm1, %v120_v23  ;;  %v145_v9 = vld [vmem:[%s4933_s0 + $0x418] sm:$0xff]  ;;  %v48_v10 = vld [vmem:[%s4933_s0 + $0x110] sm:$0xff]  ;;  %v146_v11 = vld [vmem:[%s4933_s0 + $0x420] sm:$0xff] }
  0x1a   :  { %v49_v12 = vld [vmem:[%s4933_s0 + $0x118] sm:$0xff]  ;;  %v147_v13 = vld [vmem:[%s4933_s0 + $0x428] sm:$0xff]  ;;  %v50_v14 = vld [vmem:[%s4933_s0 + $0x120] sm:$0xff] }
  0x1b   :  { %v148_v15 = vld [vmem:[%s4933_s0 + $0x430] sm:$0xff]  ;;  %v51_v16 = vld [vmem:[%s4933_s0 + $0x128] sm:$0xff]  ;;  %v149_v17 = vld [vmem:[%s4933_s0 + $0x438] sm:$0xff] }
  0x1c   :  { %2724 = vmatmul.mubr.msk.f32.gmra.mrb[8].mxu0 %vm221_vm1, %v23_v24  ;;  %2871 = vmatmul.mubr.msk.f32.gmra.mrb[8].mxu1 %vm221_vm1, %v121_v25  ;;  %v52_v18 = vld [vmem:[%s4933_s0 + $0x130] sm:$0xff]  ;;  %v150_v19 = vld [vmem:[%s4933_s0 + $0x440] sm:$0xff]  ;;  %v53_v20 = vld [vmem:[%s4933_s0 + $0x138] sm:$0xff] }
  0x1d   :  { %2726 = vmatprep.mubr.msk.f32.mxu0 %vm221_vm1, %v24_v26  ;;  %2873 = vmatprep.mubr.msk.f32.mxu1 %vm221_vm1, %v122_v27  ;;  %v151_v21 = vld [vmem:[%s4933_s0 + $0x448] sm:$0xff]  ;;  %v54_v22 = vld [vmem:[%s4933_s0 + $0x140] sm:$0xff]  ;;  %v152_v23 = vld [vmem:[%s4933_s0 + $0x450] sm:$0xff] }
  0x1e   :  { %v55_v24 = vld [vmem:[%s4933_s0 + $0x148] sm:$0xff]  ;;  %v153_v25 = vld [vmem:[%s4933_s0 + $0x458] sm:$0xff]  ;;  %v56_v26 = vld [vmem:[%s4933_s0 + $0x150] sm:$0xff] }
  0x1f   :  { %v154_v27 = vld [vmem:[%s4933_s0 + $0x460] sm:$0xff] }
  0x20   :  { %2727 = vmatmul.mubr.msk.f32.gmra.mrb[10].mxu0 %vm221_vm1, %v25_v28  ;;  %2874 = vmatmul.mubr.msk.f32.gmra.mrb[10].mxu1 %vm221_vm1, %v123_v29  ;;  %v57_v28 = vld [vmem:[%s4933_s0 + $0x158] sm:$0xff]  ;;  %v155_v29 = vld [vmem:[%s4933_s0 + $0x468] sm:$0xff] }
  0x21   :  { %2729 = vmatprep.mubr.msk.f32.mxu0 %vm221_vm1, %v26_v30  ;;  %2876 = vmatprep.mubr.msk.f32.mxu1 %vm221_vm1, %v124_v31  ;;  %v58_v30 = vld [vmem:[%s4933_s0 + $0x160] sm:$0xff]  ;;  %v156_v31 = vld [vmem:[%s4933_s0 + $0x470] sm:$0xff] }
  0x24   :  { %2730 = vmatmul.mubr.msk.f32.gmra.mrb[12].mxu0 %vm221_vm1, %v27_v32  ;;  %2877 = vmatmul.mubr.msk.f32.gmra.mrb[12].mxu1 %vm221_vm1, %v125_v33  ;;  %v59_v32 = vld [vmem:[%s4933_s0 + $0x168] sm:$0xff]  ;;  %v157_v33 = vld [vmem:[%s4933_s0 + $0x478] sm:$0xff] }
  0x25   :  { %2732 = vmatprep.mubr.msk.f32.mxu0 %vm221_vm1, %v28_v34  ;;  %2879 = vmatprep.mubr.msk.f32.mxu1 %vm221_vm1, %v126_v35  ;;  %v60_v34 = vld [vmem:[%s4933_s0 + $0x170] sm:$0xff]  ;;  %v158_v35 = vld [vmem:[%s4933_s0 + $0x480] sm:$0xff] }
  0x28   :  { %2733 = vmatmul.mubr.msk.f32.gmra.mrb[14].mxu0 %vm221_vm1, %v29_v36  ;;  %2880 = vmatmul.mubr.msk.f32.gmra.mrb[14].mxu1 %vm221_vm1, %v127_v37  ;;  %v61_v36 = vld [vmem:[%s4933_s0 + $0x178] sm:$0xff]  ;;  %v159_v37 = vld [vmem:[%s4933_s0 + $0x488] sm:$0xff] }
  0x29   :  { %2735 = vmatprep.mubr.msk.f32.mxu0 %vm221_vm1, %v30_v38  ;;  %2882 = vmatprep.mubr.msk.f32.mxu1 %vm221_vm1, %v128_v39  ;;  %v62_v38 = vld [vmem:[%s4933_s0 + $0x180] sm:$0xff]  ;;  %v160_v39 = vld [vmem:[%s4933_s0 + $0x490] sm:$0xff] }
  0x2c   :  { %2736 = vmatmul.mubr.msk.f32.gmra.mrb[16].mxu0 %vm221_vm1, %v31_v40  ;;  %2883 = vmatmul.mubr.msk.f32.gmra.mrb[16].mxu1 %vm221_vm1, %v129_v41  ;;  %v63_v40 = vld [vmem:[%s4933_s0 + $0x188] sm:$0xff]  ;;  %v161_v41 = vld [vmem:[%s4933_s0 + $0x498] sm:$0xff] }
  0x2d   :  { %2738 = vmatprep.mubr.msk.f32.mxu0 %vm221_vm1, %v32_v42  ;;  %2885 = vmatprep.mubr.msk.f32.mxu1 %vm221_vm1, %v130_v43  ;;  %v64_v42 = vld [vmem:[%s4933_s0 + $0x190] sm:$0xff]  ;;  %v162_v43 = vld [vmem:[%s4933_s0 + $0x4a0] sm:$0xff] }
  0x30   :  { %2739 = vmatmul.mubr.msk.f32.gmra.mrb[18].mxu0 %vm221_vm1, %v33_v44  ;;  %2886 = vmatmul.mubr.msk.f32.gmra.mrb[18].mxu1 %vm221_vm1, %v131_v45  ;;  %v65_v44 = vld [vmem:[%s4933_s0 + $0x198] sm:$0xff]  ;;  %v163_v45 = vld [vmem:[%s4933_s0 + $0x4a8] sm:$0xff] }
  0x31   :  { %2741 = vmatprep.mubr.msk.f32.mxu0 %vm221_vm1, %v34_v46  ;;  %2888 = vmatprep.mubr.msk.f32.mxu1 %vm221_vm1, %v132_v47  ;;  %v66_v46 = vld [vmem:[%s4933_s0 + $0x1a0] sm:$0xff]  ;;  %v164_v47 = vld [vmem:[%s4933_s0 + $0x4b0] sm:$0xff] }
  0x34   :  { %2742 = vmatmul.mubr.msk.f32.gmra.mrb[20].mxu0 %vm221_vm1, %v35_v48  ;;  %2889 = vmatmul.mubr.msk.f32.gmra.mrb[20].mxu1 %vm221_vm1, %v133_v49  ;;  %v67_v48 = vld [vmem:[%s4933_s0 + $0x1a8] sm:$0xff]  ;;  %v165_v49 = vld [vmem:[%s4933_s0 + $0x4b8] sm:$0xff] }
  0x35   :  { %2744 = vmatprep.mubr.msk.f32.mxu0 %vm221_vm1, %v36_v50  ;;  %2891 = vmatprep.mubr.msk.f32.mxu1 %vm221_vm1, %v134_v51  ;;  %v68_v50 = vld [vmem:[%s4933_s0 + $0x1b0] sm:$0xff]  ;;  %v166_v51 = vld [vmem:[%s4933_s0 + $0x4c0] sm:$0xff] }
  0x38   :  { %2745 = vmatmul.mubr.msk.f32.gmra.mrb[22].mxu0 %vm221_vm1, %v37_v52  ;;  %2892 = vmatmul.mubr.msk.f32.gmra.mrb[22].mxu1 %vm221_vm1, %v135_v53  ;;  %v69_v52 = vld [vmem:[%s4933_s0 + $0x1b8] sm:$0xff]  ;;  %v167_v53 = vld [vmem:[%s4933_s0 + $0x4c8] sm:$0xff] }
  0x39   :  { %2747 = vmatprep.mubr.msk.f32.mxu0 %vm221_vm1, %v38_v54  ;;  %2894 = vmatprep.mubr.msk.f32.mxu1 %vm221_vm1, %v136_v55  ;;  %v70_v54 = vld [vmem:[%s4933_s0 + $0x1c0] sm:$0xff]  ;;  %v168_v55 = vld [vmem:[%s4933_s0 + $0x4d0] sm:$0xff] }
  0x3c   :  { %2748 = vmatmul.mubr.msk.f32.gmra.mrb[24].mxu0 %vm221_vm1, %v39_v56  ;;  %2895 = vmatmul.mubr.msk.f32.gmra.mrb[24].mxu1 %vm221_vm1, %v137_v57  ;;  %v71_v56 = vld [vmem:[%s4933_s0 + $0x1c8] sm:$0xff]  ;;  %v169_v57 = vld [vmem:[%s4933_s0 + $0x4d8] sm:$0xff] }
  0x3d   :  { %2750 = vmatprep.mubr.msk.f32.mxu0 %vm221_vm1, %v40_v58  ;;  %2897 = vmatprep.mubr.msk.f32.mxu1 %vm221_vm1, %v138_v59  ;;  %v72_v58 = vld [vmem:[%s4933_s0 + $0x1d0] sm:$0xff]  ;;  %v170_v59 = vld [vmem:[%s4933_s0 + $0x4e0] sm:$0xff] }
  0x40   :  { %2751 = vmatmul.mubr.msk.f32.gmra.mrb[26].mxu0 %vm221_vm1, %v41_v60  ;;  %2898 = vmatmul.mubr.msk.f32.gmra.mrb[26].mxu1 %vm221_vm1, %v139_v61  ;;  %v73_v60 = vld [vmem:[%s4933_s0 + $0x1d8] sm:$0xff]  ;;  %v171_v61 = vld [vmem:[%s4933_s0 + $0x4e8] sm:$0xff] }
  0x41   :  { %2753 = vmatprep.mubr.msk.f32.mxu0 %vm221_vm1, %v42_v62  ;;  %2900 = vmatprep.mubr.msk.f32.mxu1 %vm221_vm1, %v140_v63  ;;  %v74_v62 = vld [vmem:[%s4933_s0 + $0x1e0] sm:$0xff]  ;;  %v172_v63 = vld [vmem:[%s4933_s0 + $0x4f0] sm:$0xff] }
  0x44   :  { %2754 = vmatmul.mubr.msk.f32.gmra.mrb[28].mxu0 %vm221_vm1, %v43_v0  ;;  %2901 = vmatmul.mubr.msk.f32.gmra.mrb[28].mxu1 %vm221_vm1, %v141_v1  ;;  %v75_v0 = vld [vmem:[%s4933_s0 + $0x1e8] sm:$0xff]  ;;  %v173_v1 = vld [vmem:[%s4933_s0 + $0x4f8] sm:$0xff] }
  0x45   :  { %2756 = vmatprep.mubr.msk.f32.mxu0 %vm221_vm1, %v44_v2  ;;  %2903 = vmatprep.mubr.msk.f32.mxu1 %vm221_vm1, %v142_v3  ;;  %v76_v2 = vld [vmem:[%s4933_s0 + $0x1f0] sm:$0xff]  ;;  %v174_v3 = vld [vmem:[%s4933_s0 + $0x500] sm:$0xff] }
  0x48   :  { %2757 = vmatmul.mubr.msk.f32.gmra.mrb[30].mxu0 %vm221_vm1, %v45_v4  ;;  %2904 = vmatmul.mubr.msk.f32.gmra.mrb[30].mxu1 %vm221_vm1, %v143_v5  ;;  %v77_v4 = vld [vmem:[%s4933_s0 + $0x1f8] sm:$0xff]  ;;  %v175_v5 = vld [vmem:[%s4933_s0 + $0x508] sm:$0xff] }
  0x49   :  { %2759 = vmatprep.mubr.msk.f32.mxu0 %vm221_vm1, %v46_v6  ;;  %2906 = vmatprep.mubr.msk.f32.mxu1 %vm221_vm1, %v144_v7  ;;  %v78_v6 = vld [vmem:[%s4933_s0 + $0x200] sm:$0xff]  ;;  %v176_v7 = vld [vmem:[%s4933_s0 + $0x510] sm:$0xff] }
  0x4c   :  { %2760 = vmatmul.mubr.msk.f32.gmra.mrb[32].mxu0 %vm221_vm1, %v47_v8  ;;  %2907 = vmatmul.mubr.msk.f32.gmra.mrb[32].mxu1 %vm221_vm1, %v145_v9  ;;  %v79_v8 = vld [vmem:[%s4933_s0 + $0x208] sm:$0xff]  ;;  %v177_v9 = vld [vmem:[%s4933_s0 + $0x518] sm:$0xff] }
  0x4d   :  { %2762 = vmatprep.mubr.msk.f32.mxu0 %vm221_vm1, %v48_v10  ;;  %2909 = vmatprep.mubr.msk.f32.mxu1 %vm221_vm1, %v146_v11  ;;  %v80_v10 = vld [vmem:[%s4933_s0 + $0x210] sm:$0xff]  ;;  %v178_v11 = vld [vmem:[%s4933_s0 + $0x520] sm:$0xff] }
  0x50   :  { %2763 = vmatmul.mubr.msk.f32.gmra.mrb[34].mxu0 %vm221_vm1, %v49_v12  ;;  %2910 = vmatmul.mubr.msk.f32.gmra.mrb[34].mxu1 %vm221_vm1, %v147_v13  ;;  %v81_v12 = vld [vmem:[%s4933_s0 + $0x218] sm:$0xff]  ;;  %v179_v13 = vld [vmem:[%s4933_s0 + $0x528] sm:$0xff] }
  0x51   :  { %2765 = vmatprep.mubr.msk.f32.mxu0 %vm221_vm1, %v50_v14  ;;  %2912 = vmatprep.mubr.msk.f32.mxu1 %vm221_vm1, %v148_v15  ;;  %v82_v14 = vld [vmem:[%s4933_s0 + $0x220] sm:$0xff]  ;;  %v180_v15 = vld [vmem:[%s4933_s0 + $0x530] sm:$0xff] }
  0x54   :  { %2766 = vmatmul.mubr.msk.f32.gmra.mrb[36].mxu0 %vm221_vm1, %v51_v16  ;;  %2913 = vmatmul.mubr.msk.f32.gmra.mrb[36].mxu1 %vm221_vm1, %v149_v17  ;;  %v83_v16 = vld [vmem:[%s4933_s0 + $0x228] sm:$0xff]  ;;  %v181_v17 = vld [vmem:[%s4933_s0 + $0x538] sm:$0xff] }
  0x55   :  { %2768 = vmatprep.mubr.msk.f32.mxu0 %vm221_vm1, %v52_v18  ;;  %2915 = vmatprep.mubr.msk.f32.mxu1 %vm221_vm1, %v150_v19  ;;  %v84_v18 = vld [vmem:[%s4933_s0 + $0x230] sm:$0xff]  ;;  %v182_v19 = vld [vmem:[%s4933_s0 + $0x540] sm:$0xff] }
  0x58   :  { %2769 = vmatmul.mubr.msk.f32.gmra.mrb[38].mxu0 %vm221_vm1, %v53_v20  ;;  %2916 = vmatmul.mubr.msk.f32.gmra.mrb[38].mxu1 %vm221_vm1, %v151_v21  ;;  %v85_v20 = vld [vmem:[%s4933_s0 + $0x238] sm:$0xff]  ;;  %v183_v21 = vld [vmem:[%s4933_s0 + $0x548] sm:$0xff] }
  0x59   :  { %2771 = vmatprep.mubr.msk.f32.mxu0 %vm221_vm1, %v54_v22  ;;  %2918 = vmatprep.mubr.msk.f32.mxu1 %vm221_vm1, %v152_v23  ;;  %v86_v22 = vld [vmem:[%s4933_s0 + $0x240] sm:$0xff]  ;;  %v184_v23 = vld [vmem:[%s4933_s0 + $0x550] sm:$0xff] }
  0x5c   :  { %2772 = vmatmul.mubr.msk.f32.gmra.mrb[40].mxu0 %vm221_vm1, %v55_v24  ;;  %2919 = vmatmul.mubr.msk.f32.gmra.mrb[40].mxu1 %vm221_vm1, %v153_v25  ;;  %v87_v24 = vld [vmem:[%s4933_s0 + $0x248] sm:$0xff]  ;;  %v185_v25 = vld [vmem:[%s4933_s0 + $0x558] sm:$0xff] }
  0x5d   :  { %2774 = vmatprep.mubr.msk.f32.mxu0 %vm221_vm1, %v56_v26  ;;  %2921 = vmatprep.mubr.msk.f32.mxu1 %vm221_vm1, %v154_v27  ;;  %v88_v26 = vld [vmem:[%s4933_s0 + $0x250] sm:$0xff]  ;;  %v186_v27 = vld [vmem:[%s4933_s0 + $0x560] sm:$0xff] }
  0x60   :  { %2775 = vmatmul.mubr.msk.f32.gmra.mrb[42].mxu0 %vm221_vm1, %v57_v28  ;;  %2922 = vmatmul.mubr.msk.f32.gmra.mrb[42].mxu1 %vm221_vm1, %v155_v29  ;;  %v89_v28 = vld [vmem:[%s4933_s0 + $0x258] sm:$0xff]  ;;  %v187_v29 = vld [vmem:[%s4933_s0 + $0x568] sm:$0xff] }
  0x61   :  { %2777 = vmatprep.mubr.msk.f32.mxu0 %vm221_vm1, %v58_v30  ;;  %2924 = vmatprep.mubr.msk.f32.mxu1 %vm221_vm1, %v156_v31  ;;  %v90_v30 = vld [vmem:[%s4933_s0 + $0x260] sm:$0xff]  ;;  %v188_v31 = vld [vmem:[%s4933_s0 + $0x570] sm:$0xff] }
  0x64   :  { %2778 = vmatmul.mubr.msk.f32.gmra.mrb[44].mxu0 %vm221_vm1, %v59_v32  ;;  %2925 = vmatmul.mubr.msk.f32.gmra.mrb[44].mxu1 %vm221_vm1, %v157_v33  ;;  %v91_v32 = vld [vmem:[%s4933_s0 + $0x268] sm:$0xff]  ;;  %v189_v33 = vld [vmem:[%s4933_s0 + $0x578] sm:$0xff] }
  0x65   :  { %2780 = vmatprep.mubr.msk.f32.mxu0 %vm221_vm1, %v60_v34  ;;  %2927 = vmatprep.mubr.msk.f32.mxu1 %vm221_vm1, %v158_v35  ;;  %v92_v34 = vld [vmem:[%s4933_s0 + $0x270] sm:$0xff]  ;;  %v190_v35 = vld [vmem:[%s4933_s0 + $0x580] sm:$0xff] }
  0x68   :  { %2781 = vmatmul.mubr.msk.f32.gmra.mrb[46].mxu0 %vm221_vm1, %v61_v36  ;;  %2928 = vmatmul.mubr.msk.f32.gmra.mrb[46].mxu1 %vm221_vm1, %v159_v37  ;;  %v93_v36 = vld [vmem:[%s4933_s0 + $0x278] sm:$0xff]  ;;  %v191_v37 = vld [vmem:[%s4933_s0 + $0x588] sm:$0xff] }
  0x69   :  { %2783 = vmatprep.mubr.msk.f32.mxu0 %vm221_vm1, %v62_v38  ;;  %2930 = vmatprep.mubr.msk.f32.mxu1 %vm221_vm1, %v160_v39  ;;  %v94_v38 = vld [vmem:[%s4933_s0 + $0x280] sm:$0xff]  ;;  %v192_v39 = vld [vmem:[%s4933_s0 + $0x590] sm:$0xff] }
  0x6c   :  { %2784 = vmatmul.mubr.msk.f32.gmra.mrb[48].mxu0 %vm221_vm1, %v63_v40  ;;  %2931 = vmatmul.mubr.msk.f32.gmra.mrb[48].mxu1 %vm221_vm1, %v161_v41  ;;  %v95_v40 = vld [vmem:[%s4933_s0 + $0x288] sm:$0xff]  ;;  %v193_v41 = vld [vmem:[%s4933_s0 + $0x598] sm:$0xff] }
  0x6d   :  { %2786 = vmatprep.mubr.msk.f32.mxu0 %vm221_vm1, %v64_v42  ;;  %2933 = vmatprep.mubr.msk.f32.mxu1 %vm221_vm1, %v162_v43  ;;  %v96_v42 = vld [vmem:[%s4933_s0 + $0x290] sm:$0xff]  ;;  %v194_v43 = vld [vmem:[%s4933_s0 + $0x5a0] sm:$0xff] }
  0x70   :  { %2787 = vmatmul.mubr.msk.f32.gmra.mrb[50].mxu0 %vm221_vm1, %v65_v44  ;;  %2934 = vmatmul.mubr.msk.f32.gmra.mrb[50].mxu1 %vm221_vm1, %v163_v45  ;;  %v97_v44 = vld [vmem:[%s4933_s0 + $0x298] sm:$0xff]  ;;  %v195_v45 = vld [vmem:[%s4933_s0 + $0x5a8] sm:$0xff] }
  0x71   :  { %2789 = vmatprep.mubr.msk.f32.mxu0 %vm221_vm1, %v66_v46  ;;  %2936 = vmatprep.mubr.msk.f32.mxu1 %vm221_vm1, %v164_v47  ;;  %v98_v46 = vld [vmem:[%s4933_s0 + $0x2a0] sm:$0xff]  ;;  %v196_v47 = vld [vmem:[%s4933_s0 + $0x5b0] sm:$0xff] }
  0x74   :  { %2790 = vmatmul.mubr.msk.f32.gmra.mrb[52].mxu0 %vm221_vm1, %v67_v48  ;;  %2937 = vmatmul.mubr.msk.f32.gmra.mrb[52].mxu1 %vm221_vm1, %v165_v49  ;;  %v99_v48 = vld [vmem:[%s4933_s0 + $0x2a8] sm:$0xff]  ;;  %v197_v49 = vld [vmem:[%s4933_s0 + $0x5b8] sm:$0xff] }
  0x75   :  { %2792 = vmatprep.mubr.msk.f32.mxu0 %vm221_vm1, %v68_v50  ;;  %2939 = vmatprep.mubr.msk.f32.mxu1 %vm221_vm1, %v166_v51  ;;  %v100_v50 = vld [vmem:[%s4933_s0 + $0x2b0] sm:$0xff]  ;;  %v198_v51 = vld [vmem:[%s4933_s0 + $0x5c0] sm:$0xff] }
  0x78   :  { %2793 = vmatmul.mubr.msk.f32.gmra.mrb[54].mxu0 %vm221_vm1, %v69_v52  ;;  %2940 = vmatmul.mubr.msk.f32.gmra.mrb[54].mxu1 %vm221_vm1, %v167_v53  ;;  %v101_v52 = vld [vmem:[%s4933_s0 + $0x2b8] sm:$0xff]  ;;  %v199_v53 = vld [vmem:[%s4933_s0 + $0x5c8] sm:$0xff] }
  0x79   :  { %2795 = vmatprep.mubr.msk.f32.mxu0 %vm221_vm1, %v70_v54  ;;  %2942 = vmatprep.mubr.msk.f32.mxu1 %vm221_vm1, %v168_v55  ;;  %v102_v54 = vld [vmem:[%s4933_s0 + $0x2c0] sm:$0xff]  ;;  %v200_v55 = vld [vmem:[%s4933_s0 + $0x5d0] sm:$0xff] }
  0x7c   :  { %2796 = vmatmul.mubr.msk.f32.gmra.mrb[56].mxu0 %vm221_vm1, %v71_v56  ;;  %2943 = vmatmul.mubr.msk.f32.gmra.mrb[56].mxu1 %vm221_vm1, %v169_v57  ;;  %v103_v56 = vld [vmem:[%s4933_s0 + $0x2c8] sm:$0xff]  ;;  %v201_v57 = vld [vmem:[%s4933_s0 + $0x5d8] sm:$0xff] }
  0x7d   :  { %2798 = vmatprep.mubr.msk.f32.mxu0 %vm221_vm1, %v72_v58  ;;  %2945 = vmatprep.mubr.msk.f32.mxu1 %vm221_vm1, %v170_v59  ;;  %v104_v58 = vld [vmem:[%s4933_s0 + $0x2d0] sm:$0xff]  ;;  %v202_v59 = vld [vmem:[%s4933_s0 + $0x5e0] sm:$0xff] }
  0x80   :  { %2799 = vmatmul.mubr.msk.f32.gmra.mrb[58].mxu0 %vm221_vm1, %v73_v60  ;;  %2946 = vmatmul.mubr.msk.f32.gmra.mrb[58].mxu1 %vm221_vm1, %v171_v61  ;;  %v105_v60 = vld [vmem:[%s4933_s0 + $0x2d8] sm:$0xff]  ;;  %v203_v61 = vld [vmem:[%s4933_s0 + $0x5e8] sm:$0xff] }
  0x81   :  { %2801 = vmatprep.mubr.msk.f32.mxu0 %vm221_vm1, %v74_v62  ;;  %2948 = vmatprep.mubr.msk.f32.mxu1 %vm221_vm1, %v172_v63  ;;  %v106_v62 = vld [vmem:[%s4933_s0 + $0x2e0] sm:$0xff]  ;;  %v204_v63 = vld [vmem:[%s4933_s0 + $0x5f0] sm:$0xff] }
  0x84   :  { %2802 = vmatmul.mubr.msk.f32.gmra.mrb[60].mxu0 %vm221_vm1, %v75_v0  ;;  %2949 = vmatmul.mubr.msk.f32.gmra.mrb[60].mxu1 %vm221_vm1, %v173_v1  ;;  %v107_v0 = vld [vmem:[%s4933_s0 + $0x2e8] sm:$0xff]  ;;  %v205_v1 = vld [vmem:[%s4933_s0 + $0x5f8] sm:$0xff] }
  0x85   :  { %2804 = vmatprep.mubr.msk.f32.mxu0 %vm221_vm1, %v76_v2  ;;  %2951 = vmatprep.mubr.msk.f32.mxu1 %vm221_vm1, %v174_v3  ;;  %v108_v2 = vld [vmem:[%s4933_s0 + $0x2f0] sm:$0xff]  ;;  %v206_v3 = vld [vmem:[%s4933_s0 + $0x600] sm:$0xff] }
  0x88   :  { %2805 = vmatmul.mubr.msk.f32.gmra.mrb[62].mxu0 %vm221_vm1, %v77_v4  ;;  %2952 = vmatmul.mubr.msk.f32.gmra.mrb[62].mxu1 %vm221_vm1, %v175_v5  ;;  %v109_v4 = vld [vmem:[%s4933_s0 + $0x2f8] sm:$0xff]  ;;  %v207_v5 = vld [vmem:[%s4933_s0 + $0x608] sm:$0xff] }
  0x89   :  { %2807 = vmatprep.mubr.msk.f32.mxu0 %vm221_vm1, %v78_v6  ;;  %2954 = vmatprep.mubr.msk.f32.mxu1 %vm221_vm1, %v176_v7  ;;  %v110_v6 = vld [vmem:[%s4933_s0 + $0x300] sm:$0xff]  ;;  %v208_v7 = vld [vmem:[%s4933_s0 + $0x610] sm:$0xff] }
  0x8c   :  { %2808 = vmatmul.mubr.msk.f32.gmra.mrb[64].mxu0 %vm221_vm1, %v79_v8  ;;  %2955 = vmatmul.mubr.msk.f32.gmra.mrb[64].mxu1 %vm221_vm1, %v177_v9  ;;  %v111_v8 = vld [vmem:[%s4933_s0 + $0x308] sm:$0xff]  ;;  %v209_v9 = vld [vmem:[%s4933_s0 + $0x618] sm:$0xff] }
  0x8d   :  { %2810 = vmatprep.mubr.msk.f32.mxu0 %vm221_vm1, %v80_v10  ;;  %2957 = vmatprep.mubr.msk.f32.mxu1 %vm221_vm1, %v178_v11 }
  0x90   :  { %2811 = vmatmul.mubr.msk.f32.gmra.mrb[66].mxu0 %vm221_vm1, %v81_v12  ;;  %2958 = vmatmul.mubr.msk.f32.gmra.mrb[66].mxu1 %vm221_vm1, %v179_v13 }
  0x91   :  { %2813 = vmatprep.mubr.msk.f32.mxu0 %vm221_vm1, %v82_v14  ;;  %2960 = vmatprep.mubr.msk.f32.mxu1 %vm221_vm1, %v180_v15 }
  0x94   :  { %2814 = vmatmul.mubr.msk.f32.gmra.mrb[68].mxu0 %vm221_vm1, %v83_v16  ;;  %2961 = vmatmul.mubr.msk.f32.gmra.mrb[68].mxu1 %vm221_vm1, %v181_v17 }
  0x95   :  { %2816 = vmatprep.mubr.msk.f32.mxu0 %vm221_vm1, %v84_v18  ;;  %2963 = vmatprep.mubr.msk.f32.mxu1 %vm221_vm1, %v182_v19 }
  0x98   :  { %2817 = vmatmul.mubr.msk.f32.gmra.mrb[70].mxu0 %vm221_vm1, %v85_v20  ;;  %2964 = vmatmul.mubr.msk.f32.gmra.mrb[70].mxu1 %vm221_vm1, %v183_v21 }
  0x99   :  { %2819 = vmatprep.mubr.msk.f32.mxu0 %vm221_vm1, %v86_v22  ;;  %2966 = vmatprep.mubr.msk.f32.mxu1 %vm221_vm1, %v184_v23 }
  0x9c   :  { %2820 = vmatmul.mubr.msk.f32.gmra.mrb[72].mxu0 %vm221_vm1, %v87_v24  ;;  %2967 = vmatmul.mubr.msk.f32.gmra.mrb[72].mxu1 %vm221_vm1, %v185_v25 }
  0x9d   :  { %2822 = vmatprep.mubr.msk.f32.mxu0 %vm221_vm1, %v88_v26  ;;  %2969 = vmatprep.mubr.msk.f32.mxu1 %vm221_vm1, %v186_v27 }
  0xa0   :  { %2823 = vmatmul.mubr.msk.f32.gmra.mrb[74].mxu0 %vm221_vm1, %v89_v28  ;;  %2970 = vmatmul.mubr.msk.f32.gmra.mrb[74].mxu1 %vm221_vm1, %v187_v29 }
  0xa1   :  { %2825 = vmatprep.mubr.msk.f32.mxu0 %vm221_vm1, %v90_v30  ;;  %2972 = vmatprep.mubr.msk.f32.mxu1 %vm221_vm1, %v188_v31 }
  0xa4   :  { %2826 = vmatmul.mubr.msk.f32.gmra.mrb[76].mxu0 %vm221_vm1, %v91_v32  ;;  %2973 = vmatmul.mubr.msk.f32.gmra.mrb[76].mxu1 %vm221_vm1, %v189_v33 }
  0xa5   :  { %2828 = vmatprep.mubr.msk.f32.mxu0 %vm221_vm1, %v92_v34  ;;  %2975 = vmatprep.mubr.msk.f32.mxu1 %vm221_vm1, %v190_v35 }
  0xa8   :  { %2829 = vmatmul.mubr.msk.f32.gmra.mrb[78].mxu0 %vm221_vm1, %v93_v36  ;;  %2976 = vmatmul.mubr.msk.f32.gmra.mrb[78].mxu1 %vm221_vm1, %v191_v37 }
  0xa9   :  { %2831 = vmatprep.mubr.msk.f32.mxu0 %vm221_vm1, %v94_v38  ;;  %2978 = vmatprep.mubr.msk.f32.mxu1 %vm221_vm1, %v192_v39 }
  0xac   :  { %2832 = vmatmul.mubr.msk.f32.gmra.mrb[80].mxu0 %vm221_vm1, %v95_v40  ;;  %2979 = vmatmul.mubr.msk.f32.gmra.mrb[80].mxu1 %vm221_vm1, %v193_v41 }
  0xad   :  { %2834 = vmatprep.mubr.msk.f32.mxu0 %vm221_vm1, %v96_v42  ;;  %2981 = vmatprep.mubr.msk.f32.mxu1 %vm221_vm1, %v194_v43 }
  0xb0   :  { %2835 = vmatmul.mubr.msk.f32.gmra.mrb[82].mxu0 %vm221_vm1, %v97_v44  ;;  %2982 = vmatmul.mubr.msk.f32.gmra.mrb[82].mxu1 %vm221_vm1, %v195_v45 }
  0xb1   :  { %2837 = vmatprep.mubr.msk.f32.mxu0 %vm221_vm1, %v98_v46  ;;  %2984 = vmatprep.mubr.msk.f32.mxu1 %vm221_vm1, %v196_v47 }
  0xb4   :  { %2838 = vmatmul.mubr.msk.f32.gmra.mrb[84].mxu0 %vm221_vm1, %v99_v48  ;;  %2985 = vmatmul.mubr.msk.f32.gmra.mrb[84].mxu1 %vm221_vm1, %v197_v49 }
  0xb5   :  { %2840 = vmatprep.mubr.msk.f32.mxu0 %vm221_vm1, %v100_v50  ;;  %2987 = vmatprep.mubr.msk.f32.mxu1 %vm221_vm1, %v198_v51 }
  0xb8   :  { %2841 = vmatmul.mubr.msk.f32.gmra.mrb[86].mxu0 %vm221_vm1, %v101_v52  ;;  %2988 = vmatmul.mubr.msk.f32.gmra.mrb[86].mxu1 %vm221_vm1, %v199_v53 }
  0xb9   :  { %2843 = vmatprep.mubr.msk.f32.mxu0 %vm221_vm1, %v102_v54  ;;  %2990 = vmatprep.mubr.msk.f32.mxu1 %vm221_vm1, %v200_v55 }
  0xbc   :  { %2844 = vmatmul.mubr.msk.f32.gmra.mrb[88].mxu0 %vm221_vm1, %v103_v56  ;;  %2991 = vmatmul.mubr.msk.f32.gmra.mrb[88].mxu1 %vm221_vm1, %v201_v57 }
  0xbd   :  { %2846 = vmatprep.mubr.msk.f32.mxu0 %vm221_vm1, %v104_v58  ;;  %2993 = vmatprep.mubr.msk.f32.mxu1 %vm221_vm1, %v202_v59 }
  0xc0   :  { %2847 = vmatmul.mubr.msk.f32.gmra.mrb[90].mxu0 %vm221_vm1, %v105_v60  ;;  %2994 = vmatmul.mubr.msk.f32.gmra.mrb[90].mxu1 %vm221_vm1, %v203_v61  ;;  %v3917_v60 = vld [vmem:[%s4934_s2] ss:$0 sm:$0xff] }
  0xc1   :  { %2849 = vmatprep.mubr.msk.f32.mxu0 %vm221_vm1, %v106_v62  ;;  %2996 = vmatprep.mubr.msk.f32.mxu1 %vm221_vm1, %v204_v63 }
  0xc4   :  { %2850 = vmatmul.mubr.msk.f32.gmra.mrb[92].mxu0 %vm221_vm1, %v107_v0  ;;  %2997 = vmatmul.mubr.msk.f32.gmra.mrb[92].mxu1 %vm221_vm1, %v205_v1 }
  0xc5   :  { %2852 = vmatprep.mubr.msk.f32.mxu0 %vm221_vm1, %v108_v2  ;;  %2999 = vmatprep.mubr.msk.f32.mxu1 %vm221_vm1, %v206_v3 }
  0xc8   :  { %2853 = vmatmul.mubr.msk.f32.gmra.mrb[94].mxu0 %vm221_vm1, %v109_v4  ;;  %3000 = vmatmul.mubr.msk.f32.gmra.mrb[94].mxu1 %vm221_vm1, %v207_v5 }
  0xc9   :  { %2855 = vmatprep.mubr.msk.f32.mxu0 %vm221_vm1, %v110_v6  ;;  %3002 = vmatprep.mubr.msk.f32.mxu1 %vm221_vm1, %v208_v7 }
  0xcc   :  { %2856 = vmatmul.mubr.msk.f32.gmra.mrb[96].mxu0 %vm221_vm1, %v111_v8  ;;  %3003 = vmatmul.mubr.msk.f32.gmra.mrb[96].mxu1 %vm221_vm1, %v209_v9 }
  0xdf   :  { %v2713_v10 = vpop.f32.mrb[0].mxu0  ;;  %v2860_v11 = vpop.f32.mrb[0].mxu1 }
  0xe0   :  { %v880_v12 = vpop.f32.mrb[1].mxu0  ;;  %v1370_v13 = vpop.f32.mrb[1].mxu1  ;;  %v3924_v63 = vadd.f32 %v2713_v10, %v3917_v60  ;;  %v3934_v3 = vadd.f32 %v2860_v11, %v3917_v60 }
  0xe1   :  { %v3931_v2 = vadd.f32 %v3917_v60, %v880_v12  ;;  %v3944_v7 = vadd.f32 %v3917_v60, %v1370_v13 }
  0xe2   :  { %4990 = vst [vmem:[#allocation2_spill] sm:$0xff] %v3924_v63  ;;  %4991 = vst [vmem:[#allocation3_spill] sm:$0xff] %v3934_v3 }
  0xe3   :  { %v2716_v14 = vpop.f32.mrb[2].mxu0  ;;  %v2863_v15 = vpop.f32.mrb[2].mxu1 }
  0xe4   :  { %v890_v16 = vpop.f32.mrb[3].mxu0  ;;  %v1380_v17 = vpop.f32.mrb[3].mxu1  ;;  %v3941_v6 = vadd.f32 %v2716_v14, %v3917_v60  ;;  %v3947_v8 = vadd.f32 %v2863_v15, %v3917_v60 }
  0xe5   :  { %v3950_v9 = vadd.f32 %v3917_v60, %v890_v16  ;;  %v3953_v10 = vadd.f32 %v3917_v60, %v1380_v17 }
  0xe6   :  { %4994 = vst [vmem:[#allocation6_spill] sm:$0xff] %v3947_v8 }
  0xe7   :  { %v2719_v18 = vpop.f32.mrb[4].mxu0  ;;  %v2866_v19 = vpop.f32.mrb[4].mxu1 }
  0xe8   :  { %v900_v20 = vpop.f32.mrb[5].mxu0  ;;  %v3838_v21 = vpop.f32.mrb[5].mxu1  ;;  %v3957_v12 = vadd.f32 %v2719_v18, %v3917_v60  ;;  %v3963_v13 = vadd.f32 %v2866_v19, %v3917_v60 }
  0xe9   :  { %v3960_v14 = vadd.f32 %v3917_v60, %v900_v20  ;;  %v3976_v18 = vadd.f32 %v3917_v60, %v3838_v21 }
  0xea   :  { %4995 = vst [vmem:[#allocation7_spill] sm:$0xff] %v3963_v13 }
  0xeb   :  { %v2722_v22 = vpop.f32.mrb[6].mxu0  ;;  %v3840_v23 = vpop.f32.mrb[6].mxu1 }
  0xec   :  { %v3842_v24 = vpop.f32.mrb[7].mxu0  ;;  %v3844_v25 = vpop.f32.mrb[7].mxu1  ;;  %v3987_v17 = vadd.f32 %v3840_v23, %v3917_v60 }
  0xed   :  { %v3993_v21 = vadd.f32 %v3917_v60, %v3842_v24  ;;  %v3997_v3 = vadd.f32 %v3917_v60, %v3844_v25 }
  0xee   :  { %4998 = vst [vmem:[#allocation10_spill] sm:$0xff] %v3987_v17 }
  0xef   :  { %v3846_v26 = vpop.f32.mrb[8].mxu0  ;;  %v3848_v27 = vpop.f32.mrb[8].mxu1  ;;  %4999 = vst [vmem:[#allocation11_spill] sm:$0xff] %v3997_v3 }
  0xf0   :  { %v3850_v28 = vpop.f32.mrb[9].mxu0  ;;  %v3852_v29 = vpop.f32.mrb[9].mxu1  ;;  %v4004_v23 = vadd.f32 %v3846_v26, %v3917_v60  ;;  %v4018_v19 = vadd.f32 %v3848_v27, %v3917_v60 }
  0xf1   :  { %v4014_v25 = vadd.f32 %v3917_v60, %v3850_v28  ;;  %v4031_v24 = vadd.f32 %v3917_v60, %v3852_v29 }
  0xf2   :  { %5000 = vst [vmem:[#allocation12_spill] sm:$0xff] %v4004_v23  ;;  %5002 = vst [vmem:[#allocation14_spill] sm:$0xff] %v4018_v19 }
  0xf3   :  { %v3854_v30 = vpop.f32.mrb[10].mxu0  ;;  %v3856_v31 = vpop.f32.mrb[10].mxu1  ;;  %5001 = vst [vmem:[#allocation13_spill] sm:$0xff] %v4014_v25 }
  0xf4   :  { %v3858_v32 = vpop.f32.mrb[11].mxu0  ;;  %v3860_v33 = vpop.f32.mrb[11].mxu1  ;;  %v4027_v13 = vadd.f32 %v3854_v30, %v3917_v60  ;;  %v4035_v28 = vadd.f32 %v3856_v31, %v3917_v60 }
  0xf5   :  { %v4045_v30 = vadd.f32 %v3917_v60, %v3860_v33 }
  0xf6   :  { %5003 = vst [vmem:[#allocation15_spill] sm:$0xff] %v4035_v28 }
  0xf7   :  { %v3862_v34 = vpop.f32.mrb[12].mxu0  ;;  %v3864_v35 = vpop.f32.mrb[12].mxu1 }
  0xf8   :  { %v3866_v36 = vpop.f32.mrb[13].mxu0  ;;  %v3868_v37 = vpop.f32.mrb[13].mxu1  ;;  %v4050_v29 = vadd.f32 %v3862_v34, %v3917_v60  ;;  %v4058_v8 = vadd.f32 %v3864_v35, %v3917_v60 }
  0xf9   :  { %v4054_v31 = vadd.f32 %v3917_v60, %v3866_v36  ;;  %v4072_v36 = vadd.f32 %v3917_v60, %v3868_v37 }
  0xfa   :  { %5004 = vst [vmem:[#allocation16_spill] sm:$0xff] %v4058_v8 }
  0xfb   :  { %v3870_v38 = vpop.f32.mrb[14].mxu0  ;;  %v3872_v39 = vpop.f32.mrb[14].mxu1 }
  0xfc   :  { %v3874_v40 = vpop.f32.mrb[15].mxu0  ;;  %v3876_v41 = vpop.f32.mrb[15].mxu1  ;;  %v4068_v34 = vadd.f32 %v3870_v38, %v3917_v60 }
  0xfd   :  { %v4089_v37 = vadd.f32 %v3917_v60, %v3874_v40  ;;  %v4093_v25 = vadd.f32 %v3917_v60, %v3876_v41 }
  0xfe   :  { %5005 = vst [vmem:[#allocation17_spill] sm:$0xff] %v4068_v34 }
  0xff   :  { %v3878_v42 = vpop.f32.mrb[16].mxu0  ;;  %v3880_v43 = vpop.f32.mrb[16].mxu1  ;;  %5007 = vst [vmem:[#allocation19_spill] sm:$0xff] %v4093_v25 }
 0x100   :  { %v3882_v44 = vpop.f32.mrb[17].mxu0  ;;  %v3884_v45 = vpop.f32.mrb[17].mxu1  ;;  %v4114_v17 = vadd.f32 %v3880_v43, %v3917_v60 }
 0x101   :  { %v4110_v41 = vadd.f32 %v3917_v60, %v3882_v44  ;;  %v4127_v40 = vadd.f32 %v3917_v60, %v3884_v45 }
 0x102   :  { %5010 = vst [vmem:[#allocation22_spill] sm:$0xff] %v4114_v17 }
 0x103   :  { %v3886_v46 = vpop.f32.mrb[18].mxu0  ;;  %v3888_v47 = vpop.f32.mrb[18].mxu1  ;;  %5009 = vst [vmem:[#allocation21_spill] sm:$0xff] %v4110_v41 }
 0x104   :  { %v3890_v48 = vpop.f32.mrb[19].mxu0  ;;  %v3892_v49 = vpop.f32.mrb[19].mxu1  ;;  %v4123_v8 = vadd.f32 %v3886_v46, %v3917_v60  ;;  %v4131_v44 = vadd.f32 %v3888_v47, %v3917_v60 }
 0x105   :  { %v4137_v34 = vadd.f32 %v3917_v60, %v3890_v48  ;;  %v4141_v46 = vadd.f32 %v3917_v60, %v3892_v49 }
 0x106   :  { %5011 = vst [vmem:[#allocation23_spill] sm:$0xff] %v4123_v8  ;;  %5012 = vst [vmem:[#allocation24_spill] sm:$0xff] %v4131_v44 }
 0x107   :  { %v3894_v50 = vpop.f32.mrb[20].mxu0  ;;  %v3896_v51 = vpop.f32.mrb[20].mxu1 }
 0x108   :  { %v3898_v52 = vpop.f32.mrb[21].mxu0  ;;  %v3900_v53 = vpop.f32.mrb[21].mxu1  ;;  %v4146_v45 = vadd.f32 %v3894_v50, %v3917_v60  ;;  %v4154_v28 = vadd.f32 %v3896_v51, %v3917_v60 }
 0x109   :  { %v4150_v47 = vadd.f32 %v3917_v60, %v3898_v52  ;;  %v4168_v52 = vadd.f32 %v3917_v60, %v3900_v53 }
 0x10a   :  { %5013 = vst [vmem:[#allocation25_spill] sm:$0xff] %v4146_v45  ;;  %5014 = vst [vmem:[#allocation26_spill] sm:$0xff] %v4154_v28 }
 0x10b   :  { %v3902_v54 = vpop.f32.mrb[22].mxu0  ;;  %v3904_v55 = vpop.f32.mrb[22].mxu1  ;;  %5016 = vst [vmem:[#allocation28_spill] sm:$0xff] %v4168_v52 }
 0x10c   :  { %v3906_v56 = vpop.f32.mrb[23].mxu0  ;;  %v3908_v57 = vpop.f32.mrb[23].mxu1  ;;  %v4164_v50 = vadd.f32 %v3902_v54, %v3917_v60  ;;  %v4179_v33 = vadd.f32 %v3904_v55, %v3917_v60 }
 0x10d   :  { %v4185_v53 = vadd.f32 %v3917_v60, %v3906_v56  ;;  %v4189_v41 = vadd.f32 %v3917_v60, %v3908_v57 }
 0x10e   :  { %5015 = vst [vmem:[#allocation27_spill] sm:$0xff] %v4164_v50  ;;  %5017 = vst [vmem:[#allocation29_spill] sm:$0xff] %v4179_v33 }
 0x10f   :  { %v3910_v58 = vpop.f32.mrb[24].mxu0  ;;  %v3912_v59 = vpop.f32.mrb[24].mxu1  ;;  %5018 = vst [vmem:[#allocation30_spill] sm:$0xff] %v4185_v53  ;;  %5019 = vst [vmem:[#allocation31_spill] sm:$0xff] %v4189_v41 }
 0x110   :  { %v3919_v61 = vpop.f32.mrb[25].mxu0  ;;  %v3921_v62 = vpop.f32.mrb[25].mxu1  ;;  %v4196_v55 = vadd.f32 %v3910_v58, %v3917_v60 }
 0x111   :  { %v4206_v57 = vadd.f32 %v3917_v60, %v3919_v61  ;;  %v4223_v56 = vadd.f32 %v3917_v60, %v3921_v62 }
 0x112   :  { %5020 = vst [vmem:[#allocation32_spill] sm:$0xff] %v4196_v55 }
 0x113   :  { %v3926_v0 = vpop.f32.mrb[26].mxu0  ;;  %v3928_v1 = vpop.f32.mrb[26].mxu1 }
 0x114   :  { %v3936_v4 = vpop.f32.mrb[27].mxu0  ;;  %v3938_v5 = vpop.f32.mrb[27].mxu1  ;;  %v4219_v28 = vadd.f32 %v3926_v0, %v3917_v60  ;;  %v4227_v61 = vadd.f32 %v3928_v1, %v3917_v60 }
 0x115   :  { %4992 = vst [vmem:[#allocation4_spill] sm:$0xff] %v3936_v4  ;;  %4993 = vst [vmem:[#allocation5_spill] sm:$0xff] %v3938_v5  ;;  %v3972_v4 = vadd.f32 %v2722_v22, %v3917_v60 }
 0x116   :  { %5022 = vst [vmem:[#allocation34_spill] sm:$0xff] %v4227_v61 }
 0x117   :  { %v3965_v5 = vpop.f32.mrb[28].mxu0  ;;  %v3967_v15 = vpop.f32.mrb[28].mxu1  ;;  %4997 = vst [vmem:[#allocation9_spill] sm:$0xff] %v3972_v4  ;;  %v4041_v4 = vadd.f32 %v3917_v60, %v3858_v32 }
 0x118   :  { %4996 = vst [vmem:[#allocation8_spill] sm:$0xff] %v3967_v15  ;;  %v3978_v20 = vpop.f32.mrb[29].mxu0  ;;  %v3980_v11 = vpop.f32.mrb[29].mxu1  ;;  %v4083_v15 = vadd.f32 %v3872_v39, %v3917_v60  ;;  %v4100_v39 = vadd.f32 %v3878_v42, %v3917_v60  ;;  %v4242_v62 = vadd.f32 %v3965_v5, %v3917_v60 }
 0x119   :  { %v4246_v1 = vadd.f32 %v3917_v60, %v3978_v20  ;;  %v4262_v5 = vadd.f32 %v3917_v60, %v3980_v11 }
 0x11a   :  { %5006 = vst [vmem:[#allocation18_spill] sm:$0xff] %v4083_v15  ;;  %5008 = vst [vmem:[#allocation20_spill] sm:$0xff] %v4100_v39  ;;  %v4210_v15 = vadd.f32 %v3912_v59, %v3917_v60 }
 0x11b   :  { %v4006_v22 = vpop.f32.mrb[30].mxu0  ;;  %v4008_v16 = vpop.f32.mrb[30].mxu1 }
 0x11c   :  { %v4020_v63 = vpop.f32.mrb[31].mxu0  ;;  %v4022_v26 = vpop.f32.mrb[31].mxu1  ;;  %5021 = vst [vmem:[#allocation33_spill] sm:$0xff] %v4210_v15  ;;  %v5023_v50 = vld [vmem:[#allocation4_spill] sm:$0xff]  ;;  %v5024_v49 = vld [vmem:[#allocation5_spill] sm:$0xff]  ;;  %v4258_v33 = vadd.f32 %v4006_v22, %v3917_v60  ;;  %v4271_v53 = vadd.f32 %v4008_v16, %v3917_v60 }
 0x11d   :  { %v4233_v45 = vadd.f32 %v3917_v60, %v5023_v50  ;;  %v4237_v0 = vadd.f32 %v3917_v60, %v5024_v49  ;;  %5025 = vst [vmem:[#allocation4_spill] sm:$0xff] %v4242_v62  ;;  %v4277_v11 = vadd.f32 %v3917_v60, %v4020_v63  ;;  %v4281_v15 = vadd.f32 %v3917_v60, %v4022_v26 }
 0x11e   :  { %5029 = vst [vmem:[#allocation35_spill] sm:$0xff] %v4271_v53 }
 0x11f   :  { %v4060_v32 = vpop.f32.mrb[32].mxu0  ;;  %v4062_v27 = vpop.f32.mrb[32].mxu1  ;;  %v5026_v44 = vld [vmem:[#allocation8_spill] sm:$0xff]  ;;  %5030 = vst [vmem:[#allocation36_spill] sm:$0xff] %v4281_v15 }
 0x120   :  { %v4074_v23 = vpop.f32.mrb[33].mxu0  ;;  %v4076_v35 = vpop.f32.mrb[33].mxu1  ;;  %v4250_v59 = vadd.f32 %v5026_v44, %v3917_v60  ;;  %5028 = vst [vmem:[#allocation8_spill] sm:$0xff] %v4258_v33  ;;  %v4288_v16 = vadd.f32 %v4060_v32, %v3917_v60  ;;  %v4298_v44 = vadd.f32 %v4062_v27, %v3917_v60 }
 0x121   :  { %v4294_v26 = vadd.f32 %v3917_v60, %v4074_v23  ;;  %v4307_v61 = vadd.f32 %v3917_v60, %v4076_v35 }
 0x122   :  { %5027 = vst [vmem:[#allocation5_spill] sm:$0xff] %v4250_v59  ;;  %5031 = vst [vmem:[#allocation37_spill] sm:$0xff] %v4288_v16 }
 0x123   :  { %v4102_v38 = vpop.f32.mrb[34].mxu0  ;;  %v4104_v19 = vpop.f32.mrb[34].mxu1  ;;  %5032 = vst [vmem:[#allocation38_spill] sm:$0xff] %v4298_v44 }
 0x124   :  { %v4116_v3 = vpop.f32.mrb[35].mxu0  ;;  %v4118_v42 = vpop.f32.mrb[35].mxu1  ;;  %v4303_v32 = vadd.f32 %v4102_v38, %v3917_v60  ;;  %v4311_v23 = vadd.f32 %v4104_v19, %v3917_v60 }
 0x125   :  { %v4317_v33 = vadd.f32 %v3917_v60, %v4116_v3  ;;  %v4321_v38 = vadd.f32 %v3917_v60, %v4118_v42 }
 0x126   :  { %5033 = vst [vmem:[#allocation39_spill] sm:$0xff] %v4303_v32  ;;  %5034 = vst [vmem:[#allocation40_spill] sm:$0xff] %v4311_v23 }
 0x127   :  { %v4156_v48 = vpop.f32.mrb[36].mxu0  ;;  %v4158_v43 = vpop.f32.mrb[36].mxu1 }
 0x128   :  { %v4170_v39 = vpop.f32.mrb[37].mxu0  ;;  %v4172_v51 = vpop.f32.mrb[37].mxu1  ;;  %v4326_v35 = vadd.f32 %v4156_v48, %v3917_v60  ;;  %v4334_v27 = vadd.f32 %v4158_v43, %v3917_v60 }
 0x129   :  { %v4330_v19 = vadd.f32 %v3917_v60, %v4170_v39  ;;  %v4344_v48 = vadd.f32 %v3917_v60, %v4172_v51 }
 0x12a   :  { %5035 = vst [vmem:[#allocation41_spill] sm:$0xff] %v4326_v35  ;;  %5036 = vst [vmem:[#allocation42_spill] sm:$0xff] %v4334_v27 }
 0x12b   :  { %v4198_v54 = vpop.f32.mrb[38].mxu0  ;;  %v4200_v17 = vpop.f32.mrb[38].mxu1 }
 0x12c   :  { %v4212_v25 = vpop.f32.mrb[39].mxu0  ;;  %v4214_v58 = vpop.f32.mrb[39].mxu1  ;;  %v4340_v59 = vadd.f32 %v4198_v54, %v3917_v60  ;;  %v4351_v53 = vadd.f32 %v4200_v17, %v3917_v60 }
 0x12d   :  { %v4357_v51 = vadd.f32 %v3917_v60, %v4212_v25  ;;  %v4361_v44 = vadd.f32 %v3917_v60, %v4214_v58 }
 0x12e   :  { %5037 = vst [vmem:[#allocation43_spill] sm:$0xff] %v4340_v59  ;;  %5038 = vst [vmem:[#allocation44_spill] sm:$0xff] %v4351_v53 }
 0x12f   :  { %v2773_v50 = vpop.f32.mrb[40].mxu0  ;;  %v4252_v41 = vpop.f32.mrb[40].mxu1  ;;  %5039 = vst [vmem:[#allocation45_spill] sm:$0xff] %v4361_v44 }
 0x130   :  { %v1080_v20 = vpop.f32.mrb[41].mxu0  ;;  %v4264_v55 = vpop.f32.mrb[41].mxu1  ;;  %v4367_v17 = vadd.f32 %v2773_v50, %v3917_v60  ;;  %v4376_v58 = vadd.f32 %v4252_v41, %v3917_v60 }
 0x131   :  { %v4372_v32 = vadd.f32 %v3917_v60, %v1080_v20  ;;  %v4384_v27 = vadd.f32 %v3917_v60, %v4264_v55 }
 0x132   :  { %5040 = vst [vmem:[#allocation46_spill] sm:$0xff] %v4367_v17  ;;  %5041 = vst [vmem:[#allocation47_spill] sm:$0xff] %v4376_v58 }
 0x133   :  { %v2776_v22 = vpop.f32.mrb[42].mxu0  ;;  %v2923_v49 = vpop.f32.mrb[42].mxu1 }
 0x134   :  { %v1090_v8 = vpop.f32.mrb[43].mxu0  ;;  %v1580_v52 = vpop.f32.mrb[43].mxu1  ;;  %v4380_v50 = vadd.f32 %v2776_v22, %v3917_v60  ;;  %v4387_v54 = vadd.f32 %v2923_v49, %v3917_v60 }
 0x135   :  { %v4392_v41 = vadd.f32 %v3917_v60, %v1090_v8  ;;  %v4395_v59 = vadd.f32 %v3917_v60, %v1580_v52 }
 0x136   :  { %5042 = vst [vmem:[#allocation48_spill] sm:$0xff] %v4380_v50  ;;  %5043 = vst [vmem:[#allocation49_spill] sm:$0xff] %v4387_v54  ;;  %v5050_v50 = vmax.f32 %v3931_v2, 0.0 }
 0x137   :  { %v2779_v3 = vpop.f32.mrb[44].mxu0  ;;  %v2926_v63 = vpop.f32.mrb[44].mxu1  ;;  %5044 = vst [vmem:[#allocation50_spill] sm:$0xff] %v4392_v41  ;;  %5045 = vst [vmem:[#allocation51_spill] sm:$0xff] %v4395_v59 }
 0x138   :  { %v1100_v39 = vpop.f32.mrb[45].mxu0  ;;  %v1590_v16 = vpop.f32.mrb[45].mxu1  ;;  %v4399_v43 = vadd.f32 %v2779_v3, %v3917_v60  ;;  %v4405_v49 = vadd.f32 %v2926_v63, %v3917_v60 }
 0x139   :  { %v4402_v55 = vadd.f32 %v3917_v60, %v1100_v39  ;;  %v4415_v63 = vadd.f32 %v3917_v60, %v1590_v16 }
 0x13a   :  { %5046 = vst [vmem:[#allocation52_spill] sm:$0xff] %v4399_v43  ;;  %5047 = vst [vmem:[#allocation53_spill] sm:$0xff] %v4405_v49 }
 0x13b   :  { %v2782_v42 = vpop.f32.mrb[46].mxu0  ;;  %v2929_v23 = vpop.f32.mrb[46].mxu1 }
 0x13c   :  { %v1110_v15 = vpop.f32.mrb[47].mxu0  ;;  %v1600_v62 = vpop.f32.mrb[47].mxu1  ;;  %v4440_v2 = vadd.f32 %v2929_v23, %v3917_v60 }
 0x13d   :  { %v4426_v35 = vadd.f32 %v3917_v60, %v1600_v62 }
 0x13e   :  { %5052 = vst [vmem:[#allocation57_spill] sm:$0xff] %v4440_v2 }
 0x13f   :  { %v2785_v20 = vpop.f32.mrb[48].mxu0  ;;  %v2932_v53 = vpop.f32.mrb[48].mxu1  ;;  %5049 = vst [vmem:[#allocation55_spill] sm:$0xff] %v4426_v35 }
 0x140   :  { %v1126_v52 = vadd.f32 %v2785_v20, %v3917_v60  ;;  %v1120_v44 = vpop.f32.mrb[49].mxu0  ;;  %v1616_v22 = vadd.f32 %v2932_v53, %v3917_v60  ;;  %v1610_v17 = vpop.f32.mrb[49].mxu1  ;;  %v4420_v20 = vadd.f32 %v3917_v60, %v1110_v15  ;;  %v4433_v53 = vadd.f32 %v2782_v42, %v3917_v60 }
 0x141   :  { %v4446_v42 = vadd.f32 %v3917_v60, %v1120_v44 }
 0x142   :  { %5048 = vst [vmem:[#allocation54_spill] sm:$0xff] %v4420_v20  ;;  %v1908_v58 = vmax.f32 %v1126_v52, 0.0  ;;  %v2006_v41 = vmax.f32 %v1616_v22, 0.0  ;;  %5051 = vst [vmem:[#allocation56_spill] sm:$0xff] %v4433_v53 }
 0x143   :  { %v2788_v16 = vpop.f32.mrb[50].mxu0  ;;  %v2935_v54 = vpop.f32.mrb[50].mxu1  ;;  %5054 = vst [vmem:[#allocation58_spill] sm:$0xff] %v4446_v42 }
 0x144   :  { %v2055_v25 = vadd.f32 %v1908_v58, %v5050_v50  ;;  %v1136_v8 = vadd.f32 %v2788_v16, %v3917_v60  ;;  %v1130_v15 = vpop.f32.mrb[51].mxu0  ;;  %v1626_v52 = vadd.f32 %v2935_v54, %v3917_v60  ;;  %v1620_v59 = vpop.f32.mrb[51].mxu1  ;;  %v5053_v58 = vmax.f32 %v3944_v7, 0.0 }
 0x145   :  { %v1131_v62 = vadd.f32 %v3917_v60, %v1130_v15  ;;  %v1621_v3 = vadd.f32 %v3917_v60, %v1620_v59  ;;  %v5055_v59 = vmax.f32 %v3950_v9, 0.0  ;;  %v5058_v9 = vmax.f32 %v3953_v10, 0.0 }
 0x146   :  { %v2104_v50 = vadd.f32 %v2055_v25, %v5053_v58  ;;  %v1910_v22 = vmax.f32 %v1136_v8, 0.0  ;;  %v2008_v39 = vmax.f32 %v1626_v52, 0.0  ;;  %v5056_v8 = vld [vmem:[#allocation2_spill] sm:$0xff] }
 0x147   :  { %v1909_v16 = vmax.f32 %v1131_v62, 0.0  ;;  %v2791_v53 = vpop.f32.mrb[52].mxu0  ;;  %v2938_v15 = vpop.f32.mrb[52].mxu1  ;;  %v5057_v58 = vmax.f32 %v5056_v8, 0.0  ;;  %v2007_v35 = vmax.f32 %v1621_v3, 0.0 }
 0x148   :  { %v2153_v43 = vadd.f32 %v2104_v50, %v2006_v41  ;;  %v2057_v49 = vadd.f32 %v1910_v22, %v5055_v59  ;;  %v1146_v23 = vadd.f32 %v2791_v53, %v3917_v60  ;;  %v1140_v2 = vpop.f32.mrb[53].mxu0  ;;  %v1636_v7 = vadd.f32 %v2938_v15, %v3917_v60  ;;  %v1630_v25 = vpop.f32.mrb[53].mxu1  ;;  %v5059_v22 = vld [vmem:[#allocation3_spill] sm:$0xff] }
 0x149   :  { %v2056_v54 = vadd.f32 %v1909_v16, %v5057_v58  ;;  %v1141_v44 = vadd.f32 %v3917_v60, %v1140_v2  ;;  %v1631_v52 = vadd.f32 %v3917_v60, %v1630_v25  ;;  %v4457_v41 = vadd.f32 %v3917_v60, %v1610_v17 }
 0x14a   :  { %v2202_v62 = vmul.f32 0.25, %v2153_v43  ;;  %v2106_v50 = vadd.f32 %v2057_v49, %v5058_v9  ;;  %v1912_v53 = vmax.f32 %v1146_v23, 0.0  ;;  %v5060_v59 = vmax.f32 %v5059_v22, 0.0  ;;  %v5064_v22 = vld [vmem:[#allocation6_spill] sm:$0xff] }
 0x14b   :  { %v1911_v42 = vmax.f32 %v1141_v44, 0.0  ;;  %v2010_v20 = vmax.f32 %v1636_v7, 0.0  ;;  %v2794_v8 = vpop.f32.mrb[54].mxu0  ;;  %v2009_v16 = vmax.f32 %v1631_v52, 0.0  ;;  %v2941_v3 = vpop.f32.mrb[54].mxu1  ;;  %v5061_v17 = vmax.f32 %v3960_v14, 0.0 }
 0x14c   :  { %v2105_v15 = vadd.f32 %v2056_v54, %v5060_v59  ;;  %2252 = vst.msk [vmem:[%s4935_s3] sm:$0xff] %vm2251_vm4, %v2202_v62  ;;  %v2155_v43 = vadd.f32 %v2106_v50, %v2008_v39  ;;  %v1156_v10 = vadd.f32 %v2794_v8, %v3917_v60  ;;  %v1150_v49 = vpop.f32.mrb[55].mxu0  ;;  %v1646_v23 = vadd.f32 %v2941_v3, %v3917_v60  ;;  %v1640_v54 = vpop.f32.mrb[55].mxu1 }
 0x14d   :  { %v2059_v2 = vadd.f32 %v1912_v53, %v5061_v17  ;;  %v5062_v7 = vmax.f32 %v3941_v6, 0.0  ;;  %v1151_v44 = vadd.f32 %v3917_v60, %v1150_v49  ;;  %v1641_v52 = vadd.f32 %v3917_v60, %v1640_v54 }
 0x14e   :  { %v2154_v25 = vadd.f32 %v2105_v15, %v2007_v35  ;;  %v2204_v9 = vmul.f32 0.25, %v2155_v43  ;;  %v5063_v39 = vmax.f32 %v3976_v18, 0.0  ;;  %v1914_v14 = vmax.f32 %v1156_v10, 0.0 }
 0x14f   :  { %v2058_v58 = vadd.f32 %v1911_v42, %v5062_v7  ;;  %v2012_v50 = vmax.f32 %v1646_v23, 0.0  ;;  %v5065_v59 = vmax.f32 %v5064_v22, 0.0  ;;  %v1913_v3 = vmax.f32 %v1151_v44, 0.0  ;;  %v2797_v17 = vpop.f32.mrb[56].mxu0  ;;  %v2944_v15 = vpop.f32.mrb[56].mxu1 }
 0x150   :  { %v2108_v62 = vadd.f32 %v2059_v2, %v5063_v39  ;;  %v2203_v53 = vmul.f32 0.25, %v2154_v25  ;;  %v2011_v35 = vmax.f32 %v1641_v52, 0.0  ;;  %2254 = vst.msk [vmem:[%s4935_s3 + $0x10] sm:$0xff] %vm2251_vm4, %v2204_v9  ;;  %v5066_v42 = vmax.f32 %v3993_v21, 0.0  ;;  %v1160_v2 = vpop.f32.mrb[57].mxu0  ;;  %v1650_v49 = vpop.f32.mrb[57].mxu1 }
 0x151   :  { %v2107_v8 = vadd.f32 %v2058_v58, %v5065_v59  ;;  %v1166_v43 = vadd.f32 %v2797_v17, %v3917_v60  ;;  %v1656_v10 = vadd.f32 %v2944_v15, %v3917_v60  ;;  %v5067_v54 = vmax.f32 %v3957_v12, 0.0  ;;  %v5068_v58 = vld [vmem:[#allocation11_spill] sm:$0xff] }
 0x152   :  { %v2157_v6 = vadd.f32 %v2108_v62, %v2010_v20  ;;  %v2061_v18 = vadd.f32 %v1914_v14, %v5066_v42  ;;  %2253 = vst.msk [vmem:[%s4935_s3 + $0x8] sm:$0xff] %vm2251_vm4, %v2203_v53  ;;  %v1161_v20 = vadd.f32 %v3917_v60, %v1160_v2  ;;  %v1651_v21 = vadd.f32 %v3917_v60, %v1650_v49  ;;  %v5070_v14 = vld [vmem:[#allocation7_spill] sm:$0xff]  ;;  %v5074_v49 = vld [vmem:[#allocation9_spill] sm:$0xff] }
 0x153   :  { %v2156_v23 = vadd.f32 %v2107_v8, %v2009_v16  ;;  %v2060_v25 = vadd.f32 %v1913_v3, %v5067_v54  ;;  %v5069_v44 = vmax.f32 %v5068_v58, 0.0  ;;  %v1916_v9 = vmax.f32 %v1166_v43, 0.0  ;;  %v2800_v53 = vpop.f32.mrb[58].mxu0  ;;  %v2947_v8 = vpop.f32.mrb[58].mxu1  ;;  %v5072_v3 = vld [vmem:[#allocation13_spill] sm:$0xff] }
 0x154   :  { %v2206_v7 = vmul.f32 0.25, %v2157_v6  ;;  %v2014_v39 = vmax.f32 %v1656_v10, 0.0  ;;  %v5071_v22 = vmax.f32 %v5070_v14, 0.0  ;;  %v1915_v17 = vmax.f32 %v1161_v20, 0.0  ;;  %v1660_v2 = vpop.f32.mrb[59].mxu1 }
 0x155   :  { %v2110_v52 = vadd.f32 %v2061_v18, %v5069_v44  ;;  %v2205_v62 = vmul.f32 0.25, %v2156_v23  ;;  %v2013_v16 = vmax.f32 %v1651_v21, 0.0  ;;  %v5073_v15 = vmax.f32 %v5072_v3, 0.0  ;;  %v1170_v18 = vpop.f32.mrb[59].mxu0 }
 0x156   :  { %v2109_v59 = vadd.f32 %v2060_v25, %v5071_v22  ;;  %2256 = vst.msk [vmem:[%s4935_s3 + $0x20] sm:$0xff] %vm2251_vm4, %v2206_v7  ;;  %v1176_v42 = vadd.f32 %v2800_v53, %v3917_v60  ;;  %v1666_v43 = vadd.f32 %v2947_v8, %v3917_v60  ;;  %v5075_v23 = vmax.f32 %v5074_v49, 0.0 }
 0x157   :  { %v2159_v12 = vadd.f32 %v2110_v52, %v2012_v50  ;;  %v2063_v6 = vadd.f32 %v1916_v9, %v5073_v15  ;;  %2255 = vst.msk [vmem:[%s4935_s3 + $0x18] sm:$0xff] %vm2251_vm4, %v2205_v62  ;;  %v1171_v50 = vadd.f32 %v3917_v60, %v1170_v18  ;;  %v1661_v25 = vadd.f32 %v3917_v60, %v1660_v2  ;;  %v5077_v9 = vld [vmem:[#allocation10_spill] sm:$0xff]  ;;  %v2803_v62 = vpop.f32.mrb[60].mxu0  ;;  %v5080_v18 = vld [vmem:[#allocation12_spill] sm:$0xff] }
 0x158   :  { %v2158_v10 = vadd.f32 %v2109_v59, %v2011_v35  ;;  %v2062_v54 = vadd.f32 %v1915_v17, %v5075_v23  ;;  %v5076_v21 = vmax.f32 %v4031_v24, 0.0  ;;  %v1918_v58 = vmax.f32 %v1176_v42, 0.0  ;;  %v2950_v59 = vpop.f32.mrb[60].mxu1  ;;  %v1180_v3 = vpop.f32.mrb[61].mxu0 }
 0x159   :  { %v2208_v20 = vmul.f32 0.25, %v2159_v12  ;;  %v2016_v44 = vmax.f32 %v1666_v43, 0.0  ;;  %v5078_v14 = vmax.f32 %v5077_v9, 0.0  ;;  %v1917_v53 = vmax.f32 %v1171_v50, 0.0 }
 0x15a   :  { %v2112_v7 = vadd.f32 %v2063_v6, %v5076_v21  ;;  %v2207_v52 = vmul.f32 0.25, %v2158_v10  ;;  %v2015_v35 = vmax.f32 %v1661_v25, 0.0  ;;  %v5079_v8 = vmax.f32 %v4041_v4, 0.0  ;;  %v1670_v6 = vpop.f32.mrb[61].mxu1 }
 0x15b   :  { %v2111_v22 = vadd.f32 %v2062_v54, %v5078_v14  ;;  %2258 = vst.msk [vmem:[%s4935_s3 + $0x30] sm:$0xff] %vm2251_vm4, %v2208_v20  ;;  %v1186_v12 = vadd.f32 %v2803_v62, %v3917_v60  ;;  %v1676_v15 = vadd.f32 %v2950_v59, %v3917_v60  ;;  %v5081_v43 = vmax.f32 %v5080_v18, 0.0  ;;  %v5083_v20 = vld [vmem:[#allocation14_spill] sm:$0xff]  ;;  %v2953_v9 = vpop.f32.mrb[62].mxu1 }
 0x15c   :  { %v2161_v17 = vadd.f32 %v2112_v7, %v2014_v39  ;;  %v2065_v24 = vadd.f32 %v1918_v58, %v5079_v8  ;;  %2257 = vst.msk [vmem:[%s4935_s3 + $0x28] sm:$0xff] %vm2251_vm4, %v2207_v52  ;;  %v1181_v39 = vadd.f32 %v3917_v60, %v1180_v3  ;;  %v1671_v4 = vadd.f32 %v3917_v60, %v1670_v6  ;;  %v2806_v52 = vpop.f32.mrb[62].mxu0 }
 0x15d   :  { %v2160_v42 = vadd.f32 %v2111_v22, %v2013_v16  ;;  %v2064_v2 = vadd.f32 %v1917_v53, %v5081_v43  ;;  %v5082_v49 = vmax.f32 %v4045_v30, 0.0  ;;  %v1920_v54 = vmax.f32 %v1186_v12, 0.0  ;;  %v1190_v62 = vpop.f32.mrb[63].mxu0 }
 0x15e   :  { %v2210_v10 = vmul.f32 0.25, %v2161_v17  ;;  %v2018_v50 = vmax.f32 %v1676_v15, 0.0  ;;  %v5084_v21 = vmax.f32 %v5083_v20, 0.0  ;;  %v1919_v58 = vmax.f32 %v1181_v39, 0.0  ;;  %v1680_v17 = vpop.f32.mrb[63].mxu1 }
 0x15f   :  { %v2114_v23 = vadd.f32 %v2065_v24, %v5082_v49  ;;  %v2209_v25 = vmul.f32 0.25, %v2160_v42  ;;  %v2017_v16 = vmax.f32 %v1671_v4, 0.0  ;;  %v5085_v22 = vmax.f32 %v4054_v31, 0.0  ;;  %v2809_v49 = vpop.f32.mrb[64].mxu0 }
 0x160   :  { %v2113_v7 = vadd.f32 %v2064_v2, %v5084_v21  ;;  %2260 = vst.msk [vmem:[%s4935_s3 + $0x40] sm:$0xff] %vm2251_vm4, %v2210_v10  ;;  %v1196_v53 = vadd.f32 %v2806_v52, %v3917_v60  ;;  %v1686_v59 = vadd.f32 %v2953_v9, %v3917_v60  ;;  %v5086_v24 = vmax.f32 %v4027_v13, 0.0  ;;  %v5088_v2 = vld [vmem:[#allocation15_spill] sm:$0xff]  ;;  %v1200_v20 = vpop.f32.mrb[65].mxu0 }
 0x161   :  { %v2163_v14 = vadd.f32 %v2114_v23, %v2016_v44  ;;  %v2067_v30 = vadd.f32 %v1920_v54, %v5085_v22  ;;  %2259 = vst.msk [vmem:[%s4935_s3 + $0x38] sm:$0xff] %vm2251_vm4, %v2209_v25  ;;  %v1191_v44 = vadd.f32 %v3917_v60, %v1190_v62  ;;  %v1681_v31 = vadd.f32 %v3917_v60, %v1680_v17  ;;  %v2956_v23 = vpop.f32.mrb[64].mxu1  ;;  %v5092_v22 = vld [vmem:[#allocation19_spill] sm:$0xff] }
 0x162   :  { %v2162_v8 = vadd.f32 %v2113_v7, %v2015_v35  ;;  %v2066_v12 = vadd.f32 %v1919_v58, %v5086_v24  ;;  %v5087_v15 = vmax.f32 %v4072_v36, 0.0  ;;  %v1922_v42 = vmax.f32 %v1196_v53, 0.0  ;;  %v1690_v7 = vpop.f32.mrb[65].mxu1 }
 0x163   :  { %v2212_v3 = vmul.f32 0.25, %v2163_v14  ;;  %v2020_v18 = vmax.f32 %v1686_v59, 0.0  ;;  %v5089_v39 = vmax.f32 %v5088_v2, 0.0  ;;  %v1921_v10 = vmax.f32 %v1191_v44, 0.0 }
 0x164   :  { %v2116_v6 = vadd.f32 %v2067_v30, %v5087_v15  ;;  %v2211_v43 = vmul.f32 0.25, %v2162_v8  ;;  %v2019_v35 = vmax.f32 %v1681_v31, 0.0  ;;  %v5090_v54 = vmax.f32 %v4089_v37, 0.0  ;;  %v5094_v8 = vld [vmem:[#allocation16_spill] sm:$0xff]  ;;  %v2812_v31 = vpop.f32.mrb[66].mxu0  ;;  %v5096_v15 = vld [vmem:[#allocation21_spill] sm:$0xff] }
 0x165   :  { %v2115_v4 = vadd.f32 %v2066_v12, %v5089_v39  ;;  %2262 = vst.msk [vmem:[%s4935_s3 + $0x50] sm:$0xff] %vm2251_vm4, %v2212_v3  ;;  %v1206_v25 = vadd.f32 %v2809_v49, %v3917_v60  ;;  %v1696_v21 = vadd.f32 %v2956_v23, %v3917_v60  ;;  %v5091_v52 = vmax.f32 %v4050_v29, 0.0  ;;  %v2959_v3 = vpop.f32.mrb[66].mxu1  ;;  %v1210_v2 = vpop.f32.mrb[67].mxu0  ;;  %v5098_v49 = vld [vmem:[#allocation17_spill] sm:$0xff] }
 0x166   :  { %v2165_v13 = vadd.f32 %v2116_v6, %v2018_v50  ;;  %v2069_v36 = vadd.f32 %v1922_v42, %v5090_v54  ;;  %2261 = vst.msk [vmem:[%s4935_s3 + $0x48] sm:$0xff] %vm2251_vm4, %v2211_v43  ;;  %v1201_v50 = vadd.f32 %v3917_v60, %v1200_v20  ;;  %v1691_v37 = vadd.f32 %v3917_v60, %v1690_v7 }
 0x167   :  { %v2164_v58 = vadd.f32 %v2115_v4, %v2017_v16  ;;  %v2068_v9 = vadd.f32 %v1921_v10, %v5091_v52  ;;  %v5093_v30 = vmax.f32 %v5092_v22, 0.0  ;;  %v1924_v62 = vmax.f32 %v1206_v25, 0.0  ;;  %v1700_v4 = vpop.f32.mrb[67].mxu1  ;;  %v5101_v52 = vld [vmem:[#allocation18_spill] sm:$0xff] }
 0x168   :  { %v2214_v14 = vmul.f32 0.25, %v2165_v13  ;;  %v2022_v59 = vmax.f32 %v1696_v21, 0.0  ;;  %v5095_v24 = vmax.f32 %v5094_v8, 0.0  ;;  %v1923_v44 = vmax.f32 %v1201_v50, 0.0  ;;  %v2962_v22 = vpop.f32.mrb[68].mxu1 }
 0x169   :  { %v2118_v53 = vadd.f32 %v2069_v36, %v5093_v30  ;;  %v2213_v17 = vmul.f32 0.25, %v2164_v58  ;;  %v2021_v16 = vmax.f32 %v1691_v37, 0.0  ;;  %v5097_v6 = vmax.f32 %v5096_v15, 0.0 }
 0x16a   :  { %v2117_v12 = vadd.f32 %v2068_v9, %v5095_v24  ;;  %2264 = vst.msk [vmem:[%s4935_s3 + $0x60] sm:$0xff] %vm2251_vm4, %v2214_v14  ;;  %v1216_v43 = vadd.f32 %v2812_v31, %v3917_v60  ;;  %v1706_v39 = vadd.f32 %v2959_v3, %v3917_v60  ;;  %v5099_v23 = vmax.f32 %v5098_v49, 0.0  ;;  %v2815_v14 = vpop.f32.mrb[68].mxu0  ;;  %v1710_v24 = vpop.f32.mrb[69].mxu1 }
 0x16b   :  { %v2167_v29 = vadd.f32 %v2118_v53, %v2020_v18  ;;  %v2071_v42 = vadd.f32 %v1924_v62, %v5097_v6  ;;  %2263 = vst.msk [vmem:[%s4935_s3 + $0x58] sm:$0xff] %vm2251_vm4, %v2213_v17  ;;  %v1211_v18 = vadd.f32 %v3917_v60, %v1210_v2  ;;  %v1701_v54 = vadd.f32 %v3917_v60, %v1700_v4  ;;  %v1220_v17 = vpop.f32.mrb[69].mxu0 }
 0x16c   :  { %v2166_v10 = vadd.f32 %v2117_v12, %v2019_v35  ;;  %v2070_v13 = vadd.f32 %v1923_v44, %v5099_v23  ;;  %v5100_v25 = vmax.f32 %v4127_v40, 0.0  ;;  %v1926_v21 = vmax.f32 %v1216_v43, 0.0  ;;  %v5104_v44 = vld [vmem:[#allocation20_spill] sm:$0xff]  ;;  %v2818_v23 = vpop.f32.mrb[70].mxu0 }
 0x16d   :  { %v2216_v36 = vmul.f32 0.25, %v2167_v29  ;;  %v2024_v7 = vmax.f32 %v1706_v39, 0.0  ;;  %v5102_v9 = vmax.f32 %v5101_v52, 0.0  ;;  %v1925_v37 = vmax.f32 %v1211_v18, 0.0  ;;  %v5107_v39 = vld [vmem:[#allocation22_spill] sm:$0xff]  ;;  %v5110_v52 = vld [vmem:[#allocation23_spill] sm:$0xff] }
 0x16e   :  { %v2120_v20 = vadd.f32 %v2071_v42, %v5100_v25  ;;  %v2215_v58 = vmul.f32 0.25, %v2166_v10  ;;  %v2023_v35 = vmax.f32 %v1701_v54, 0.0  ;;  %v5103_v53 = vmax.f32 %v4137_v34, 0.0  ;;  %v1230_v25 = vpop.f32.mrb[71].mxu0 }
 0x16f   :  { %v2119_v50 = vadd.f32 %v2070_v13, %v5102_v9  ;;  %2266 = vst.msk [vmem:[%s4935_s3 + $0x70] sm:$0xff] %vm2251_vm4, %v2216_v36  ;;  %v1226_v62 = vadd.f32 %v2815_v14, %v3917_v60  ;;  %v1716_v8 = vadd.f32 %v2962_v22, %v3917_v60  ;;  %v5105_v31 = vmax.f32 %v5104_v44, 0.0  ;;  %v2965_v13 = vpop.f32.mrb[70].mxu1  ;;  %v5112_v14 = vld [vmem:[#allocation28_spill] sm:$0xff]  ;;  %v2821_v44 = vpop.f32.mrb[72].mxu0 }
 0x170   :  { %v2169_v30 = vadd.f32 %v2120_v20, %v2022_v59  ;;  %v2073_v40 = vadd.f32 %v1926_v21, %v5103_v53  ;;  %2265 = vst.msk [vmem:[%s4935_s3 + $0x68] sm:$0xff] %vm2251_vm4, %v2215_v58  ;;  %v1221_v59 = vadd.f32 %v3917_v60, %v1220_v17  ;;  %v1711_v34 = vadd.f32 %v3917_v60, %v1710_v24  ;;  %v1720_v21 = vpop.f32.mrb[71].mxu1  ;;  %v5114_v17 = vld [vmem:[#allocation24_spill] sm:$0xff] }
 0x171   :  { %v2168_v12 = vadd.f32 %v2119_v50, %v2021_v16  ;;  %v2072_v3 = vadd.f32 %v1925_v37, %v5105_v31  ;;  %v5106_v15 = vmax.f32 %v4141_v46, 0.0  ;;  %v1928_v42 = vmax.f32 %v1226_v62, 0.0  ;;  %v2968_v31 = vpop.f32.mrb[72].mxu1 }
 0x172   :  { %v2218_v29 = vmul.f32 0.25, %v2169_v30  ;;  %v2026_v43 = vmax.f32 %v1716_v8, 0.0  ;;  %v5108_v4 = vmax.f32 %v5107_v39, 0.0  ;;  %v1927_v49 = vmax.f32 %v1221_v59, 0.0  ;;  %v5116_v59 = vld [vmem:[#allocation30_spill] sm:$0xff] }
 0x173   :  { %v2122_v6 = vadd.f32 %v2073_v40, %v5106_v15  ;;  %v2217_v2 = vmul.f32 0.25, %v2168_v12  ;;  %v2025_v16 = vmax.f32 %v1711_v34, 0.0  ;;  %v5109_v54 = vmax.f32 %v4150_v47, 0.0 }
 0x174   :  { %v2121_v10 = vadd.f32 %v2072_v3, %v5108_v4  ;;  %2268 = vst.msk [vmem:[%s4935_s3 + $0x80] sm:$0xff] %vm2251_vm4, %v2218_v29  ;;  %v1236_v36 = vadd.f32 %v2818_v23, %v3917_v60  ;;  %v1726_v20 = vadd.f32 %v2965_v13, %v3917_v60  ;;  %v5111_v9 = vmax.f32 %v5110_v52, 0.0  ;;  %v5118_v4 = vld [vmem:[#allocation25_spill] sm:$0xff] }
 0x175   :  { %v2171_v18 = vadd.f32 %v2122_v6, %v2024_v7  ;;  %v2075_v46 = vadd.f32 %v1928_v42, %v5109_v54  ;;  %2267 = vst.msk [vmem:[%s4935_s3 + $0x78] sm:$0xff] %vm2251_vm4, %v2217_v2  ;;  %v1231_v7 = vadd.f32 %v3917_v60, %v1230_v25  ;;  %v1721_v47 = vadd.f32 %v3917_v60, %v1720_v21  ;;  %v1240_v6 = vpop.f32.mrb[73].mxu0  ;;  %v1730_v2 = vpop.f32.mrb[73].mxu1  ;;  %v5122_v21 = vld [vmem:[#allocation26_spill] sm:$0xff] }
 0x176   :  { %v2170_v58 = vadd.f32 %v2121_v10, %v2023_v35  ;;  %v2074_v50 = vadd.f32 %v1927_v49, %v5111_v9  ;;  %v5113_v22 = vmax.f32 %v5112_v14, 0.0  ;;  %v1930_v53 = vmax.f32 %v1236_v36, 0.0 }
 0x177   :  { %v2220_v37 = vmul.f32 0.25, %v2171_v18  ;;  %v2028_v40 = vmax.f32 %v1726_v20, 0.0  ;;  %v5115_v8 = vmax.f32 %v5114_v17, 0.0  ;;  %v1929_v12 = vmax.f32 %v1231_v7, 0.0  ;;  %v5120_v18 = vld [vmem:[#allocation31_spill] sm:$0xff]  ;;  %v2971_v7 = vpop.f32.mrb[74].mxu1 }
 0x178   :  { %v2124_v30 = vadd.f32 %v2075_v46, %v5113_v22  ;;  %v2219_v62 = vmul.f32 0.25, %v2170_v58  ;;  %v2027_v35 = vmax.f32 %v1721_v47, 0.0  ;;  %v5117_v34 = vmax.f32 %v5116_v59, 0.0 }
 0x179   :  { %v2123_v24 = vadd.f32 %v2074_v50, %v5115_v8  ;;  %2270 = vst.msk [vmem:[%s4935_s3 + $0x90] sm:$0xff] %vm2251_vm4, %v2220_v37  ;;  %v1246_v15 = vadd.f32 %v2821_v44, %v3917_v60  ;;  %v1736_v42 = vadd.f32 %v2968_v31, %v3917_v60  ;;  %v5119_v10 = vmax.f32 %v5118_v4, 0.0  ;;  %v2824_v50 = vpop.f32.mrb[74].mxu0  ;;  %v5125_v8 = vld [vmem:[#allocation27_spill] sm:$0xff] }
 0x17a   :  { %v2173_v3 = vadd.f32 %v2124_v30, %v2026_v43  ;;  %v2077_v29 = vadd.f32 %v1930_v53, %v5117_v34  ;;  %2269 = vst.msk [vmem:[%s4935_s3 + $0x88] sm:$0xff] %vm2251_vm4, %v2219_v62  ;;  %v1241_v43 = vadd.f32 %v3917_v60, %v1240_v6  ;;  %v1731_v23 = vadd.f32 %v3917_v60, %v1730_v2  ;;  %v1250_v30 = vpop.f32.mrb[75].mxu0  ;;  %v1740_v62 = vpop.f32.mrb[75].mxu1 }
 0x17b   :  { %v2172_v39 = vadd.f32 %v2123_v24, %v2025_v16  ;;  %v2076_v49 = vadd.f32 %v1929_v12, %v5119_v10  ;;  %v5121_v54 = vmax.f32 %v5120_v18, 0.0  ;;  %v1932_v36 = vmax.f32 %v1246_v15, 0.0  ;;  %v2827_v2 = vpop.f32.mrb[76].mxu0  ;;  %v2974_v4 = vpop.f32.mrb[76].mxu1 }
 0x17c   :  { %v2222_v13 = vmul.f32 0.25, %v2173_v3  ;;  %v2030_v25 = vmax.f32 %v1736_v42, 0.0  ;;  %v5123_v58 = vmax.f32 %v5122_v21, 0.0  ;;  %v1931_v9 = vmax.f32 %v1241_v43, 0.0  ;;  %v1750_v18 = vpop.f32.mrb[77].mxu1 }
 0x17d   :  { %v2126_v46 = vadd.f32 %v2077_v29, %v5121_v54  ;;  %v2221_v20 = vmul.f32 0.25, %v2172_v39  ;;  %v2029_v16 = vmax.f32 %v1731_v23, 0.0  ;;  %v5124_v37 = vmax.f32 %v4206_v57, 0.0  ;;  %v4676_v57 = vld [vmem:[%s4934_s2] ss:$0 sm:$0xff]  ;;  %v1260_v23 = vpop.f32.mrb[77].mxu0 }
 0x17e   :  { %v2125_v52 = vadd.f32 %v2076_v49, %v5123_v58  ;;  %2272 = vst.msk [vmem:[%s4935_s3 + $0xa0] sm:$0xff] %vm2251_vm4, %v2222_v13  ;;  %v1256_v22 = vadd.f32 %v2824_v50, %v3917_v60  ;;  %v1746_v53 = vadd.f32 %v2971_v7, %v3917_v60  ;;  %v5126_v24 = vmax.f32 %v5125_v8, 0.0 }
 0x17f   :  { %v2175_v47 = vadd.f32 %v2126_v46, %v2028_v40  ;;  %v2079_v14 = vadd.f32 %v1932_v36, %v5124_v37  ;;  %2271 = vst.msk [vmem:[%s4935_s3 + $0x98] sm:$0xff] %vm2251_vm4, %v2221_v20  ;;  %v1251_v40 = vadd.f32 %v4676_v57, %v1250_v30  ;;  %v1741_v44 = vadd.f32 %v4676_v57, %v1740_v62  ;;  %v5131_v46 = vld [vmem:[#allocation32_spill] sm:$0xff]  ;;  %v2830_v30 = vpop.f32.mrb[78].mxu0 }
 0x180   :  { %v2174_v17 = vadd.f32 %v2125_v52, %v2027_v35  ;;  %v2078_v12 = vadd.f32 %v1931_v9, %v5126_v24  ;;  %v5127_v31 = vmax.f32 %v4223_v56, 0.0  ;;  %v1934_v59 = vmax.f32 %v1256_v22, 0.0  ;;  %v5128_v35 = vld [vmem:[#allocation29_spill] sm:$0xff]  ;;  %v1270_v24 = vpop.f32.mrb[79].mxu0 }
 0x181   :  { %v2224_v60 = vmul.f32 0.25, %v2175_v47  ;;  %v2032_v34 = vmax.f32 %v1746_v53, 0.0  ;;  %v5129_v15 = vmax.f32 %v5128_v35, 0.0  ;;  %v1933_v42 = vmax.f32 %v1251_v40, 0.0  ;;  %v5134_v47 = vld [vmem:[#allocation33_spill] sm:$0xff]  ;;  %v2977_v53 = vpop.f32.mrb[78].mxu1 }
 0x182   :  { %v2128_v3 = vadd.f32 %v2079_v14, %v5127_v31  ;;  %v2223_v29 = vmul.f32 0.25, %v2174_v17  ;;  %v2031_v39 = vmax.f32 %v1741_v44, 0.0  ;;  %v5130_v49 = vmax.f32 %v4233_v45, 0.0  ;;  %v1760_v40 = vpop.f32.mrb[79].mxu1 }
 0x183   :  { %v2127_v6 = vadd.f32 %v2078_v12, %v5129_v15  ;;  %2274 = vst.msk [vmem:[%s4935_s3 + $0xb0] sm:$0xff] %vm2251_vm4, %v2224_v60  ;;  %v1266_v43 = vadd.f32 %v4676_v57, %v2827_v2  ;;  %v1756_v13 = vadd.f32 %v4676_v57, %v2974_v4  ;;  %v5132_v36 = vmax.f32 %v5131_v46, 0.0 }
 0x184   :  { %v2177_v10 = vadd.f32 %v2128_v3, %v2030_v25  ;;  %v2081_v56 = vadd.f32 %v1934_v59, %v5130_v49  ;;  %2273 = vst.msk [vmem:[%s4935_s3 + $0xa8] sm:$0xff] %vm2251_vm4, %v2223_v29  ;;  %v1261_v25 = vadd.f32 %v4676_v57, %v1260_v23  ;;  %v1751_v45 = vadd.f32 %v4676_v57, %v1750_v18  ;;  %v2833_v49 = vpop.f32.mrb[80].mxu0 }
 0x185   :  { %v2176_v54 = vadd.f32 %v2127_v6, %v2029_v16  ;;  %v2080_v20 = vadd.f32 %v1933_v42, %v5132_v36  ;;  %v5133_v58 = vmax.f32 %v4237_v0, 0.0  ;;  %v1936_v9 = vmax.f32 %v1266_v43, 0.0  ;;  %v5139_v42 = vld [vmem:[#allocation34_spill] sm:$0xff]  ;;  %v5142_v36 = vld [vmem:[#allocation4_spill] sm:$0xff] }
 0x186   :  { %v2226_v21 = vmul.f32 0.25, %v2177_v10  ;;  %v2034_v50 = vmax.f32 %v1756_v13, 0.0  ;;  %v5135_v37 = vmax.f32 %v5134_v47, 0.0  ;;  %v1935_v22 = vmax.f32 %v1261_v25, 0.0  ;;  %v1280_v13 = vpop.f32.mrb[81].mxu0 }
 0x187   :  { %v2130_v52 = vadd.f32 %v2081_v56, %v5133_v58  ;;  %v2225_v7 = vmul.f32 0.25, %v2176_v54  ;;  %v2033_v16 = vmax.f32 %v1751_v45, 0.0  ;;  %v5136_v17 = vmax.f32 %v4246_v1, 0.0  ;;  %v2980_v56 = vpop.f32.mrb[80].mxu1  ;;  %v5144_v58 = vld [vmem:[#allocation36_spill] sm:$0xff] }
 0x188   :  { %v2129_v14 = vadd.f32 %v2080_v20, %v5135_v37  ;;  %2276 = vst.msk [vmem:[%s4935_s3 + $0xc0] sm:$0xff] %vm2251_vm4, %v2226_v21  ;;  %v1276_v8 = vadd.f32 %v4676_v57, %v2830_v30  ;;  %v1766_v12 = vadd.f32 %v4676_v57, %v2977_v53  ;;  %v5137_v60 = vmax.f32 %v4219_v28, 0.0  ;;  %v1770_v54 = vpop.f32.mrb[81].mxu1  ;;  %v5146_v37 = vld [vmem:[#allocation5_spill] sm:$0xff]  ;;  %v2836_v53 = vpop.f32.mrb[82].mxu0 }
 0x189   :  { %v2179_v62 = vadd.f32 %v2130_v52, %v2032_v34  ;;  %v2083_v0 = vadd.f32 %v1936_v9, %v5136_v17  ;;  %2275 = vst.msk [vmem:[%s4935_s3 + $0xb8] sm:$0xff] %vm2251_vm4, %v2225_v7  ;;  %v1271_v3 = vadd.f32 %v4676_v57, %v1270_v24  ;;  %v1761_v1 = vadd.f32 %v4676_v57, %v1760_v40 }
 0x18a   :  { %v2178_v44 = vadd.f32 %v2129_v14, %v2031_v39  ;;  %v2082_v31 = vadd.f32 %v1935_v22, %v5137_v60  ;;  %v5138_v34 = vmax.f32 %v4262_v5, 0.0  ;;  %v1938_v35 = vmax.f32 %v1276_v8, 0.0 }
 0x18b   :  { %v2228_v59 = vmul.f32 0.25, %v2179_v62  ;;  %v2036_v15 = vmax.f32 %v1766_v12, 0.0  ;;  %v5140_v2 = vmax.f32 %v5139_v42, 0.0  ;;  %v1937_v10 = vmax.f32 %v1271_v3, 0.0  ;;  %v2983_v62 = vpop.f32.mrb[82].mxu1  ;;  %v1290_v12 = vpop.f32.mrb[83].mxu0 }
 0x18c   :  { %v2132_v29 = vadd.f32 %v2083_v0, %v5138_v34  ;;  %v2227_v6 = vmul.f32 0.25, %v2178_v44  ;;  %v2035_v39 = vmax.f32 %v1761_v1, 0.0  ;;  %v5141_v43 = vmax.f32 %v4277_v11, 0.0  ;;  %v1780_v44 = vpop.f32.mrb[83].mxu1 }
 0x18d   :  { %v2131_v4 = vadd.f32 %v2082_v31, %v5140_v2  ;;  %2278 = vst.msk [vmem:[%s4935_s3 + $0xd0] sm:$0xff] %vm2251_vm4, %v2228_v59  ;;  %v1286_v23 = vadd.f32 %v4676_v57, %v2833_v49  ;;  %v1776_v18 = vadd.f32 %v4676_v57, %v2980_v56  ;;  %v5143_v20 = vmax.f32 %v5142_v36, 0.0  ;;  %v5149_v31 = vld [vmem:[#allocation8_spill] sm:$0xff]  ;;  %v5152_v2 = vld [vmem:[#allocation35_spill] sm:$0xff]  ;;  %v2839_v56 = vpop.f32.mrb[84].mxu0  ;;  %v5155_v36 = vld [vmem:[#allocation37_spill] sm:$0xff] }
 0x18e   :  { %v2181_v28 = vadd.f32 %v2132_v29, %v2034_v50  ;;  %v2085_v5 = vadd.f32 %v1938_v35, %v5141_v43  ;;  %2277 = vst.msk [vmem:[%s4935_s3 + $0xc8] sm:$0xff] %vm2251_vm4, %v2227_v6  ;;  %v1281_v45 = vadd.f32 %v4676_v57, %v1280_v13  ;;  %v1771_v11 = vadd.f32 %v4676_v57, %v1770_v54  ;;  %v1300_v13 = vpop.f32.mrb[85].mxu0 }
 0x18f   :  { %v2180_v46 = vadd.f32 %v2131_v4, %v2033_v16  ;;  %v2084_v25 = vadd.f32 %v1937_v10, %v5143_v20  ;;  %v5145_v52 = vmax.f32 %v5144_v58, 0.0  ;;  %v1940_v50 = vmax.f32 %v1286_v23, 0.0 }
 0x190   :  { %v2230_v21 = vmul.f32 0.25, %v2181_v28  ;;  %v2038_v7 = vmax.f32 %v1776_v18, 0.0  ;;  %v5147_v14 = vmax.f32 %v5146_v37, 0.0  ;;  %v1939_v30 = vmax.f32 %v1281_v45, 0.0  ;;  %v2986_v28 = vpop.f32.mrb[84].mxu1 }
 0x191   :  { %v2134_v9 = vadd.f32 %v2085_v5, %v5145_v52  ;;  %v2229_v47 = vmul.f32 0.25, %v2180_v46  ;;  %v2037_v16 = vmax.f32 %v1771_v11, 0.0  ;;  %v5148_v0 = vmax.f32 %v4294_v26, 0.0  ;;  %v1790_v54 = vpop.f32.mrb[85].mxu1 }
 0x192   :  { %v2133_v22 = vadd.f32 %v2084_v25, %v5147_v14  ;;  %2280 = vst.msk [vmem:[%s4935_s3 + $0xe0] sm:$0xff] %vm2251_vm4, %v2230_v21  ;;  %v1296_v24 = vadd.f32 %v4676_v57, %v2836_v53  ;;  %v1786_v40 = vadd.f32 %v4676_v57, %v2983_v62  ;;  %v5150_v3 = vmax.f32 %v5149_v31, 0.0  ;;  %v2989_v53 = vpop.f32.mrb[86].mxu1 }
 0x193   :  { %v2183_v17 = vadd.f32 %v2134_v9, %v2036_v15  ;;  %v2087_v8 = vadd.f32 %v1940_v50, %v5148_v0  ;;  %2279 = vst.msk [vmem:[%s4935_s3 + $0xd8] sm:$0xff] %vm2251_vm4, %v2229_v47  ;;  %v1291_v59 = vadd.f32 %v4676_v57, %v1290_v12  ;;  %v1781_v26 = vadd.f32 %v4676_v57, %v1780_v44 }
 0x194   :  { %v2182_v60 = vadd.f32 %v2133_v22, %v2035_v39  ;;  %v2086_v1 = vadd.f32 %v1939_v30, %v5150_v3  ;;  %v5151_v29 = vmax.f32 %v4307_v61, 0.0  ;;  %v1942_v15 = vmax.f32 %v1296_v24, 0.0  ;;  %v2842_v22 = vpop.f32.mrb[86].mxu0  ;;  %v1800_v24 = vpop.f32.mrb[87].mxu1 }
 0x195   :  { %v2232_v34 = vmul.f32 0.25, %v2183_v17  ;;  %v2040_v6 = vmax.f32 %v1786_v40, 0.0  ;;  %v5153_v4 = vmax.f32 %v5152_v2, 0.0  ;;  %v1941_v49 = vmax.f32 %v1291_v59, 0.0  ;;  %v1310_v0 = vpop.f32.mrb[87].mxu0  ;;  %v5161_v40 = vld [vmem:[#allocation39_spill] sm:$0xff] }
 0x196   :  { %v2136_v35 = vadd.f32 %v2087_v8, %v5151_v29  ;;  %v2231_v42 = vmul.f32 0.25, %v2182_v60  ;;  %v2039_v39 = vmax.f32 %v1781_v26, 0.0  ;;  %v5154_v5 = vmax.f32 %v4317_v33, 0.0  ;;  %v2845_v2 = vpop.f32.mrb[88].mxu0 }
 0x197   :  { %v2135_v10 = vadd.f32 %v2086_v1, %v5153_v4  ;;  %2282 = vst.msk [vmem:[%s4935_s3 + $0xf0] sm:$0xff] %vm2251_vm4, %v2232_v34  ;;  %v1306_v23 = vadd.f32 %v4676_v57, %v2839_v56  ;;  %v1796_v18 = vadd.f32 %v4676_v57, %v2986_v28  ;;  %v5156_v20 = vmax.f32 %v5155_v36, 0.0  ;;  %v1320_v28 = vpop.f32.mrb[89].mxu0  ;;  %v5169_v36 = vld [vmem:[#allocation45_spill] sm:$0xff] }
 0x198   :  { %v2185_v43 = vadd.f32 %v2136_v35, %v2038_v7  ;;  %v2089_v61 = vadd.f32 %v1942_v15, %v5154_v5  ;;  %2281 = vst.msk [vmem:[%s4935_s3 + $0xe8] sm:$0xff] %vm2251_vm4, %v2231_v42  ;;  %v1301_v45 = vadd.f32 %v4676_v57, %v1300_v13  ;;  %v1791_v33 = vadd.f32 %v4676_v57, %v1790_v54  ;;  %v5158_v7 = vld [vmem:[#allocation38_spill] sm:$0xff]  ;;  %v5164_v35 = vld [vmem:[#allocation40_spill] sm:$0xff] }
 0x199   :  { %v2184_v46 = vadd.f32 %v2135_v10, %v2037_v16  ;;  %v2088_v25 = vadd.f32 %v1941_v49, %v5156_v20  ;;  %v5157_v21 = vmax.f32 %v4321_v38, 0.0  ;;  %v1944_v52 = vmax.f32 %v1306_v23, 0.0  ;;  %v2992_v10 = vpop.f32.mrb[88].mxu1  ;;  %v5167_v23 = vld [vmem:[#allocation41_spill] sm:$0xff] }
 0x19a   :  { %v2234_v11 = vmul.f32 0.25, %v2185_v43  ;;  %v2042_v9 = vmax.f32 %v1796_v18, 0.0  ;;  %v5159_v47 = vmax.f32 %v5158_v7, 0.0  ;;  %v1943_v14 = vmax.f32 %v1301_v45, 0.0  ;;  %v1810_v5 = vpop.f32.mrb[89].mxu1 }
 0x19b   :  { %v2138_v58 = vadd.f32 %v2089_v61, %v5157_v21  ;;  %v2233_v50 = vmul.f32 0.25, %v2184_v46  ;;  %v2041_v30 = vmax.f32 %v1791_v33, 0.0  ;;  %v5160_v62 = vmax.f32 %v4330_v19, 0.0  ;;  %v5171_v21 = vld [vmem:[#allocation42_spill] sm:$0xff] }
 0x19c   :  { %v2137_v37 = vadd.f32 %v2088_v25, %v5159_v47  ;;  %2284 = vst.msk [vmem:[%s4935_s3 + $0x100] sm:$0xff] %vm2251_vm4, %v2234_v11  ;;  %v1316_v17 = vadd.f32 %v4676_v57, %v2842_v22  ;;  %v1806_v8 = vadd.f32 %v4676_v57, %v2989_v53  ;;  %v5162_v44 = vmax.f32 %v5161_v40, 0.0  ;;  %v2995_v47 = vpop.f32.mrb[90].mxu1 }
 0x19d   :  { %v2187_v16 = vadd.f32 %v2138_v58, %v2040_v6  ;;  %v2091_v38 = vadd.f32 %v1944_v52, %v5160_v62  ;;  %2283 = vst.msk [vmem:[%s4935_s3 + $0xf8] sm:$0xff] %vm2251_vm4, %v2233_v50  ;;  %v1311_v31 = vadd.f32 %v4676_v57, %v1310_v0  ;;  %v1801_v19 = vadd.f32 %v4676_v57, %v1800_v24  ;;  %v2848_v50 = vpop.f32.mrb[90].mxu0  ;;  %v1820_v62 = vpop.f32.mrb[91].mxu1 }
 0x19e   :  { %v2186_v12 = vadd.f32 %v2137_v37, %v2039_v39  ;;  %v2090_v60 = vadd.f32 %v1943_v14, %v5162_v44  ;;  %v5163_v1 = vmax.f32 %v4344_v48, 0.0  ;;  %v1946_v26 = vmax.f32 %v1316_v17, 0.0  ;;  %v1330_v53 = vpop.f32.mrb[91].mxu0  ;;  %v5174_v17 = vld [vmem:[#allocation43_spill] sm:$0xff] }
 0x19f   :  { %v2236_v3 = vmul.f32 0.25, %v2187_v16  ;;  %v2044_v34 = vmax.f32 %v1806_v8, 0.0  ;;  %v5165_v15 = vmax.f32 %v5164_v35, 0.0  ;;  %v1945_v42 = vmax.f32 %v1311_v31, 0.0  ;;  %v2998_v35 = vpop.f32.mrb[92].mxu1 }
 0x1a0   :  { %v2140_v59 = vadd.f32 %v2091_v38, %v5163_v1  ;;  %v2235_v29 = vmul.f32 0.25, %v2186_v12  ;;  %v2043_v4 = vmax.f32 %v1801_v19, 0.0  ;;  %v5166_v56 = vmax.f32 %v4357_v51, 0.0 }
 0x1a1   :  { %v2139_v6 = vadd.f32 %v2090_v60, %v5165_v15  ;;  %2286 = vst.msk [vmem:[%s4935_s3 + $0x110] sm:$0xff] %vm2251_vm4, %v2236_v3  ;;  %v1326_v39 = vadd.f32 %v4676_v57, %v2845_v2  ;;  %v1816_v43 = vadd.f32 %v4676_v57, %v2992_v10  ;;  %v5168_v13 = vmax.f32 %v5167_v23, 0.0  ;;  %v5177_v3 = vld [vmem:[#allocation44_spill] sm:$0xff]  ;;  %v5183_v23 = vld [vmem:[#allocation51_spill] sm:$0xff] }
 0x1a2   :  { %v2189_v49 = vadd.f32 %v2140_v59, %v2042_v9  ;;  %v2093_v48 = vadd.f32 %v1946_v26, %v5166_v56  ;;  %2285 = vst.msk [vmem:[%s4935_s3 + $0x108] sm:$0xff] %vm2251_vm4, %v2235_v29  ;;  %v1321_v54 = vadd.f32 %v4676_v57, %v1320_v28  ;;  %v1811_v51 = vadd.f32 %v4676_v57, %v1810_v5 }
 0x1a3   :  { %v2188_v61 = vadd.f32 %v2139_v6, %v2041_v30  ;;  %v2092_v18 = vadd.f32 %v1945_v42, %v5168_v13  ;;  %v5170_v20 = vmax.f32 %v5169_v36, 0.0  ;;  %v1948_v45 = vmax.f32 %v1326_v39, 0.0  ;;  %v5179_v6 = vld [vmem:[#allocation50_spill] sm:$0xff]  ;;  %v5185_v36 = vld [vmem:[#allocation47_spill] sm:$0xff] }
 0x1a4   :  { %v2238_v46 = vmul.f32 0.25, %v2189_v49  ;;  %v2046_v33 = vmax.f32 %v1816_v43, 0.0  ;;  %v5172_v58 = vmax.f32 %v5171_v21, 0.0  ;;  %v1947_v9 = vmax.f32 %v1321_v54, 0.0  ;;  %v1830_v49 = vpop.f32.mrb[93].mxu1 }
 0x1a5   :  { %v2142_v25 = vadd.f32 %v2093_v48, %v5170_v20  ;;  %v2237_v11 = vmul.f32 0.25, %v2188_v61  ;;  %v2045_v7 = vmax.f32 %v1811_v51, 0.0  ;;  %v5173_v14 = vmax.f32 %v4372_v32, 0.0  ;;  %v5181_v48 = vld [vmem:[#allocation46_spill] sm:$0xff]  ;;  %v3001_v21 = vpop.f32.mrb[94].mxu1 }
 0x1a6   :  { %v2141_v52 = vadd.f32 %v2092_v18, %v5172_v58  ;;  %2288 = vst.msk [vmem:[%s4935_s3 + $0x120] sm:$0xff] %vm2251_vm4, %v2238_v46  ;;  %v1336_v30 = vadd.f32 %v4676_v57, %v2848_v50  ;;  %v1826_v16 = vadd.f32 %v4676_v57, %v2995_v47  ;;  %v5175_v0 = vmax.f32 %v5174_v17, 0.0 }
 0x1a7   :  { %v2191_v37 = vadd.f32 %v2142_v25, %v2044_v34  ;;  %v2095_v22 = vadd.f32 %v1948_v45, %v5173_v14  ;;  %2287 = vst.msk [vmem:[%s4935_s3 + $0x118] sm:$0xff] %vm2251_vm4, %v2237_v11  ;;  %v1331_v24 = vadd.f32 %v4676_v57, %v1330_v53  ;;  %v1821_v32 = vadd.f32 %v4676_v57, %v1820_v62  ;;  %v2851_v34 = vpop.f32.mrb[92].mxu0 }
 0x1a8   :  { %v2190_v38 = vadd.f32 %v2141_v52, %v2043_v4  ;;  %v2094_v8 = vadd.f32 %v1947_v9, %v5175_v0  ;;  %v5176_v40 = vmax.f32 %v4384_v27, 0.0  ;;  %v1950_v60 = vmax.f32 %v1336_v30, 0.0  ;;  %v1340_v4 = vpop.f32.mrb[93].mxu0 }
 0x1a9   :  { %v2240_v12 = vmul.f32 0.25, %v2191_v37  ;;  %v2048_v31 = vmax.f32 %v1826_v16, 0.0  ;;  %v5178_v1 = vmax.f32 %v5177_v3, 0.0  ;;  %v1949_v26 = vmax.f32 %v1331_v24, 0.0  ;;  %v1840_v37 = vpop.f32.mrb[95].mxu1 }
 0x1aa   :  { %v2144_v44 = vadd.f32 %v2095_v22, %v5176_v40  ;;  %v2239_v19 = vmul.f32 0.25, %v2190_v38  ;;  %v2047_v29 = vmax.f32 %v1821_v32, 0.0  ;;  %v5180_v42 = vmax.f32 %v5179_v6, 0.0  ;;  %v5188_v22 = vld [vmem:[#allocation48_spill] sm:$0xff]  ;;  %v5191_v32 = vld [vmem:[#allocation49_spill] sm:$0xff] }
 0x1ab   :  { %v2143_v59 = vadd.f32 %v2094_v8, %v5178_v1  ;;  %2290 = vst.msk [vmem:[%s4935_s3 + $0x130] sm:$0xff] %vm2251_vm4, %v2240_v12  ;;  %v1346_v2 = vadd.f32 %v4676_v57, %v2851_v34  ;;  %v1836_v10 = vadd.f32 %v4676_v57, %v2998_v35  ;;  %v5182_v39 = vmax.f32 %v5181_v48, 0.0  ;;  %v5193_v1 = vld [vmem:[#allocation54_spill] sm:$0xff]  ;;  %v5195_v6 = vld [vmem:[#allocation52_spill] sm:$0xff]  ;;  %v5198_v48 = vld [vmem:[#allocation55_spill] sm:$0xff] }
 0x1ac   :  { %v2193_v15 = vadd.f32 %v2144_v44, %v2046_v33  ;;  %v2097_v27 = vadd.f32 %v1950_v60, %v5180_v42  ;;  %2289 = vst.msk [vmem:[%s4935_s3 + $0x128] sm:$0xff] %vm2251_vm4, %v2239_v19  ;;  %v1341_v43 = vadd.f32 %v4676_v57, %v1340_v4  ;;  %v1831_v5 = vadd.f32 %v4676_v57, %v1830_v49  ;;  %v2854_v33 = vpop.f32.mrb[94].mxu0  ;;  %v3004_v19 = vpop.f32.mrb[96].mxu1 }
 0x1ad   :  { %v2192_v56 = vadd.f32 %v2143_v59, %v2045_v7  ;;  %v2096_v28 = vadd.f32 %v1949_v26, %v5182_v39  ;;  %v5184_v13 = vmax.f32 %v5183_v23, 0.0  ;;  %v1952_v54 = vmax.f32 %v1346_v2, 0.0  ;;  %v1350_v7 = vpop.f32.mrb[95].mxu0  ;;  %v1850_v35 = vpop.f32.mrb[97].mxu1 }
 0x1ae   :  { %v2242_v61 = vmul.f32 0.25, %v2193_v15  ;;  %v2050_v51 = vmax.f32 %v1836_v10, 0.0  ;;  %v5186_v20 = vmax.f32 %v5185_v36, 0.0  ;;  %v1951_v45 = vmax.f32 %v1341_v43, 0.0  ;;  %v2857_v60 = vpop.f32.mrb[96].mxu0  ;;  %v5197_v10 = vld [vmem:[#allocation58_spill] sm:$0xff] }
 0x1af   :  { %v2146_v18 = vadd.f32 %v2097_v27, %v5184_v13  ;;  %v2241_v46 = vmul.f32 0.25, %v2192_v56  ;;  %v2049_v11 = vmax.f32 %v1831_v5, 0.0  ;;  %v5187_v52 = vmax.f32 %v4402_v55, 0.0  ;;  %v1360_v34 = vpop.f32.mrb[97].mxu0  ;;  %v5200_v5 = vld [vmem:[#allocation56_spill] sm:$0xff]  ;;  %v5201_v13 = vld [vmem:[#allocation53_spill] sm:$0xff] }
 0x1b0   :  { %v2145_v25 = vadd.f32 %v2096_v28, %v5186_v20  ;;  %2292 = vst.msk [vmem:[%s4935_s3 + $0x140] sm:$0xff] %vm2251_vm4, %v2242_v61  ;;  %v1356_v50 = vadd.f32 %v4676_v57, %v2854_v33  ;;  %v1846_v47 = vadd.f32 %v4676_v57, %v3001_v21  ;;  %v5189_v30 = vmax.f32 %v5188_v22, 0.0 }
 0x1b1   :  { %v2195_v58 = vadd.f32 %v2146_v18, %v2048_v31  ;;  %v2099_v9 = vadd.f32 %v1952_v54, %v5187_v52  ;;  %2291 = vst.msk [vmem:[%s4935_s3 + $0x138] sm:$0xff] %vm2251_vm4, %v2241_v46  ;;  %v1351_v16 = vadd.f32 %v4676_v57, %v1350_v7  ;;  %v1841_v55 = vadd.f32 %v4676_v57, %v1840_v37 }
 0x1b2   :  { %v2194_v14 = vadd.f32 %v2145_v25, %v2047_v29  ;;  %v2098_v53 = vadd.f32 %v1951_v45, %v5189_v30  ;;  %v5190_v38 = vmax.f32 %v4415_v63, 0.0  ;;  %v1954_v0 = vmax.f32 %v1356_v50, 0.0  ;;  %v5203_v25 = vld [vmem:[#allocation57_spill] sm:$0xff] }
 0x1b3   :  { %v2244_v62 = vmul.f32 0.25, %v2195_v58  ;;  %v2052_v8 = vmax.f32 %v1846_v47, 0.0  ;;  %v5192_v12 = vmax.f32 %v5191_v32, 0.0  ;;  %v1953_v44 = vmax.f32 %v1351_v16, 0.0 }
 0x1b4   :  { %v2148_v17 = vadd.f32 %v2099_v9, %v5190_v38  ;;  %v2243_v24 = vmul.f32 0.25, %v2194_v14  ;;  %v2051_v31 = vmax.f32 %v1841_v55, 0.0  ;;  %v5194_v59 = vmax.f32 %v5193_v1, 0.0 }
 0x1b5   :  { %v2147_v40 = vadd.f32 %v2098_v53, %v5192_v12  ;;  %2294 = vst.msk [vmem:[%s4935_s3 + $0x150] sm:$0xff] %vm2251_vm4, %v2244_v62  ;;  %v1366_v26 = vadd.f32 %v4676_v57, %v2857_v60  ;;  %v1856_v29 = vadd.f32 %v4676_v57, %v3004_v19  ;;  %v5196_v42 = vmax.f32 %v5195_v6, 0.0 }
 0x1b6   :  { %v2197_v3 = vadd.f32 %v2148_v17, %v2050_v51  ;;  %v2101_v63 = vadd.f32 %v1954_v0, %v5194_v59  ;;  %2293 = vst.msk [vmem:[%s4935_s3 + $0x148] sm:$0xff] %vm2251_vm4, %v2243_v24  ;;  %v1361_v2 = vadd.f32 %v4676_v57, %v1360_v34  ;;  %v1851_v4 = vadd.f32 %v4676_v57, %v1850_v35 }
 0x1b7   :  { %v2196_v15 = vadd.f32 %v2147_v40, %v2049_v11  ;;  %v2100_v27 = vadd.f32 %v1953_v44, %v5196_v42  ;;  %v1907_v49 = vmax.f32 %v5197_v10, 0.0  ;;  %v5199_v39 = vmax.f32 %v5198_v48, 0.0 }
 0x1b8   :  { %v2246_v56 = vmul.f32 0.25, %v2197_v3  ;;  %v1956_v43 = vmax.f32 %v1366_v26, 0.0  ;;  %v1906_v61 = vmax.f32 %v5200_v5, 0.0  ;;  %v5202_v18 = vmax.f32 %v5201_v13, 0.0 }
 0x1b9   :  { %v2150_v28 = vadd.f32 %v2101_v63, %v5199_v39  ;;  %v2245_v23 = vmul.f32 0.25, %v2196_v15  ;;  %v1955_v51 = vmax.f32 %v1361_v2, 0.0  ;;  %v2005_v46 = vmax.f32 %v4457_v41, 0.0 }
 0x1ba   :  { %v2149_v54 = vadd.f32 %v2100_v27, %v5202_v18  ;;  %2296 = vst.msk [vmem:[%s4935_s3 + $0x160] sm:$0xff] %vm2251_vm4, %v2246_v56  ;;  %v2103_v36 = vadd.f32 %v1956_v43, %v1907_v49  ;;  %v2054_v20 = vmax.f32 %v1856_v29, 0.0  ;;  %v2004_v45 = vmax.f32 %v5203_v25, 0.0 }
 0x1bb   :  { %v2199_v57 = vadd.f32 %v2150_v28, %v2052_v8  ;;  %2295 = vst.msk [vmem:[%s4935_s3 + $0x158] sm:$0xff] %vm2251_vm4, %v2245_v23  ;;  %v2102_v11 = vadd.f32 %v1955_v51, %v1906_v61  ;;  %v2053_v21 = vmax.f32 %v1851_v4, 0.0 }
 0x1bc   :  { %v2198_v33 = vadd.f32 %v2149_v54, %v2051_v31  ;;  %v2152_v41 = vadd.f32 %v2103_v36, %v2005_v46 }
 0x1bd   :  { %v2248_v58 = vmul.f32 0.25, %v2199_v57  ;;  %v2151_v9 = vadd.f32 %v2102_v11, %v2004_v45 }
 0x1be   :  { %v2247_v52 = vmul.f32 0.25, %v2198_v33  ;;  %v2201_v50 = vadd.f32 %v2152_v41, %v2054_v20 }
 0x1bf   :  { %2298 = vst.msk [vmem:[%s4935_s3 + $0x170] sm:$0xff] %vm2251_vm4, %v2248_v58  ;;  %v2200_v7 = vadd.f32 %v2151_v9, %v2053_v21 }
 0x1c0   :  { %2297 = vst.msk [vmem:[%s4935_s3 + $0x168] sm:$0xff] %vm2251_vm4, %v2247_v52  ;;  %v2250_v47 = vmul.f32 0.25, %v2201_v50 }
 0x1c1   :  { %v2249_v37 = vmul.f32 0.25, %v2200_v7 }
 0x1c2   :  { %2300 = vst.msk [vmem:[%s4935_s3 + $0x180] sm:$0xff] %vm2251_vm4, %v2250_v47 }
 0x1c3   :  { %2299 = vst.msk [vmem:[%s4935_s3 + $0x178] sm:$0xff] %vm2251_vm4, %v2249_v37 }

// kernel: net_forward.3
= control target key start
LH: loop header
LB: loop body
LE: loop exit
PB: predicated region body
PF: predicated region fallthrough
CT: control target
= control target key end

     0   :  { %v3272_v3 = vmov 0.0|0.0   ;;  %vm115_vm0 = vcmask 588800   ;;  %s4045_s0 = inlined_call_operand.vmem [shape: f32[200,200], index: 0, kind: input, shape index: {}]   ;;  %s4046_s1 = inlined_call_operand.vmem [shape: f32[200,16], index: 1, kind: input, shape index: {}]   ;;  %s4047_s2 = inlined_call_operand.vmem [shape: f32[1,16], index: 2, kind: input, shape index: {}]   ;;  %s4048_s3 = inlined_call_operand.vmem [shape: f32[400,128], index: 3, kind: input, shape index: {}]   ;;  %s4049_s4 = inlined_call_operand.vmem [shape: f32[1,128], index: 4, kind: input, shape index: {}]   ;;  %s4050_s5 = inlined_call_operand.vmem [shape: f32[128,128], index: 5, kind: input, shape index: {}]   ;;  %s4051_s6 = inlined_call_operand.vmem [shape: f32[1,128], index: 6, kind: input, shape index: {}]   ;;  %s4052_s7 = inlined_call_operand.vmem [shape: f32[128,10], index: 7, kind: input, shape index: {}]   ;;  %s4053_s8 = inlined_call_operand.vmem [shape: f32[1,10], index: 8, kind: input, shape index: {}]   ;;  %s4054_s9 = inlined_call_operand.hbm [shape: f32[2,10], index: 9, kind: output, shape index: {}]  }
   0x1   :  { %v83_v0 = vld [vmem:[%s4046_s1] sm:$0xff]  ;;  %v84_v1 = vld [vmem:[%s4046_s1 + $0x8] sm:$0xff]  ;;  %v85_v2 = vld [vmem:[%s4046_s1 + $0x10] sm:$0xff]  ;;  %3036 = vmatprep.subr.bf16.mxu0 %v3272_v3  ;;  %3072 = vmatprep.subr.bf16.mxu1 %v3272_v3 }
   0x2   :  { %v3037_v4 = vpack.c.bf16 %v84_v1, %v83_v0  ;;  %v86_v5 = vld [vmem:[%s4046_s1 + $0x18] sm:$0xff]  ;;  %v87_v7 = vld [vmem:[%s4046_s1 + $0x20] sm:$0xff]  ;;  %v88_v8 = vld [vmem:[%s4046_s1 + $0x28] sm:$0xff] }
   0x3   :  { %v3040_v6 = vpack.c.bf16 %v86_v5, %v85_v2  ;;  %v3043_v9 = vpack.c.bf16 %v88_v8, %v87_v7  ;;  %v89_v10 = vld [vmem:[%s4046_s1 + $0x30] sm:$0xff]  ;;  %v90_v11 = vld [vmem:[%s4046_s1 + $0x38] sm:$0xff]  ;;  %v34_v12 = vld [vmem:[%s4045_s0 + $0x8] sm:$0xff] }
   0x4   :  { %3038 = vmatpush1.bf16.msra.mxu0 %v3037_v4  ;;  %2629 = vmatprep.mubr.msk.f32.mxu0 %vm115_vm0, %v34_v12  ;;  %v3046_v13 = vpack.c.bf16 %v90_v11, %v89_v10  ;;  %v91_v14 = vld [vmem:[%s4046_s1 + $0x40] sm:$0xff]  ;;  %v92_v15 = vld [vmem:[%s4046_s1 + $0x48] sm:$0xff]  ;;  %v93_v17 = vld [vmem:[%s4046_s1 + $0x50] sm:$0xff] }
   0x5   :  { %3039 = vmatprep.subr.bf16.mxu0 %v3272_v3  ;;  %v3049_v16 = vpack.c.bf16 %v92_v15, %v91_v14  ;;  %v94_v18 = vld [vmem:[%s4046_s1 + $0x58] sm:$0xff]  ;;  %v95_v20 = vld [vmem:[%s4046_s1 + $0x60] sm:$0xff]  ;;  %v96_v21 = vld [vmem:[%s4046_s1 + $0x68] sm:$0xff] }
   0x6   :  { %v3052_v19 = vpack.c.bf16 %v94_v18, %v93_v17  ;;  %v3055_v22 = vpack.c.bf16 %v96_v21, %v95_v20  ;;  %v97_v23 = vld [vmem:[%s4046_s1 + $0x70] sm:$0xff]  ;;  %v98_v24 = vld [vmem:[%s4046_s1 + $0x78] sm:$0xff] }
   0x8   :  { %3041 = vmatpush1.bf16.msra.mxu0 %v3040_v6 }
   0x9   :  { %3042 = vmatprep.subr.bf16.mxu0 %v3272_v3 }
   0xc   :  { %3044 = vmatpush1.bf16.msra.mxu0 %v3043_v9 }
   0xd   :  { %3045 = vmatprep.subr.bf16.mxu0 %v3272_v3 }
  0x10   :  { %3047 = vmatpush1.bf16.msra.mxu0 %v3046_v13 }
  0x11   :  { %3048 = vmatprep.subr.bf16.mxu0 %v3272_v3 }
  0x14   :  { %3050 = vmatpush1.bf16.msra.mxu0 %v3049_v16 }
  0x15   :  { %3051 = vmatprep.subr.bf16.mxu0 %v3272_v3 }
  0x18   :  { %3053 = vmatpush1.bf16.msra.mxu0 %v3052_v19 }
  0x19   :  { %3054 = vmatprep.subr.bf16.mxu0 %v3272_v3 }
  0x1a   :  { %14 = vsyncpa [#allocation3], 0  ;;  %v3058_v25 = vpack.c.bf16 %v98_v24, %v97_v23  ;;  %v99_v26 = vld [vmem:[%s4046_s1 + $0x80] sm:$0xff]  ;;  %v100_v27 = vld [vmem:[%s4046_s1 + $0x88] sm:$0xff]  ;;  %v3273_v38 = vmov 0.0   ;;  %vm3274_vm1 = vmmov 0  }
  0x1b   :  { %v3061_v28 = vpack.c.bf16 %v100_v27, %v99_v26  ;;  %v101_v29 = vld [vmem:[%s4046_s1 + $0x90] sm:$0xff]  ;;  %v102_v30 = vld [vmem:[%s4046_s1 + $0x98] sm:$0xff]  ;;  %v103_v32 = vld [vmem:[%s4046_s1 + $0xa0] sm:$0xff]  ;;  %2795 = vmatprep.mubr.msk.f32.mxu1 %vm3274_vm1, %v3273_v38  ;;  %vm413_vm2 = vcmask 1045504   ;;  %vm447_vm3 = vcmask 1043456   ;;  %vm481_vm4 = vcmask 1041408  }
  0x1c   :  { %3056 = vmatpush1.bf16.msra.mxu0 %v3055_v22  ;;  %v3064_v31 = vpack.c.bf16 %v102_v30, %v101_v29  ;;  %v104_v33 = vld [vmem:[%s4046_s1 + $0xa8] sm:$0xff]  ;;  %v105_v35 = vld [vmem:[%s4046_s1 + $0xb0] sm:$0xff]  ;;  %v106_v36 = vld [vmem:[%s4046_s1 + $0xb8] sm:$0xff]  ;;  %vm519_vm5 = vcmask 130048   ;;  %s3275_s26 = smov [#allocation2]   ;;  %vm2612_vm6 = vcmask 74752  }
  0x1d   :  { %3057 = vmatprep.subr.bf16.mxu0 %v3272_v3  ;;  %v3067_v34 = vpack.c.bf16 %v104_v33, %v103_v32  ;;  %v3070_v37 = vpack.c.bf16 %v106_v36, %v105_v35  ;;  %v107_v39 = vld [vmem:[%s4046_s1 + $0xc0] sm:$0xff]  ;;  %v36_v41 = vld [vmem:[%s4045_s0 + $0x18] sm:$0xff]  ;;  %v35_v42 = vld [vmem:[%s4045_s0 + $0x10] sm:$0xff] }
  0x1e   :  { %v33_v40 = vld [vmem:[%s4045_s0] sm:$0xff]  ;;  %v38_v43 = vld [vmem:[%s4045_s0 + $0x28] sm:$0xff]  ;;  %v40_v45 = vld [vmem:[%s4045_s0 + $0x38] sm:$0xff] }
  0x1f   :  { %v37_v44 = vld [vmem:[%s4045_s0 + $0x20] sm:$0xff]  ;;  %v39_v46 = vld [vmem:[%s4045_s0 + $0x30] sm:$0xff]  ;;  %v42_v47 = vld [vmem:[%s4045_s0 + $0x48] sm:$0xff] }
  0x20   :  { %3059 = vmatpush1.bf16.msra.mxu0 %v3058_v25  ;;  %v41_v48 = vld [vmem:[%s4045_s0 + $0x40] sm:$0xff]  ;;  %v44_v49 = vld [vmem:[%s4045_s0 + $0x58] sm:$0xff]  ;;  %v43_v50 = vld [vmem:[%s4045_s0 + $0x50] sm:$0xff] }
  0x21   :  { %3060 = vmatprep.subr.bf16.mxu0 %v3272_v3  ;;  %v46_v51 = vld [vmem:[%s4045_s0 + $0x68] sm:$0xff]  ;;  %v45_v52 = vld [vmem:[%s4045_s0 + $0x60] sm:$0xff]  ;;  %v48_v53 = vld [vmem:[%s4045_s0 + $0x78] sm:$0xff] }
  0x22   :  { %v47_v54 = vld [vmem:[%s4045_s0 + $0x70] sm:$0xff]  ;;  %v50_v55 = vld [vmem:[%s4045_s0 + $0x88] sm:$0xff]  ;;  %v49_v56 = vld [vmem:[%s4045_s0 + $0x80] sm:$0xff] }
  0x23   :  { %v52_v57 = vld [vmem:[%s4045_s0 + $0x98] sm:$0xff]  ;;  %v51_v58 = vld [vmem:[%s4045_s0 + $0x90] sm:$0xff]  ;;  %v54_v59 = vld [vmem:[%s4045_s0 + $0xa8] sm:$0xff] }
  0x24   :  { %3062 = vmatpush1.bf16.msra.mxu0 %v3061_v28  ;;  %v53_v60 = vld [vmem:[%s4045_s0 + $0xa0] sm:$0xff]  ;;  %v56_v61 = vld [vmem:[%s4045_s0 + $0xb8] sm:$0xff]  ;;  %v55_v62 = vld [vmem:[%s4045_s0 + $0xb0] sm:$0xff] }
  0x25   :  { %3063 = vmatprep.subr.bf16.mxu0 %v3272_v3  ;;  %v58_v63 = vld [vmem:[%s4045_s0 + $0xc8] sm:$0xff]  ;;  %v57_v0 = vld [vmem:[%s4045_s0 + $0xc0] sm:$0xff]  ;;  %v60_v1 = vld [vmem:[%s4045_s0 + $0xd8] sm:$0xff] }
  0x26   :  { %v59_v2 = vld [vmem:[%s4045_s0 + $0xd0] sm:$0xff]  ;;  %v62_v4 = vld [vmem:[%s4045_s0 + $0xe8] sm:$0xff]  ;;  %v61_v5 = vld [vmem:[%s4045_s0 + $0xe0] sm:$0xff] }
  0x27   :  { %v64_v6 = vld [vmem:[%s4045_s0 + $0xf8] sm:$0xff]  ;;  %v63_v7 = vld [vmem:[%s4045_s0 + $0xf0] sm:$0xff]  ;;  %v66_v8 = vld [vmem:[%s4045_s0 + $0x108] sm:$0xff] }
  0x28   :  { %3065 = vmatpush1.bf16.msra.mxu0 %v3064_v31  ;;  %v65_v9 = vld [vmem:[%s4045_s0 + $0x100] sm:$0xff]  ;;  %v68_v10 = vld [vmem:[%s4045_s0 + $0x118] sm:$0xff]  ;;  %v67_v11 = vld [vmem:[%s4045_s0 + $0x110] sm:$0xff] }
  0x29   :  { %3066 = vmatprep.subr.bf16.mxu0 %v3272_v3  ;;  %v70_v12 = vld [vmem:[%s4045_s0 + $0x128] sm:$0xff]  ;;  %v69_v13 = vld [vmem:[%s4045_s0 + $0x120] sm:$0xff]  ;;  %v72_v14 = vld [vmem:[%s4045_s0 + $0x138] sm:$0xff] }
  0x2a   :  { %v71_v15 = vld [vmem:[%s4045_s0 + $0x130] sm:$0xff]  ;;  %v74_v16 = vld [vmem:[%s4045_s0 + $0x148] sm:$0xff]  ;;  %v73_v17 = vld [vmem:[%s4045_s0 + $0x140] sm:$0xff] }
  0x2b   :  { %v76_v18 = vld [vmem:[%s4045_s0 + $0x158] sm:$0xff]  ;;  %v75_v19 = vld [vmem:[%s4045_s0 + $0x150] sm:$0xff]  ;;  %v78_v20 = vld [vmem:[%s4045_s0 + $0x168] sm:$0xff] }
  0x2c   :  { %3068 = vmatpush1.bf16.msra.mxu0 %v3067_v34  ;;  %v77_v21 = vld [vmem:[%s4045_s0 + $0x160] sm:$0xff]  ;;  %v80_v22 = vld [vmem:[%s4045_s0 + $0x178] sm:$0xff]  ;;  %v79_v23 = vld [vmem:[%s4045_s0 + $0x170] sm:$0xff] }
  0x2d   :  { %3069 = vmatprep.subr.bf16.mxu0 %v3272_v3  ;;  %v82_v24 = vld [vmem:[%s4045_s0 + $0x188] sm:$0xff]  ;;  %v81_v25 = vld [vmem:[%s4045_s0 + $0x180] sm:$0xff] }
  0x2e   :  { %v517_v26 = vld [vmem:[%s4048_s3] sm:$0xff]  ;;  %v518_v27 = vld [vmem:[%s4048_s3 + $0x8] sm:$0xff] }
  0x2f   :  { %v3073_v28 = vpack.c.bf16 %v518_v27, %v517_v26 }
  0x30   :  { %3071 = vmatpush1.bf16.msra.mxu0 %v3070_v37 }
  0x31   :  { %239 = vmatprep.subr.mxu0 %v3273_v38  ;;  %3074 = vmatpush3.bf16.msra.mxu1 %v3073_v28 }
  0x32   :  { %3075 = vmatprep.subr.bf16.mxu1 %v3272_v3 }
  0x34   :  { %240 = vmatpush1.msra.mxu0 %v107_v39 }
  0x35   :  { %256 = vmatmul.mubr.f32.vlgmr.msra.gmra.mrb[0].mxu0 %v33_v40  ;;  %3171 = vmatprep.subr.bf16.mxu0 %v3272_v3 }
  0x36   :  { %2630 = vmatprep.mubr.msk.f32.mxu0 %vm115_vm0, %v36_v41 }
  0x39   :  { %261 = vmatmul.mubr.f32.gmra.mrb[2].mxu0 %v35_v42  ;;  %v3605_v42 = vld [vmem:[%s4047_s2] ss:$0 sm:$0xff] }
  0x3a   :  { %2631 = vmatprep.mubr.msk.f32.mxu0 %vm115_vm0, %v38_v43 }
  0x3d   :  { %266 = vmatmul.mubr.f32.gmra.mrb[4].mxu0 %v37_v44 }
  0x3e   :  { %2632 = vmatprep.mubr.msk.f32.mxu0 %vm115_vm0, %v40_v45 }
  0x41   :  { %271 = vmatmul.mubr.f32.gmra.mrb[6].mxu0 %v39_v46 }
  0x42   :  { %2633 = vmatprep.mubr.msk.f32.mxu0 %vm115_vm0, %v42_v47 }
  0x45   :  { %276 = vmatmul.mubr.f32.gmra.mrb[8].mxu0 %v41_v48 }
  0x46   :  { %2634 = vmatprep.mubr.msk.f32.mxu0 %vm115_vm0, %v44_v49 }
  0x49   :  { %281 = vmatmul.mubr.f32.gmra.mrb[10].mxu0 %v43_v50 }
  0x4a   :  { %2635 = vmatprep.mubr.msk.f32.mxu0 %vm115_vm0, %v46_v51 }
  0x4d   :  { %286 = vmatmul.mubr.f32.gmra.mrb[12].mxu0 %v45_v52 }
  0x4e   :  { %2636 = vmatprep.mubr.msk.f32.mxu0 %vm115_vm0, %v48_v53 }
  0x51   :  { %291 = vmatmul.mubr.f32.gmra.mrb[14].mxu0 %v47_v54 }
  0x52   :  { %2637 = vmatprep.mubr.msk.f32.mxu0 %vm115_vm0, %v50_v55 }
  0x55   :  { %296 = vmatmul.mubr.f32.gmra.mrb[16].mxu0 %v49_v56 }
  0x56   :  { %2638 = vmatprep.mubr.msk.f32.mxu0 %vm115_vm0, %v52_v57 }
  0x59   :  { %301 = vmatmul.mubr.f32.gmra.mrb[18].mxu0 %v51_v58 }
  0x5a   :  { %2639 = vmatprep.mubr.msk.f32.mxu0 %vm115_vm0, %v54_v59 }
  0x5d   :  { %306 = vmatmul.mubr.f32.gmra.mrb[20].mxu0 %v53_v60 }
  0x5e   :  { %2640 = vmatprep.mubr.msk.f32.mxu0 %vm115_vm0, %v56_v61 }
  0x61   :  { %311 = vmatmul.mubr.f32.gmra.mrb[22].mxu0 %v55_v62 }
  0x62   :  { %2641 = vmatprep.mubr.msk.f32.mxu0 %vm115_vm0, %v58_v63 }
  0x65   :  { %316 = vmatmul.mubr.f32.gmra.mrb[24].mxu0 %v57_v0 }
  0x66   :  { %2642 = vmatprep.mubr.msk.f32.mxu0 %vm115_vm0, %v60_v1 }
  0x69   :  { %321 = vmatmul.mubr.f32.gmra.mrb[26].mxu0 %v59_v2 }
  0x6a   :  { %2643 = vmatprep.mubr.msk.f32.mxu0 %vm115_vm0, %v62_v4 }
  0x6d   :  { %326 = vmatmul.mubr.f32.gmra.mrb[28].mxu0 %v61_v5 }
  0x6e   :  { %2644 = vmatprep.mubr.msk.f32.mxu0 %vm115_vm0, %v64_v6 }
  0x71   :  { %331 = vmatmul.mubr.f32.gmra.mrb[30].mxu0 %v63_v7 }
  0x72   :  { %2645 = vmatprep.mubr.msk.f32.mxu0 %vm115_vm0, %v66_v8 }
  0x75   :  { %336 = vmatmul.mubr.f32.gmra.mrb[32].mxu0 %v65_v9 }
  0x76   :  { %2646 = vmatprep.mubr.msk.f32.mxu0 %vm115_vm0, %v68_v10 }
  0x79   :  { %341 = vmatmul.mubr.f32.gmra.mrb[34].mxu0 %v67_v11 }
  0x7a   :  { %2647 = vmatprep.mubr.msk.f32.mxu0 %vm115_vm0, %v70_v12 }
  0x7d   :  { %346 = vmatmul.mubr.f32.gmra.mrb[36].mxu0 %v69_v13 }
  0x7e   :  { %2648 = vmatprep.mubr.msk.f32.mxu0 %vm115_vm0, %v72_v14 }
  0x81   :  { %351 = vmatmul.mubr.f32.gmra.mrb[38].mxu0 %v71_v15 }
  0x82   :  { %2649 = vmatprep.mubr.msk.f32.mxu0 %vm115_vm0, %v74_v16 }
  0x85   :  { %356 = vmatmul.mubr.f32.gmra.mrb[40].mxu0 %v73_v17 }
  0x86   :  { %2650 = vmatprep.mubr.msk.f32.mxu0 %vm115_vm0, %v76_v18 }
  0x89   :  { %361 = vmatmul.mubr.f32.gmra.mrb[42].mxu0 %v75_v19 }
  0x8a   :  { %2651 = vmatprep.mubr.msk.f32.mxu0 %vm115_vm0, %v78_v20 }
  0x8d   :  { %366 = vmatmul.mubr.f32.gmra.mrb[44].mxu0 %v77_v21 }
  0x8e   :  { %2652 = vmatprep.mubr.msk.f32.mxu0 %vm115_vm0, %v80_v22 }
  0x91   :  { %371 = vmatmul.mubr.f32.gmra.mrb[46].mxu0 %v79_v23 }
  0x92   :  { %2653 = vmatprep.mubr.msk.f32.mxu0 %vm115_vm0, %v82_v24 }
  0x95   :  { %376 = vmatmul.mubr.f32.gmra.mrb[48].mxu0 %v81_v25 }
  0x96   :  { %3033 = vmatprep.mubr.msk.f32.mxu0 %vm3274_vm1, %v3273_v38 }
 0x108   :  { %v257_v29 = vpop.f32.mrb[0].mxu0 }
 0x109   :  { %v259_v30 = vpop.f32.mrb[1].mxu0  ;;  %v258_v50 = vadd.f32 %v3605_v42, %v257_v29 }
 0x10b   :  { %v381_v57 = vmax.f32 %v258_v50, 0.0 }
 0x10c   :  { %v262_v31 = vpop.f32.mrb[2].mxu0 }
 0x10d   :  { %v264_v32 = vpop.f32.mrb[3].mxu0  ;;  %v263_v58 = vadd.f32 %v3605_v42, %v262_v31 }
 0x10f   :  { %v382_v2 = vmax.f32 %v263_v58, 0.0 }
 0x110   :  { %v267_v33 = vpop.f32.mrb[4].mxu0 }
 0x111   :  { %v269_v34 = vpop.f32.mrb[5].mxu0  ;;  %v268_v4 = vadd.f32 %v3605_v42, %v267_v33 }
 0x113   :  { %v383_v12 = vmax.f32 %v268_v4, 0.0 }
 0x114   :  { %v272_v35 = vpop.f32.mrb[6].mxu0 }
 0x115   :  { %v274_v36 = vpop.f32.mrb[7].mxu0  ;;  %v273_v13 = vadd.f32 %v3605_v42, %v272_v35 }
 0x117   :  { %v384_v21 = vmax.f32 %v273_v13, 0.0 }
 0x118   :  { %v277_v37 = vpop.f32.mrb[8].mxu0 }
 0x119   :  { %v279_v39 = vpop.f32.mrb[9].mxu0  ;;  %v278_v22 = vadd.f32 %v3605_v42, %v277_v37 }
 0x11b   :  { %v385_v30 = vmax.f32 %v278_v22, 0.0 }
 0x11c   :  { %v282_v40 = vpop.f32.mrb[10].mxu0 }
 0x11d   :  { %v284_v41 = vpop.f32.mrb[11].mxu0  ;;  %v283_v31 = vadd.f32 %v3605_v42, %v282_v40 }
 0x11f   :  { %v386_v41 = vmax.f32 %v283_v31, 0.0 }
 0x120   :  { %v287_v43 = vpop.f32.mrb[12].mxu0 }
 0x121   :  { %v288_v44 = vadd.f32 %v3605_v42, %v287_v43  ;;  %v289_v45 = vpop.f32.mrb[13].mxu0 }
 0x123   :  { %v387_v47 = vmax.f32 %v288_v44, 0.0 }
 0x124   :  { %v292_v46 = vpop.f32.mrb[14].mxu0 }
 0x125   :  { %v293_v48 = vadd.f32 %v3605_v42, %v292_v46  ;;  %v294_v49 = vpop.f32.mrb[15].mxu0  ;;  %v414_v53 = vrot.slane %v387_v47, 2 }
 0x127   :  { %v388_v51 = vmax.f32 %v293_v48, 0.0 }
 0x128   :  { %v297_v52 = vpop.f32.mrb[16].mxu0 }
 0x129   :  { %v415_v54 = vrot.slane %v388_v51, 2  ;;  %v298_v55 = vadd.f32 %v3605_v42, %v297_v52  ;;  %v299_v56 = vpop.f32.mrb[17].mxu0 }
 0x12b   :  { %v416_v59 = vsel %vm413_vm2, %v414_v53, %v415_v54  ;;  %v389_v60 = vmax.f32 %v298_v55, 0.0 }
 0x12c   :  { %v434_v61 = vadd.f32 %v416_v59, %v381_v57  ;;  %v302_v62 = vpop.f32.mrb[18].mxu0 }
 0x12d   :  { %v417_v63 = vrot.slane %v389_v60, 2  ;;  %v303_v0 = vadd.f32 %v3605_v42, %v302_v62  ;;  %v304_v1 = vpop.f32.mrb[19].mxu0 }
 0x12f   :  { %v418_v5 = vsel %vm413_vm2, %v415_v54, %v417_v63  ;;  %v390_v6 = vmax.f32 %v303_v0, 0.0 }
 0x130   :  { %v435_v7 = vadd.f32 %v418_v5, %v382_v2  ;;  %v307_v8 = vpop.f32.mrb[20].mxu0 }
 0x131   :  { %v419_v9 = vrot.slane %v390_v6, 2  ;;  %v308_v10 = vadd.f32 %v3605_v42, %v307_v8  ;;  %v309_v11 = vpop.f32.mrb[21].mxu0 }
 0x133   :  { %v420_v14 = vsel %vm413_vm2, %v417_v63, %v419_v9  ;;  %v391_v15 = vmax.f32 %v308_v10, 0.0 }
 0x134   :  { %v436_v16 = vadd.f32 %v420_v14, %v383_v12  ;;  %v312_v17 = vpop.f32.mrb[22].mxu0 }
 0x135   :  { %v421_v18 = vrot.slane %v391_v15, 2  ;;  %v313_v19 = vadd.f32 %v3605_v42, %v312_v17  ;;  %v314_v20 = vpop.f32.mrb[23].mxu0 }
 0x137   :  { %v422_v23 = vsel %vm413_vm2, %v419_v9, %v421_v18  ;;  %v392_v24 = vmax.f32 %v313_v19, 0.0 }
 0x138   :  { %v437_v25 = vadd.f32 %v422_v23, %v384_v21  ;;  %v317_v26 = vpop.f32.mrb[24].mxu0 }
 0x139   :  { %v423_v27 = vrot.slane %v392_v24, 2  ;;  %v318_v28 = vadd.f32 %v3605_v42, %v317_v26  ;;  %v319_v29 = vpop.f32.mrb[25].mxu0 }
 0x13b   :  { %v424_v32 = vsel %vm413_vm2, %v421_v18, %v423_v27  ;;  %v393_v33 = vmax.f32 %v318_v28, 0.0 }
 0x13c   :  { %v438_v34 = vadd.f32 %v424_v32, %v385_v30  ;;  %v322_v35 = vpop.f32.mrb[26].mxu0  ;;  %v600_v32 = vld [vmem:[%s4048_s3 + $0x10] sm:$0xff] }
 0x13d   :  { %v425_v36 = vrot.slane %v393_v33, 2  ;;  %v323_v37 = vadd.f32 %v3605_v42, %v322_v35  ;;  %v324_v39 = vpop.f32.mrb[27].mxu0  ;;  %v448_v49 = vrot.slane %v393_v33, 4  ;;  %v601_v33 = vld [vmem:[%s4048_s3 + $0x18] sm:$0xff] }
 0x13f   :  { %v426_v43 = vsel %vm413_vm2, %v423_v27, %v425_v36  ;;  %v440_v44 = vadd.f32 %v425_v36, %v387_v47  ;;  %v394_v45 = vmax.f32 %v323_v37, 0.0 }
 0x140   :  { %v439_v46 = vadd.f32 %v426_v43, %v386_v41  ;;  %v327_v48 = vpop.f32.mrb[28].mxu0 }
 0x141   :  { %v449_v50 = vrot.slane %v394_v45, 4  ;;  %v328_v40 = vadd.f32 %v3605_v42, %v327_v48  ;;  %v329_v51 = vpop.f32.mrb[29].mxu0 }
 0x143   :  { %v450_v52 = vsel %vm447_vm3, %v448_v49, %v449_v50  ;;  %v395_v53 = vmax.f32 %v328_v40, 0.0 }
 0x144   :  { %v468_v54 = vadd.f32 %v450_v52, %v434_v61  ;;  %v332_v55 = vpop.f32.mrb[30].mxu0 }
 0x145   :  { %v451_v56 = vrot.slane %v395_v53, 4  ;;  %v333_v57 = vadd.f32 %v3605_v42, %v332_v55  ;;  %v334_v58 = vpop.f32.mrb[31].mxu0  ;;  %v676_v53 = vld [vmem:[%s4048_s3 + $0x20] sm:$0xff] }
 0x147   :  { %v452_v47 = vsel %vm447_vm3, %v449_v50, %v451_v56  ;;  %v396_v59 = vmax.f32 %v333_v57, 0.0 }
 0x148   :  { %v469_v60 = vadd.f32 %v452_v47, %v435_v7  ;;  %v337_v62 = vpop.f32.mrb[32].mxu0 }
 0x149   :  { %v453_v63 = vrot.slane %v396_v59, 4  ;;  %v338_v0 = vadd.f32 %v3605_v42, %v337_v62  ;;  %v339_v1 = vpop.f32.mrb[33].mxu0 }
 0x14b   :  { %v454_v2 = vsel %vm447_vm3, %v451_v56, %v453_v63  ;;  %v397_v4 = vmax.f32 %v338_v0, 0.0 }
 0x14c   :  { %v470_v5 = vadd.f32 %v454_v2, %v436_v16  ;;  %v342_v6 = vpop.f32.mrb[34].mxu0 }
 0x14d   :  { %v455_v61 = vrot.slane %v397_v4, 4  ;;  %v343_v8 = vadd.f32 %v3605_v42, %v342_v6  ;;  %v344_v9 = vpop.f32.mrb[35].mxu0 }
 0x14e   :  { %v753_v9 = vld [vmem:[%s4048_s3 + $0x38] sm:$0xff] }
 0x14f   :  { %v456_v10 = vsel %vm447_vm3, %v453_v63, %v455_v61  ;;  %v398_v11 = vmax.f32 %v343_v8, 0.0  ;;  %v752_v8 = vld [vmem:[%s4048_s3 + $0x30] sm:$0xff] }
 0x150   :  { %v471_v12 = vadd.f32 %v456_v10, %v437_v25  ;;  %v347_v13 = vpop.f32.mrb[36].mxu0 }
 0x151   :  { %v457_v7 = vrot.slane %v398_v11, 4  ;;  %v348_v14 = vadd.f32 %v3605_v42, %v347_v13  ;;  %v349_v15 = vpop.f32.mrb[37].mxu0  ;;  %v3082_v13 = vpack.c.bf16 %v753_v9, %v752_v8  ;;  %v1816_v9 = vld [vmem:[%s4048_s3 + $0x110] sm:$0xff] }
 0x153   :  { %v458_v17 = vsel %vm447_vm3, %v455_v61, %v457_v7  ;;  %v399_v18 = vmax.f32 %v348_v14, 0.0 }
 0x154   :  { %v3637_v19 = vadd.f32 %v458_v17, %v438_v34  ;;  %v352_v16 = vpop.f32.mrb[38].mxu0 }
 0x155   :  { %v459_v20 = vrot.slane %v399_v18, 4  ;;  %v353_v21 = vadd.f32 %v3605_v42, %v352_v16  ;;  %v354_v22 = vpop.f32.mrb[39].mxu0  ;;  %v482_v28 = vrot.slane %v399_v18, 6  ;;  %v828_v18 = vld [vmem:[%s4048_s3 + $0x40] sm:$0xff] }
 0x156   :  { %v905_v22 = vld [vmem:[%s4048_s3 + $0x58] sm:$0xff] }
 0x157   :  { %v460_v23 = vsel %vm447_vm3, %v457_v7, %v459_v20  ;;  %v3641_v24 = vadd.f32 %v459_v20, %v440_v44  ;;  %v400_v25 = vmax.f32 %v353_v21, 0.0  ;;  %v3076_v44 = vpack.c.bf16 %v601_v33, %v600_v32  ;;  %v904_v21 = vld [vmem:[%s4048_s3 + $0x50] sm:$0xff]  ;;  %v1132_v33 = vld [vmem:[%s4048_s3 + $0x80] sm:$0xff] }
 0x158   :  { %v473_v26 = vadd.f32 %v460_v23, %v439_v46  ;;  %v357_v27 = vpop.f32.mrb[40].mxu0  ;;  %v3088_v23 = vpack.c.bf16 %v905_v22, %v904_v21  ;;  %v2044_v21 = vld [vmem:[%s4048_s3 + $0x140] sm:$0xff]  ;;  %v2045_v22 = vld [vmem:[%s4048_s3 + $0x148] sm:$0xff] }
 0x159   :  { %v483_v29 = vrot.slane %v400_v25, 6  ;;  %v358_v30 = vadd.f32 %v3605_v42, %v357_v27  ;;  %v359_v31 = vpop.f32.mrb[41].mxu0  ;;  %v980_v25 = vld [vmem:[%s4048_s3 + $0x60] sm:$0xff] }
 0x15b   :  { %v484_v34 = vsel %vm481_vm4, %v482_v28, %v483_v29  ;;  %v401_v35 = vmax.f32 %v358_v30, 0.0  ;;  %v1057_v30 = vld [vmem:[%s4048_s3 + $0x78] sm:$0xff] }
 0x15c   :  { %v502_v36 = vadd.f32 %v484_v34, %v468_v54  ;;  %v362_v37 = vpop.f32.mrb[42].mxu0  ;;  %v677_v54 = vld [vmem:[%s4048_s3 + $0x28] sm:$0xff] }
 0x15d   :  { %v485_v39 = vrot.slane %v401_v35, 6  ;;  %v363_v41 = vadd.f32 %v3605_v42, %v362_v37  ;;  %v364_v43 = vpop.f32.mrb[43].mxu0  ;;  %v3079_v62 = vpack.c.bf16 %v677_v54, %v676_v53  ;;  %v1133_v34 = vld [vmem:[%s4048_s3 + $0x88] sm:$0xff]  ;;  %v1208_v37 = vld [vmem:[%s4048_s3 + $0x90] sm:$0xff] }
 0x15e   :  { %v509_v45 = vmul.f32 0.25, %v502_v36  ;;  %v3097_v35 = vpack.c.bf16 %v1133_v34, %v1132_v33  ;;  %v1437_v53 = vld [vmem:[%s4048_s3 + $0xc8] sm:$0xff]  ;;  %v2273_v33 = vld [vmem:[%s4048_s3 + $0x178] sm:$0xff] }
 0x15f   :  { %v486_v46 = vsel %vm481_vm4, %v483_v29, %v485_v39  ;;  %v402_v48 = vmax.f32 %v363_v41, 0.0  ;;  %v1056_v29 = vld [vmem:[%s4048_s3 + $0x70] sm:$0xff] }
 0x160   :  { %v503_v49 = vadd.f32 %v486_v46, %v469_v60  ;;  %v367_v50 = vpop.f32.mrb[44].mxu0  ;;  %2796 = vmatmul.mubr.msk.f32.vlgmr.msra.gmra.mrb[0].mxu1 %vm519_vm5, %v509_v45  ;;  %v602_v63 = vrot.slane %v509_v45, 2  ;;  %v678_v7 = vrot.slane %v509_v45, 4  ;;  %v754_v20 = vrot.slane %v509_v45, 6  ;;  %v1285_v45 = vld [vmem:[%s4048_s3 + $0xa8] sm:$0xff] }
 0x161   :  { %v487_v40 = vrot.slane %v402_v48, 6  ;;  %v368_v51 = vadd.f32 %v3605_v42, %v367_v50  ;;  %3077 = vmatpush3.bf16.msra.mxu1 %v3076_v44  ;;  %v369_v52 = vpop.f32.mrb[45].mxu0  ;;  %2802 = vmatprep.mubr.msk.f32.mxu1 %vm3274_vm1, %v3273_v38  ;;  %v3094_v31 = vpack.c.bf16 %v1057_v30, %v1056_v29  ;;  %v1284_v44 = vld [vmem:[%s4048_s3 + $0xa0] sm:$0xff]  ;;  %v1361_v50 = vld [vmem:[%s4048_s3 + $0xb8] sm:$0xff]  ;;  %v2197_v30 = vld [vmem:[%s4048_s3 + $0x168] sm:$0xff] }
 0x162   :  { %3078 = vmatprep.subr.bf16.mxu1 %v3272_v3  ;;  %v3103_v46 = vpack.c.bf16 %v1285_v45, %v1284_v44  ;;  %v1436_v52 = vld [vmem:[%s4048_s3 + $0xc0] sm:$0xff]  ;;  %v2426_v44 = vld [vmem:[%s4050_s5 + $0x8] sm:$0xff] }
 0x163   :  { %v488_v55 = vsel %vm481_vm4, %v485_v39, %v487_v40  ;;  %v403_v56 = vmax.f32 %v368_v51, 0.0  ;;  %v1209_v39 = vld [vmem:[%s4048_s3 + $0x98] sm:$0xff]  ;;  %v3109_v54 = vpack.c.bf16 %v1437_v53, %v1436_v52  ;;  %v2196_v29 = vld [vmem:[%s4048_s3 + $0x160] sm:$0xff]  ;;  %v2431_v52 = vld [vmem:[%s4050_s5 + $0x30] sm:$0xff] }
 0x164   :  { %v3665_v57 = vadd.f32 %v488_v55, %v470_v5  ;;  %v372_v58 = vpop.f32.mrb[46].mxu0  ;;  %v3100_v41 = vpack.c.bf16 %v1209_v39, %v1208_v37  ;;  %v2349_v37 = vld [vmem:[%s4048_s3 + $0x188] sm:$0xff] }
 0x165   :  { %v489_v47 = vrot.slane %v403_v56, 6  ;;  %v373_v59 = vadd.f32 %v3605_v42, %v372_v58  ;;  %v374_v60 = vpop.f32.mrb[47].mxu0  ;;  %v1512_v56 = vld [vmem:[%s4048_s3 + $0xd0] sm:$0xff] }
 0x166   :  { %v511_v43 = vmul.f32 0.25, %v3665_v57  ;;  %v1513_v57 = vld [vmem:[%s4048_s3 + $0xd8] sm:$0xff]  ;;  %v1589_v60 = vld [vmem:[%s4048_s3 + $0xe8] sm:$0xff] }
 0x167   :  { %v490_v0 = vsel %vm481_vm4, %v487_v40, %v489_v47  ;;  %v404_v1 = vmax.f32 %v373_v59, 0.0  ;;  %v3112_v58 = vpack.c.bf16 %v1513_v57, %v1512_v56  ;;  %v1588_v59 = vld [vmem:[%s4048_s3 + $0xe0] sm:$0xff]  ;;  %v2435_v57 = vld [vmem:[%s4050_s5 + $0x50] sm:$0xff] }
 0x168   :  { %v3669_v2 = vadd.f32 %v490_v0, %v471_v12  ;;  %v377_v4 = vpop.f32.mrb[48].mxu0  ;;  %2803 = vmatmul.mubr.msk.f32.vlgmr.msra.gmra.mrb[0].mxu1 %vm519_vm5, %v602_v63  ;;  %v1210_v48 = vrot.slane %v511_v43, 2  ;;  %v1286_v51 = vrot.slane %v511_v43, 4  ;;  %v1362_v55 = vrot.slane %v511_v43, 6  ;;  %v1664_v0 = vld [vmem:[%s4048_s3 + $0xf0] sm:$0xff] }
 0x169   :  { %v491_v6 = vrot.slane %v404_v1, 6  ;;  %v378_v61 = vadd.f32 %v3605_v42, %v377_v4  ;;  %3080 = vmatpush3.bf16.msra.mxu1 %v3079_v62  ;;  %2809 = vmatprep.mubr.msk.f32.mxu1 %vm3274_vm1, %v3273_v38  ;;  %v379_v5 = vpop.f32.mrb[49].mxu0  ;;  %v3115_v62 = vpack.c.bf16 %v1589_v60, %v1588_v59  ;;  %v1665_v1 = vld [vmem:[%s4048_s3 + $0xf8] sm:$0xff]  ;;  %v2437_v59 = vld [vmem:[%s4050_s5 + $0x60] sm:$0xff]  ;;  %v2438_v60 = vld [vmem:[%s4050_s5 + $0x68] sm:$0xff] }
 0x16a   :  { %3081 = vmatprep.subr.bf16.mxu1 %v3272_v3 }
 0x16b   :  { %v492_v10 = vsel %vm481_vm4, %v489_v47, %v491_v6  ;;  %v405_v11 = vmax.f32 %v378_v61, 0.0  ;;  %v512_v47 = vmul.f32 0.25, %v3669_v2  ;;  %v3118_v2 = vpack.c.bf16 %v1665_v1, %v1664_v0  ;;  %v1741_v61 = vld [vmem:[%s4048_s3 + $0x108] sm:$0xff]  ;;  %v2440_v0 = vld [vmem:[%s4050_s5 + $0x78] sm:$0xff] }
 0x16c   :  { %v3684_v42 = vadd.f32 %v492_v10, %v3637_v19  ;;  %v829_v19 = vld [vmem:[%s4048_s3 + $0x48] sm:$0xff]  ;;  %v1817_v10 = vld [vmem:[%s4048_s3 + $0x118] sm:$0xff] }
 0x16d   :  { %v493_v12 = vrot.slane %v405_v11, 6  ;;  %v3085_v16 = vpack.c.bf16 %v829_v19, %v828_v18  ;;  %v1514_v63 = vrot.slane %v512_v47, 2  ;;  %v1590_v4 = vrot.slane %v512_v47, 4  ;;  %v1969_v19 = vld [vmem:[%s4048_s3 + $0x138] sm:$0xff] }
 0x16e   :  { %v1666_v8 = vrot.slane %v512_v47, 6  ;;  %v3124_v11 = vpack.c.bf16 %v1817_v10, %v1816_v9  ;;  %v2523_v9 = vld [vmem:[%s4052_s7 + $0x20] sm:$0xff]  ;;  %v2524_v10 = vld [vmem:[%s4052_s7 + $0x28] sm:$0xff] }
 0x16f   :  { %v494_v14 = vsel %vm481_vm4, %v491_v6, %v493_v12  ;;  %v3688_v15 = vadd.f32 %v493_v12, %v3641_v24  ;;  %v510_v24 = vmul.f32 0.25, %v503_v49  ;;  %v1360_v49 = vld [vmem:[%s4048_s3 + $0xb0] sm:$0xff]  ;;  %v1740_v6 = vld [vmem:[%s4048_s3 + $0x100] sm:$0xff]  ;;  %v513_v12 = vmul.f32 0.25, %v3684_v42 }
 0x170   :  { %v3690_v17 = vadd.f32 %v494_v14, %v473_v26  ;;  %2810 = vmatmul.mubr.msk.f32.vlgmr.msra.gmra.mrb[0].mxu1 %vm519_vm5, %v678_v7  ;;  %v981_v26 = vld [vmem:[%s4048_s3 + $0x68] sm:$0xff]  ;;  %v3106_v40 = vpack.c.bf16 %v1361_v50, %v1360_v49  ;;  %v3121_v5 = vpack.c.bf16 %v1741_v61, %v1740_v6  ;;  %v1968_v42 = vld [vmem:[%s4048_s3 + $0x130] sm:$0xff]  ;;  %v2428_v49 = vld [vmem:[%s4050_s5 + $0x18] sm:$0xff] }
 0x171   :  { %3083 = vmatpush3.bf16.msra.mxu1 %v3082_v13  ;;  %2816 = vmatprep.mubr.msk.f32.mxu1 %vm3274_vm1, %v3273_v38  ;;  %v3091_v27 = vpack.c.bf16 %v981_v26, %v980_v25  ;;  %v906_v28 = vrot.slane %v510_v24, 2  ;;  %v982_v32 = vrot.slane %v510_v24, 4  ;;  %v1058_v36 = vrot.slane %v510_v24, 6  ;;  %v1892_v13 = vld [vmem:[%s4048_s3 + $0x120] sm:$0xff]  ;;  %v1893_v7 = vld [vmem:[%s4048_s3 + $0x128] sm:$0xff]  ;;  %v2120_v25 = vld [vmem:[%s4048_s3 + $0x150] sm:$0xff] }
 0x172   :  { %3084 = vmatprep.subr.bf16.mxu1 %v3272_v3  ;;  %v3127_v14 = vpack.c.bf16 %v1893_v7, %v1892_v13  ;;  %v1818_v18 = vrot.slane %v513_v12, 2  ;;  %v2121_v26 = vld [vmem:[%s4048_s3 + $0x158] sm:$0xff]  ;;  %v2521_v6 = vld [vmem:[%s4052_s7 + $0x10] sm:$0xff] }
 0x173   :  { %v2526_v13 = vld [vmem:[%s4052_s7 + $0x38] sm:$0xff] }
 0x178   :  { %2817 = vmatmul.mubr.msk.f32.vlgmr.msra.gmra.mrb[0].mxu1 %vm519_vm5, %v754_v20  ;;  %v1894_v20 = vrot.slane %v513_v12, 4 }
 0x179   :  { %3086 = vmatpush3.bf16.msra.mxu1 %v3085_v16  ;;  %2823 = vmatprep.mubr.msk.f32.mxu1 %vm3274_vm1, %v3273_v38  ;;  %v3130_v16 = vpack.c.bf16 %v1969_v19, %v1968_v42  ;;  %v2529_v19 = vld [vmem:[%s4052_s7 + $0x50] sm:$0xff] }
 0x17a   :  { %3087 = vmatprep.subr.bf16.mxu1 %v3272_v3 }
 0x180   :  { %2824 = vmatmul.mubr.msk.f32.vlgmr.msra.gmra.mrb[0].mxu1 %vm519_vm5, %v510_v24  ;;  %v1970_v24 = vrot.slane %v513_v12, 6 }
 0x181   :  { %3089 = vmatpush3.bf16.msra.mxu1 %v3088_v23  ;;  %2830 = vmatprep.mubr.msk.f32.mxu1 %vm3274_vm1, %v3273_v38  ;;  %v3133_v23 = vpack.c.bf16 %v2045_v22, %v2044_v21  ;;  %v2531_v21 = vld [vmem:[%s4052_s7 + $0x60] sm:$0xff]  ;;  %v2532_v22 = vld [vmem:[%s4052_s7 + $0x68] sm:$0xff] }
 0x182   :  { %3090 = vmatprep.subr.bf16.mxu1 %v3272_v3 }
 0x188   :  { %2831 = vmatmul.mubr.msk.f32.vlgmr.msra.gmra.mrb[0].mxu1 %vm519_vm5, %v906_v28  ;;  %v514_v28 = vmul.f32 0.25, %v3690_v17  ;;  %v2272_v17 = vld [vmem:[%s4048_s3 + $0x170] sm:$0xff] }
 0x189   :  { %3092 = vmatpush3.bf16.msra.mxu1 %v3091_v27  ;;  %2837 = vmatprep.mubr.msk.f32.mxu1 %vm3274_vm1, %v3273_v38  ;;  %v3136_v27 = vpack.c.bf16 %v2121_v26, %v2120_v25  ;;  %v3142_v34 = vpack.c.bf16 %v2273_v33, %v2272_v17  ;;  %v2534_v25 = vld [vmem:[%s4052_s7 + $0x78] sm:$0xff] }
 0x18a   :  { %3093 = vmatprep.subr.bf16.mxu1 %v3272_v3 }
 0x190   :  { %2838 = vmatmul.mubr.msk.f32.vlgmr.msra.gmra.mrb[0].mxu1 %vm519_vm5, %v982_v32  ;;  %v2122_v32 = vrot.slane %v514_v28, 2 }
 0x191   :  { %3095 = vmatpush3.bf16.msra.mxu1 %v3094_v31  ;;  %2844 = vmatprep.mubr.msk.f32.mxu1 %vm3274_vm1, %v3273_v38  ;;  %v3139_v31 = vpack.c.bf16 %v2197_v30, %v2196_v29 }
 0x192   :  { %3096 = vmatprep.subr.bf16.mxu1 %v3272_v3 }
 0x198   :  { %2845 = vmatmul.mubr.msk.f32.vlgmr.msra.gmra.mrb[0].mxu1 %vm519_vm5, %v1058_v36  ;;  %v2348_v36 = vld [vmem:[%s4048_s3 + $0x180] sm:$0xff] }
 0x199   :  { %3098 = vmatpush3.bf16.msra.mxu1 %v3097_v35  ;;  %2851 = vmatprep.mubr.msk.f32.mxu1 %vm3274_vm1, %v3273_v38  ;;  %v2198_v35 = vrot.slane %v514_v28, 4  ;;  %v3145_v39 = vpack.c.bf16 %v2349_v37, %v2348_v36 }
 0x19a   :  { %3099 = vmatprep.subr.bf16.mxu1 %v3272_v3 }
 0x1a0   :  { %2852 = vmatmul.mubr.msk.f32.vlgmr.msra.gmra.mrb[0].mxu1 %vm519_vm5, %v511_v43  ;;  %v2425_v43 = vld [vmem:[%s4050_s5] sm:$0xff] }
 0x1a1   :  { %3101 = vmatpush3.bf16.msra.mxu1 %v3100_v41  ;;  %2858 = vmatprep.mubr.msk.f32.mxu1 %vm3274_vm1, %v3273_v38  ;;  %v2274_v41 = vrot.slane %v514_v28, 6  ;;  %v3148_v45 = vpack.c.bf16 %v2426_v44, %v2425_v43 }
 0x1a2   :  { %3102 = vmatprep.subr.bf16.mxu1 %v3272_v3 }
 0x1a8   :  { %2859 = vmatmul.mubr.msk.f32.vlgmr.msra.gmra.mrb[0].mxu1 %vm519_vm5, %v1210_v48  ;;  %v2427_v48 = vld [vmem:[%s4050_s5 + $0x10] sm:$0xff] }
 0x1a9   :  { %3104 = vmatpush3.bf16.msra.mxu1 %v3103_v46  ;;  %2865 = vmatprep.mubr.msk.f32.mxu1 %vm3274_vm1, %v3273_v38  ;;  %v515_v46 = vmul.f32 0.25, %v3688_v15  ;;  %v3151_v50 = vpack.c.bf16 %v2428_v49, %v2427_v48  ;;  %v2429_v15 = vld [vmem:[%s4050_s5 + $0x20] sm:$0xff] }
 0x1aa   :  { %3105 = vmatprep.subr.bf16.mxu1 %v3272_v3 }
 0x1b0   :  { %2866 = vmatmul.mubr.msk.f32.vlgmr.msra.gmra.mrb[0].mxu1 %vm519_vm5, %v1286_v51 }
 0x1b1   :  { %3107 = vmatpush3.bf16.msra.mxu1 %v3106_v40  ;;  %2872 = vmatprep.mubr.msk.f32.mxu1 %vm3274_vm1, %v3273_v38  ;;  %v2430_v40 = vld [vmem:[%s4050_s5 + $0x28] sm:$0xff] }
 0x1b2   :  { %3108 = vmatprep.subr.bf16.mxu1 %v3272_v3  ;;  %v3154_v51 = vpack.c.bf16 %v2430_v40, %v2429_v15 }
 0x1b8   :  { %2873 = vmatmul.mubr.msk.f32.vlgmr.msra.gmra.mrb[0].mxu1 %vm519_vm5, %v1362_v55  ;;  %v2434_v55 = vld [vmem:[%s4050_s5 + $0x48] sm:$0xff] }
 0x1b9   :  { %3110 = vmatpush3.bf16.msra.mxu1 %v3109_v54  ;;  %2879 = vmatprep.mubr.msk.f32.mxu1 %vm3274_vm1, %v3273_v38  ;;  %v2433_v54 = vld [vmem:[%s4050_s5 + $0x40] sm:$0xff] }
 0x1ba   :  { %3111 = vmatprep.subr.bf16.mxu1 %v3272_v3  ;;  %v3160_v56 = vpack.c.bf16 %v2434_v55, %v2433_v54 }
 0x1c0   :  { %2880 = vmatmul.mubr.msk.f32.vlgmr.msra.gmra.mrb[0].mxu1 %vm519_vm5, %v512_v47 }
 0x1c1   :  { %3113 = vmatpush3.bf16.msra.mxu1 %v3112_v58  ;;  %2886 = vmatprep.mubr.msk.f32.mxu1 %vm3274_vm1, %v3273_v38  ;;  %v2436_v58 = vld [vmem:[%s4050_s5 + $0x58] sm:$0xff] }
 0x1c2   :  { %3114 = vmatprep.subr.bf16.mxu1 %v3272_v3  ;;  %v3163_v47 = vpack.c.bf16 %v2436_v58, %v2435_v57 }
 0x1c8   :  { %2887 = vmatmul.mubr.msk.f32.vlgmr.msra.gmra.mrb[0].mxu1 %vm519_vm5, %v1514_v63  ;;  %v2439_v63 = vld [vmem:[%s4050_s5 + $0x70] sm:$0xff] }
 0x1c9   :  { %3116 = vmatpush3.bf16.msra.mxu1 %v3115_v62  ;;  %2893 = vmatprep.mubr.msk.f32.mxu1 %vm3274_vm1, %v3273_v38  ;;  %v3166_v62 = vpack.c.bf16 %v2438_v60, %v2437_v59  ;;  %v3169_v1 = vpack.c.bf16 %v2440_v0, %v2439_v63 }
 0x1ca   :  { %3117 = vmatprep.subr.bf16.mxu1 %v3272_v3 }
 0x1d0   :  { %2894 = vmatmul.mubr.msk.f32.vlgmr.msra.gmra.mrb[0].mxu1 %vm519_vm5, %v1590_v4  ;;  %v2520_v4 = vld [vmem:[%s4052_s7 + $0x8] sm:$0xff] }
 0x1d1   :  { %3119 = vmatpush3.bf16.msra.mxu1 %v3118_v2  ;;  %2900 = vmatprep.mubr.msk.f32.mxu1 %vm3274_vm1, %v3273_v38  ;;  %v2519_v2 = vld [vmem:[%s4052_s7] sm:$0xff] }
 0x1d2   :  { %3120 = vmatprep.subr.bf16.mxu1 %v3272_v3  ;;  %v3172_v61 = vpack.c.bf16 %v2520_v4, %v2519_v2 }
 0x1d4   :  { %3173 = vmatpush3.bf16.msra.mxu0 %v3172_v61 }
 0x1d5   :  { %3174 = vmatprep.subr.bf16.mxu0 %v3272_v3 }
 0x1d8   :  { %2901 = vmatmul.mubr.msk.f32.vlgmr.msra.gmra.mrb[0].mxu1 %vm519_vm5, %v1666_v8 }
 0x1d9   :  { %3122 = vmatpush3.bf16.msra.mxu1 %v3121_v5  ;;  %2907 = vmatprep.mubr.msk.f32.mxu1 %vm3274_vm1, %v3273_v38  ;;  %v2522_v5 = vld [vmem:[%s4052_s7 + $0x18] sm:$0xff] }
 0x1da   :  { %3123 = vmatprep.subr.bf16.mxu1 %v3272_v3  ;;  %v3175_v8 = vpack.c.bf16 %v2522_v5, %v2521_v6 }
 0x1dc   :  { %3176 = vmatpush3.bf16.msra.mxu0 %v3175_v8 }
 0x1dd   :  { %3177 = vmatprep.subr.bf16.mxu0 %v3272_v3 }
 0x1e0   :  { %2908 = vmatmul.mubr.msk.f32.vlgmr.msra.gmra.mrb[0].mxu1 %vm519_vm5, %v513_v12  ;;  %v2525_v12 = vld [vmem:[%s4052_s7 + $0x30] sm:$0xff] }
 0x1e1   :  { %3125 = vmatpush3.bf16.msra.mxu1 %v3124_v11  ;;  %2914 = vmatprep.mubr.msk.f32.mxu1 %vm3274_vm1, %v3273_v38  ;;  %v3178_v11 = vpack.c.bf16 %v2524_v10, %v2523_v9  ;;  %v3181_v7 = vpack.c.bf16 %v2526_v13, %v2525_v12 }
 0x1e2   :  { %3126 = vmatprep.subr.bf16.mxu1 %v3272_v3 }
 0x1e3   :  { %3179 = vmatpush3.bf16.msra.mxu0 %v3178_v11 }
 0x1e4   :  { %3180 = vmatprep.subr.bf16.mxu0 %v3272_v3 }
 0x1e7   :  { %3182 = vmatpush3.bf16.msra.mxu0 %v3181_v7 }
 0x1e8   :  { %2915 = vmatmul.mubr.msk.f32.vlgmr.msra.gmra.mrb[0].mxu1 %vm519_vm5, %v1818_v18  ;;  %v2528_v18 = vld [vmem:[%s4052_s7 + $0x48] sm:$0xff]  ;;  %3183 = vmatprep.subr.bf16.mxu0 %v3272_v3 }
 0x1e9   :  { %3128 = vmatpush3.bf16.msra.mxu1 %v3127_v14  ;;  %2921 = vmatprep.mubr.msk.f32.mxu1 %vm3274_vm1, %v3273_v38  ;;  %v2527_v14 = vld [vmem:[%s4052_s7 + $0x40] sm:$0xff] }
 0x1ea   :  { %3129 = vmatprep.subr.bf16.mxu1 %v3272_v3  ;;  %v3184_v42 = vpack.c.bf16 %v2528_v18, %v2527_v14 }
 0x1ec   :  { %3185 = vmatpush3.bf16.msra.mxu0 %v3184_v42 }
 0x1ed   :  { %3186 = vmatprep.subr.bf16.mxu0 %v3272_v3 }
 0x1f0   :  { %2922 = vmatmul.mubr.msk.f32.vlgmr.msra.gmra.mrb[0].mxu1 %vm519_vm5, %v1894_v20 }
 0x1f1   :  { %3131 = vmatpush3.bf16.msra.mxu1 %v3130_v16  ;;  %2928 = vmatprep.mubr.msk.f32.mxu1 %vm3274_vm1, %v3273_v38  ;;  %v2530_v16 = vld [vmem:[%s4052_s7 + $0x58] sm:$0xff] }
 0x1f2   :  { %3132 = vmatprep.subr.bf16.mxu1 %v3272_v3  ;;  %v3187_v20 = vpack.c.bf16 %v2530_v16, %v2529_v19 }
 0x1f4   :  { %3188 = vmatpush3.bf16.msra.mxu0 %v3187_v20 }
 0x1f5   :  { %3189 = vmatprep.subr.bf16.mxu0 %v3272_v3 }
 0x1f8   :  { %2929 = vmatmul.mubr.msk.f32.vlgmr.msra.gmra.mrb[0].mxu1 %vm519_vm5, %v1970_v24  ;;  %v2533_v24 = vld [vmem:[%s4052_s7 + $0x70] sm:$0xff] }
 0x1f9   :  { %3134 = vmatpush3.bf16.msra.mxu1 %v3133_v23  ;;  %2935 = vmatprep.mubr.msk.f32.mxu1 %vm3274_vm1, %v3273_v38  ;;  %v3190_v23 = vpack.c.bf16 %v2532_v22, %v2531_v21  ;;  %v3193_v26 = vpack.c.bf16 %v2534_v25, %v2533_v24 }
 0x1fa   :  { %3135 = vmatprep.subr.bf16.mxu1 %v3272_v3 }
 0x1fb   :  { %3191 = vmatpush3.bf16.msra.mxu0 %v3190_v23 }
 0x1fc   :  { %3192 = vmatprep.subr.bf16.mxu0 %v3272_v3 }
 0x1ff   :  { %3194 = vmatpush3.bf16.msra.mxu0 %v3193_v26 }
 0x200   :  { %2936 = vmatmul.mubr.msk.f32.vlgmr.msra.gmra.mrb[0].mxu1 %vm519_vm5, %v514_v28 }
 0x201   :  { %3137 = vmatpush3.bf16.msra.mxu1 %v3136_v27  ;;  %2942 = vmatprep.mubr.msk.f32.mxu1 %vm3274_vm1, %v3273_v38  ;;  %v2655_v27 = vld [vmem:[%s4049_s4] ss:$0 sm:$0xff]  ;;  %s2620_s4 = sshll.u32 %s3275_s26, 4  ;;  %s2621_s4 = int_to_ptr.vmem [resolvable:$true] %s2620_s4 }
 0x202   :  { %3138 = vmatprep.subr.bf16.mxu1 %v3272_v3  ;;  %s3248_s27 = scalar_lea.vmem %s2621_s4, 32  ;;  %p3253_p1 = scmp.lt.s32.totalorder %s2621_s4, %s2621_s4 }
 0x203   :  { %p3249_p0 = scmp.ne.s32.totalorder %s2621_s4, %s3248_s27  ;;  %p3254_p2 = scmp.lt.s32.totalorder %s3248_s27, %s3248_s27 }
 0x205   :  { %p3255_p3 = por %p3254_p2, %p3253_p1 }
 0x207   :  { %p3256_p4 = pnand %p3255_p3, %p3249_p0 }
 0x208   :  { %2943 = vmatmul.mubr.msk.f32.vlgmr.msra.gmra.mrb[0].mxu1 %vm519_vm5, %v2122_v32  ;;  %v2680_v32 = vld [vmem:[%s4051_s6] ss:$0 sm:$0xff] }
 0x209   :  { %3140 = vmatpush3.bf16.msra.mxu1 %v3139_v31  ;;  %2949 = vmatprep.mubr.msk.f32.mxu1 %vm3274_vm1, %v3273_v38 }
 0x20a   :  { %3141 = vmatprep.subr.bf16.mxu1 %v3272_v3 }
 0x210   :  { %2950 = vmatmul.mubr.msk.f32.vlgmr.msra.gmra.mrb[0].mxu1 %vm519_vm5, %v2198_v35 }
 0x211   :  { %3143 = vmatpush3.bf16.msra.mxu1 %v3142_v34  ;;  %2956 = vmatprep.mubr.msk.f32.mxu1 %vm3274_vm1, %v3273_v38 }
 0x212   :  { %3144 = vmatprep.subr.bf16.mxu1 %v3272_v3 }
 0x218   :  { %2957 = vmatmul.mubr.msk.f32.vlgmr.msra.gmra.mrb[0].mxu1 %vm519_vm5, %v2274_v41 }
 0x219   :  { %3146 = vmatpush3.bf16.msra.mxu1 %v3145_v39  ;;  %2963 = vmatprep.mubr.msk.f32.mxu1 %vm3274_vm1, %v3273_v38 }
 0x21a   :  { %3147 = vmatprep.subr.bf16.mxu1 %v3272_v3 }
 0x220   :  { %2964 = vmatmul.mubr.msk.f32.vlgmr.msra.gmra.mrb[0].mxu1 %vm519_vm5, %v515_v46 }
 0x221   :  { %3149 = vmatpush3.bf16.msra.mxu1 %v3148_v45  ;;  %2998 = vmatprep.mubr.msk.f32.mxu1 %vm3274_vm1, %v3273_v38  ;;  %v2432_v38 = vld [vmem:[%s4050_s5 + $0x38] sm:$0xff] }
 0x222   :  { %3150 = vmatprep.subr.bf16.mxu1 %v3272_v3  ;;  %v3157_v53 = vpack.c.bf16 %v2432_v38, %v2431_v52 }
 0x225   :  { %3152 = vmatpush3.bf16.msra.mxu1 %v3151_v50 }
 0x226   :  { %3153 = vmatprep.subr.bf16.mxu1 %v3272_v3 }
 0x229   :  { %3155 = vmatpush3.bf16.msra.mxu1 %v3154_v51 }
 0x22a   :  { %3156 = vmatprep.subr.bf16.mxu1 %v3272_v3 }
 0x22d   :  { %3158 = vmatpush3.bf16.msra.mxu1 %v3157_v53 }
 0x22e   :  { %3159 = vmatprep.subr.bf16.mxu1 %v3272_v3 }
 0x231   :  { %3161 = vmatpush3.bf16.msra.mxu1 %v3160_v56 }
 0x232   :  { %3162 = vmatprep.subr.bf16.mxu1 %v3272_v3 }
 0x235   :  { %3164 = vmatpush3.bf16.msra.mxu1 %v3163_v47 }
 0x236   :  { %3165 = vmatprep.subr.bf16.mxu1 %v3272_v3 }
 0x239   :  { %3167 = vmatpush3.bf16.msra.mxu1 %v3166_v62 }
 0x23a   :  { %3168 = vmatprep.subr.bf16.mxu1 %v3272_v3  ;;  %v2681_v3 = vld [vmem:[%s4053_s8] ss:$0 sm:$0xff] }
 0x23d   :  { %3170 = vmatpush3.bf16.msra.mxu1 %v3169_v1 }
 0x2f3   :  { %v2419_v28 = vpop.f32.mrb[0].mxu1 }
 0x2f4   :  { %v3195_v29 = vadd.f32 %v2655_v27, %v2419_v28  ;;  %v2965_v30 = vpop.f32.mrb[1].mxu1 }
 0x2f6   :  { %v2424_v31 = vmax.f32 %v3195_v29, 0.0 }
 0x2f8   :  { %2999 = vmatmul.mubr.f32.vlgmr.msra.gmra.mrb[2].mxu1 %v2424_v31 }
 0x3cb   :  { %v2514_v17 = vpop.f32.mrb[2].mxu1 }
 0x3cc   :  { %v2515_v33 = vadd.f32 %v2680_v32, %v2514_v17  ;;  %v3000_v34 = vpop.f32.mrb[3].mxu1 }
 0x3ce   :  { %v2518_v35 = vmax.f32 %v2515_v33, 0.0 }
 0x3d0   :  { %3034 = vmatmul.mubr.f32.vlgmr.msra.gmra.mrb[50].mxu0 %v2518_v35 }
 0x4a3   :  { %v2608_v36 = vpop.f32.mrb[50].mxu0 }
 0x4a4   :  { %v2609_v37 = vadd.f32 %v2681_v3, %v2608_v36  ;;  %v3035_v39 = vpop.f32.mrb[51].mxu0 }
 0x4a6   :  { %2613 = vst.msk [vmem:[#allocation2] sm:$0x3] %vm2612_vm6, %v2609_v37 }
 0x4a7   :  { %3259 = shalt.err (!%p3256_p4)
}
 0x4a8   :  { %s3260_s29 = scalar_lea.hbm %s4054_s9, 32 }
 0x4a9   :  { %p3261_p5 = scmp.ne.s32.totalorder %s4054_s9, %s3260_s29  ;;  %p3264_p6 = scmp.lt.u32.totalorder %s3260_s29, %s4054_s9 }
 0x4ab   :  { %p3266_p7 = pnand %p3264_p6, %p3261_p5 }
 0x4ad   :  { %3269 = shalt.err (!%p3266_p7)
}
 0x4ae   :  { %2623 = dma.vmem_to_hbm [thread:$0]  %s2621_s4, 32, %s4054_s9, [#allocation3]  }
 0x4af   :  { %3270 = dma.done.wait [#allocation3], 32  }
 0x4b0   :  { %3271 = vsyncadd [#allocation3], 4294967264 }
 0x4b1   :  { %2627 = vsyncpa [#allocation3], 1 }

</bundles_post_ra>
